<compile_context>
chip_gen: v6e
topology: v6e:2x2x1
jax: 0.10.0
libtpu: 0.0.40
codegen_flags: <defaults>
</compile_context>

<pallas_src>
import functools

import jax
import jax.numpy as jnp
from jax.experimental import pallas as pl
from jax.experimental.pallas import tpu as pltpu

_TOPK_BSEARCH_ITERS = 30  # f32-exact to ~range/2^30; error on the top-k sum is O(k * 1e-8)


# ----------------------------------------------------------------------------
# Fused kernel.
#   Resident inputs (constant index map, small even at production sizes):
#     logits_ref (B, C, T), atn/v/f (B, 1, T), labb/labnb (B, C, 1)
#   Time-tiled inputs (pipelined):
#     cas6_ref (6, C, tT), atn6_ref (6, 1, tT), feat_ref (6, tT, F)
#   out_ref : (1, 8) SMEM [total, cls, norm, guide, contra, mutual, 0, 0]
# ----------------------------------------------------------------------------
def _video_loss_kernel(logits_ref, atn_ref, v_ref, f_ref, labb_ref, labnb_ref,
                       cas6_ref, atn6_ref, feat_ref, out_ref,
                       hf_acc, cs_acc, m_ref, invl_ref, part_ref,
                       *, k, inv_n1, alpha1, alpha2, alpha3):
    j = pl.program_id(0)
    n_tiles = pl.num_programs(0)

    # ------------- step 0: everything that needs full T on the (small) resident tensors
    @pl.when(j == 0)
    def _init():
        logits = logits_ref[...]            # (B, C, T)
        atn = atn_ref[...]                  # (B, 1, T)
        v_atn = v_ref[...]
        f_atn = f_ref[...]
        lab_back = labb_ref[...]            # (B, C, 1)
        lab_nobk = labnb_ref[...]
        b, c, t = logits.shape

        # _multiply(x, atn, include_min=True)
        x_min = jnp.min(logits, axis=1, keepdims=True)          # (B, 1, T)
        supp = atn * (logits - x_min) + x_min                    # (B, C, T)

        # softmax-over-time stats for the 6 contrastive videos (reused by every tile)
        supp6 = supp[:6]
        m6 = jnp.max(supp6, axis=-1, keepdims=True)              # (6, C, 1)
        l6 = jnp.sum(jnp.exp(supp6 - m6), axis=-1, keepdims=True)
        m_ref[...] = m6
        invl_ref[...] = 1.0 / l6

        # ---- fused top-k via value-threshold binary search (read-only passes) ----
        cat = jnp.concatenate([logits, supp], axis=0)            # (2B, C, T)
        kf = jnp.float32(k)
        lo0 = jnp.min(cat, axis=-1, keepdims=True)               # (2B, C, 1)
        hi0 = jnp.max(cat, axis=-1, keepdims=True)

        def search(_, carry):
            lo, hi = carry
            mid = 0.5 * (lo + hi)
            cnt = jnp.sum((cat >= mid).astype(jnp.float32), axis=-1, keepdims=True)
            ge = cnt >= kf
            return jnp.where(ge, mid, lo), jnp.where(ge, hi, mid)

        lo, _ = jax.lax.fori_loop(0, _TOPK_BSEARCH_ITERS, search, (lo0, hi0))
        gt = cat > lo
        cnt_gt = jnp.sum(gt.astype(jnp.float32), axis=-1, keepdims=True)
        sum_gt = jnp.sum(jnp.where(gt, cat, 0.0), axis=-1, keepdims=True)
        inst = (sum_gt + (kf - cnt_gt) * lo) / kf                # (2B, C, 1) top-k mean
        inst_o = inst[:b]                                        # (B, C, 1)
        inst_s = inst[b:]

        # ---- MIL cross-entropy over classes ----
        def mil_sum(inst_bc1, lab):
            lab_n = lab / (jnp.sum(lab, axis=1, keepdims=True) + 0.0001)
            mm = jnp.max(inst_bc1, axis=1, keepdims=True)
            z = inst_bc1 - mm
            lse = jnp.log(jnp.sum(jnp.exp(z), axis=1, keepdims=True))
            return -jnp.sum(lab_n * (z - lse))

        cls_loss = (mil_sum(inst_o, lab_back) + mil_sum(inst_s, lab_nobk)) / float(b)

        # ---- background prob, norm and guide losses ----
        mx_c = jnp.max(logits, axis=1, keepdims=True)
        ex = jnp.exp(logits - mx_c)
        bg = ex[:, c - 1:c, :] / jnp.sum(ex, axis=1, keepdims=True)   # (B, 1, T)
        one_minus_bg = 1.0 - bg
        denom = float(b * t)
        norm_loss = alpha1 * (jnp.sum(atn) + jnp.sum(v_atn) + jnp.sum(f_atn)) / (3.0 * denom)
        guide_loss = alpha2 * (jnp.sum(jnp.abs(one_minus_bg - atn)) +
                               jnp.sum(jnp.abs(one_minus_bg - v_atn)) +
                               jnp.sum(jnp.abs(one_minus_bg - f_atn))) / (3.0 * denom)

        part_ref[0] = cls_loss
        part_ref[1] = norm_loss
        part_ref[2] = guide_loss

        hf_acc[...] = jnp.zeros_like(hf_acc)
        cs_acc[...] = jnp.zeros_like(cs_acc)

    # ------------- every step: contrastive accumulation on this feat time tile --------
    cas6 = cas6_ref[...]                                          # (6, C, tT)
    atn6 = atn6_ref[...]                                          # (6, 1, tT)
    x_min6 = jnp.min(cas6, axis=1, keepdims=True)
    supp6_t = atn6 * (cas6 - x_min6) + x_min6
    a6 = jnp.exp(supp6_t - m_ref[...]) * invl_ref[...]            # normalized softmax cols
    x_tile = feat_ref[...]                                        # (6, tT, F), original dtype
    hf_acc[...] += jnp.einsum('vct,vtf->vcf', a6.astype(x_tile.dtype), x_tile,
                              preferred_element_type=jnp.float32)
    cs_acc[...] += jnp.sum(x_tile.astype(jnp.float32), axis=1, keepdims=True)

    # ------------- last step: contrastive epilogue + scalar outputs -------------------
    @pl.when(j == n_tiles - 1)
    def _finalize():
        sim = jnp.float32(0.0)
        ntmp = jnp.float32(0.0)
        for p in range(3):                                        # once per kernel call
            i0, i1 = 2 * p, 2 * p + 1
            hf1 = hf_acc[i0]                                      # (C, F)
            hf2 = hf_acc[i1]
            # Lf = x^T (1 - a)/n1 == (colsum(x) - Hf) / n1  (softmax columns sum to 1)
            lf1 = (cs_acc[i0] - hf1) * inv_n1
            lf2 = (cs_acc[i1] - hf2) * inv_n1

            def rdot(a, b_):
                return jnp.sum(a * b_, axis=-1, keepdims=True)    # (C, 1)

            nh1 = jnp.sqrt(rdot(hf1, hf1))
            nh2 = jnp.sqrt(rdot(hf2, hf2))
            nl1 = jnp.sqrt(rdot(lf1, lf1))
            nl2 = jnp.sqrt(rdot(lf2, lf2))
            d1 = 1.0 - rdot(hf1, hf2) / (nh1 * nh2)
            d2 = 1.0 - rdot(hf1, lf2) / (nh1 * nl2)
            d3 = 1.0 - rdot(hf2, lf1) / (nh2 * nl1)
            lab = labnb_ref[i0] * labnb_ref[i1]                   # (C, 1)
            sim = sim + 0.5 * jnp.sum(jnp.maximum(d1 - d2 + 0.5, 0.0) * lab) \
                      + 0.5 * jnp.sum(jnp.maximum(d1 - d3 + 0.5, 0.0) * lab)
            ntmp = ntmp + jnp.sum(lab)

        # Unguarded division matches the PyTorch reference (NaN if no shared positive labels).
        contra_loss = alpha3 * sim / ntmp
        mutual_loss = jnp.float32(0.0)
        cls_loss = part_ref[0]
        norm_loss = part_ref[1]
        guide_loss = part_ref[2]
        total = cls_loss + norm_loss + guide_loss + contra_loss + mutual_loss

        out_ref[0, 0] = total
        out_ref[0, 1] = cls_loss
        out_ref[0, 2] = norm_loss
        out_ref[0, 3] = guide_loss
        out_ref[0, 4] = contra_loss
        out_ref[0, 5] = mutual_loss
        out_ref[0, 6] = jnp.float32(0.0)
        out_ref[0, 7] = jnp.float32(0.0)


# ----------------------------------------------------------------------------
# Tile picker: largest multiple-of-128 divisor of T that keeps one feat buffer
# under ~12 MiB (Pallas double-buffers the pipelined input), else full T.
# ----------------------------------------------------------------------------
def _choose_time_tile(t, fdim, itemsize):
    budget = 12 * 1024 * 1024
    max_rows = max(128, budget // max(1, 6 * fdim * itemsize))
    if t <= max_rows:
        return t
    best = None
    d = 128
    lim = min(t, max_rows)
    while d <= lim:
        if t % d == 0:
            best = d
        d += 128
    return best if best is not None else t


# ----------------------------------------------------------------------------
# Wrapper
# ----------------------------------------------------------------------------
def video_loss(feat, cas, attn, v_atn, f_atn, labels, *,
               train_topk=8, alpha1=0.8, alpha2=0.8, alpha3=1.0):
    b, n, c = cas.shape
    fdim = feat.shape[-1]
    assert b >= 6, "Contrastive branch (as in the reference) requires >= 6 videos"
    k = max(1, n // train_topk)
    f32 = jnp.float32

    # Time-on-lanes relayout.  cas needs a real (small) transpose; the (B, N, 1)
    # attention tensors are reshape-only (layout-trivial, no materialized copy).
    cas_t = jnp.transpose(cas, (0, 2, 1)).astype(f32)            # (B, C, T)
    attn_t = attn.astype(f32).reshape(b, 1, n)                   # (B, 1, T)
    v_t = v_atn.astype(f32).reshape(b, 1, n)
    f_t = f_atn.astype(f32).reshape(b, 1, n)
    lab_back = jnp.concatenate(
        [labels, jnp.ones_like(labels[:, :1])], axis=-1).astype(f32)[:, :, None]   # (B, C, 1)
    lab_nobk = jnp.concatenate(
        [labels, jnp.zeros_like(labels[:, :1])], axis=-1).astype(f32)[:, :, None]
    # feat keeps its original dtype (bf16 stays bf16); contraction accumulates in f32.

    t_tile = _choose_time_tile(n, fdim, feat.dtype.itemsize)
    n_tiles = n // t_tile

    # VMEM budget from the post-tiling resident set, capped below v7x headroom.
    feat_tile_bytes = 6 * t_tile * fdim * feat.dtype.itemsize
    cas_tile_bytes = 6 * (c + 1) * t_tile * 4
    resident_bytes = 4 * (b * c * n + 3 * b * n + 2 * b * c)
    scratch_bytes = 4 * (6 * c * fdim + 6 * fdim + 12 * c + 8)
    need = 2 * (feat_tile_bytes + cas_tile_bytes) + 2 * resident_bytes + scratch_bytes + (1 << 20)
    vmem_limit = int(min(48 * 1024 * 1024, max(16 * 1024 * 1024, need)))

    kernel = functools.partial(
        _video_loss_kernel, k=k, inv_n1=1.0 / float(max(n - 1, 1)),
        alpha1=float(alpha1), alpha2=float(alpha2), alpha3=float(alpha3))

    out = pl.pallas_call(
        kernel,
        out_shape=jax.ShapeDtypeStruct((1, 8), jnp.float32),
        grid=(n_tiles,),
        in_specs=[
            pl.BlockSpec((b, c, n), lambda j: (0, 0, 0)),        # cas, resident
            pl.BlockSpec((b, 1, n), lambda j: (0, 0, 0)),        # attn, resident
            pl.BlockSpec((b, 1, n), lambda j: (0, 0, 0)),        # v_atn, resident
            pl.BlockSpec((b, 1, n), lambda j: (0, 0, 0)),        # f_atn, resident
            pl.BlockSpec((b, c, 1), lambda j: (0, 0, 0)),        # labels + back
            pl.BlockSpec((b, c, 1), lambda j: (0, 0, 0)),        # labels + no-back
            pl.BlockSpec((6, c, t_tile), lambda j: (0, 0, j)),   # cas[:6], time-tiled
            pl.BlockSpec((6, 1, t_tile), lambda j: (0, 0, j)),   # attn[:6], time-tiled
            pl.BlockSpec((6, t_tile, fdim), lambda j: (0, j, 0)),# feat[:6], time-tiled
        ],
        out_specs=pl.BlockSpec(memory_space=pltpu.MemorySpace.SMEM),
        scratch_shapes=[
            pltpu.VMEM((6, c, fdim), jnp.float32),   # Hf accumulator
            pltpu.VMEM((6, 1, fdim), jnp.float32),   # feat column-sum accumulator
            pltpu.VMEM((6, c, 1), jnp.float32),      # softmax-over-time max
            pltpu.VMEM((6, c, 1), jnp.float32),      # softmax-over-time 1/denominator
            pltpu.SMEM((4,), jnp.float32),           # cls / norm / guide partials
        ],
        compiler_params=pltpu.CompilerParams(
            dimension_semantics=("arbitrary",),
            vmem_limit_bytes=vmem_limit),
    )(cas_t, attn_t, v_t, f_t, lab_back, lab_nobk, cas_t, attn_t, feat)

    total = out[0, 0]
    parts = (out[0, 1], out[0, 2], out[0, 3], out[0, 4], out[0, 5])
    return total, parts


# ----------------------------------------------------------------------------
# Pure-JAX reference (mirrors the PyTorch forward) for verification
# ----------------------------------------------------------------------------
def _ref_video_loss(feat, cas, attn, v_atn, f_atn, labels, *,
                    train_topk, alpha1, alpha2, alpha3):
    b, n, c = cas.shape
    k = max(1, n // train_topk)
    x_min = cas.min(-1, keepdims=True)
    supp = attn * (cas - x_min) + x_min

    lab_back = jnp.concatenate([labels, jnp.ones_like(labels[:, :1])], -1)
    lab_nobk = jnp.concatenate([labels, jnp.zeros_like(labels[:, :1])], -1)

    def topkloss(el, lab_wb):
        tv = jax.lax.top_k(jnp.swapaxes(el, 1, 2), k)[0]     # (B, C, k)
        inst = tv.mean(-1)                                    # (B, C)
        lab = lab_wb / (lab_wb.sum(1, keepdims=True) + 0.0001)
        return -(lab * jax.nn.log_softmax(inst, axis=-1)).sum(-1)

    mil_o = topkloss(cas, lab_back)
    mil_s = topkloss(supp, lab_nobk)

    sim, ntmp = 0.0, 0.0
    n1 = float(max(n - 1, 1))
    for i in range(0, 6, 2):
        a1 = jax.nn.softmax(supp[i], axis=0)
        a2 = jax.nn.softmax(supp[i + 1], axis=0)
        hf1 = feat[i].T @ a1
        hf2 = feat[i + 1].T @ a2
        lf1 = feat[i].T @ ((1 - a1) / n1)
        lf2 = feat[i + 1].T @ ((1 - a2) / n1)

        def cosd(A, B):
            return 1 - (A * B).sum(0) / (jnp.linalg.norm(A, axis=0) *
                                         jnp.linalg.norm(B, axis=0))

        d1, d2, d3 = cosd(hf1, hf2), cosd(hf1, lf2), cosd(hf2, lf1)
        lab = lab_nobk[i] * lab_nobk[i + 1]
        sim = sim + 0.5 * jnp.sum(jnp.maximum(d1 - d2 + 0.5, 0.0) * lab) \
                  + 0.5 * jnp.sum(jnp.maximum(d1 - d3 + 0.5, 0.0) * lab)
        ntmp = ntmp + lab.sum()
    contra = sim / ntmp

    bg = jax.nn.softmax(cas, -1)[..., -1:]
    cls_loss = mil_o.mean() + mil_s.mean()
    norm_loss = alpha1 * (attn.mean() + v_atn.mean() + f_atn.mean()) / 3
    guide_loss = alpha2 * (jnp.abs(1 - attn - bg).mean() +
                           jnp.abs(1 - v_atn - bg).mean() +
                           jnp.abs(1 - f_atn - bg).mean()) / 3
    return cls_loss + norm_loss + guide_loss + alpha3 * contra


# ----------------------------------------------------------------------------
if __name__ == "__main__":
    key = jax.random.PRNGKey(0)
    b, n, c, fdim = 6, 16, 8, 32            # c includes the background class
    k1, k2, k3, k4, k5, k6 = jax.random.split(key, 6)

    feat = jax.random.normal(k1, (b, n, fdim), jnp.float32)
    cas = jax.random.normal(k2, (b, n, c), jnp.float32)
    attn = jax.nn.sigmoid(jax.random.normal(k3, (b, n, 1), jnp.float32))
    v_atn = jax.nn.sigmoid(jax.random.normal(k4, (b, n, 1), jnp.float32))
    f_atn = jax.nn.sigmoid(jax.random.normal(k5, (b, n, 1), jnp.float32))
    labels = jax.random.bernoulli(k6, 0.5, (b, c - 1)).astype(jnp.float32)
    labels = labels.at[:, 0].set(1.0)       # guarantee positive class overlap (n_tmp > 0)

    hparams = dict(train_topk=8, alpha1=0.8, alpha2=0.8, alpha3=1.0)

    total, parts = video_loss(feat, cas, attn, v_atn, f_atn, labels, **hparams)
    total = jax.block_until_ready(total)

    ref_total = jax.block_until_ready(
        _ref_video_loss(feat, cas, attn, v_atn, f_atn, labels, **hparams))

    assert bool(jnp.allclose(total, ref_total, rtol=1e-2, atol=1e-2)), \
        (float(total), float(ref_total))
    print("KERNEL_OK")
</pallas_src>

<mosaic_0001>
module attributes {stable_mosaic.version = 11 : i64} {
  func.func @_video_loss_kernel(%arg0: i32, %arg1: memref<6x8x16xf32, #tpu.memory_space<vmem>>, %arg2: memref<6x1x16xf32, #tpu.memory_space<vmem>>, %arg3: memref<6x1x16xf32, #tpu.memory_space<vmem>>, %arg4: memref<6x1x16xf32, #tpu.memory_space<vmem>>, %arg5: memref<6x8x1xf32, #tpu.memory_space<vmem>>, %arg6: memref<6x8x1xf32, #tpu.memory_space<vmem>>, %arg7: memref<6x8x16xf32, #tpu.memory_space<vmem>>, %arg8: memref<6x1x16xf32, #tpu.memory_space<vmem>>, %arg9: memref<6x16x32xf32, #tpu.memory_space<vmem>>, %arg10: memref<1x8xf32, #tpu.memory_space<smem>>, %arg11: memref<6x8x32xf32, #tpu.memory_space<vmem>>, %arg12: memref<6x1x32xf32, #tpu.memory_space<vmem>>, %arg13: memref<6x8x1xf32, #tpu.memory_space<vmem>>, %arg14: memref<6x8x1xf32, #tpu.memory_space<vmem>>, %arg15: memref<4xf32, #tpu.memory_space<smem>>) attributes {dimension_semantics = [#tpu.dimension_semantics<arbitrary>], iteration_bounds = array<i64: 1>, scalar_prefetch = 0 : i64, scratch_operands = 5 : i64, tpu.core_type = #tpu.core_type<tc>, window_params = [{pipeline_mode = #tpu.pipeline_mode<synchronous>, transform_indices = @transform_0, window_bounds = array<i64: 6, 8, 16>}, {pipeline_mode = #tpu.pipeline_mode<synchronous>, transform_indices = @transform_1, window_bounds = array<i64: 6, 1, 16>}, {pipeline_mode = #tpu.pipeline_mode<synchronous>, transform_indices = @transform_2, window_bounds = array<i64: 6, 1, 16>}, {pipeline_mode = #tpu.pipeline_mode<synchronous>, transform_indices = @transform_3, window_bounds = array<i64: 6, 1, 16>}, {pipeline_mode = #tpu.pipeline_mode<synchronous>, transform_indices = @transform_4, window_bounds = array<i64: 6, 8, 1>}, {pipeline_mode = #tpu.pipeline_mode<synchronous>, transform_indices = @transform_5, window_bounds = array<i64: 6, 8, 1>}, {transform_indices = @transform_6, window_bounds = array<i64: 6, 8, 16>}, {transform_indices = @transform_7, window_bounds = array<i64: 6, 1, 16>}, {transform_indices = @transform_8, window_bounds = array<i64: 6, 16, 32>}, {transform_indices = @transform_9, window_bounds = array<i64: 1, 8>}]} {
    %c0_i32 = arith.constant 0 : i32
    %0 = arith.cmpi eq, %arg0, %c0_i32 : i32
    %1 = arith.extui %0 : i1 to i32
    %c0_i32_0 = arith.constant 0 : i32
    %2 = arith.cmpi ne, %1, %c0_i32_0 : i32
    scf.if %2 {
      %c0_31 = arith.constant 0 : index
      %c0_32 = arith.constant 0 : index
      %c0_33 = arith.constant 0 : index
      %33 = vector.load %arg1[%c0_31, %c0_32, %c0_33] : memref<6x8x16xf32, #tpu.memory_space<vmem>>, vector<6x8x16xf32>
      %c0_34 = arith.constant 0 : index
      %c0_35 = arith.constant 0 : index
      %c0_36 = arith.constant 0 : index
      %34 = vector.load %arg2[%c0_34, %c0_35, %c0_36] : memref<6x1x16xf32, #tpu.memory_space<vmem>>, vector<6x1x16xf32>
      %c0_37 = arith.constant 0 : index
      %c0_38 = arith.constant 0 : index
      %c0_39 = arith.constant 0 : index
      %35 = vector.load %arg3[%c0_37, %c0_38, %c0_39] : memref<6x1x16xf32, #tpu.memory_space<vmem>>, vector<6x1x16xf32>
      %c0_40 = arith.constant 0 : index
      %c0_41 = arith.constant 0 : index
      %c0_42 = arith.constant 0 : index
      %36 = vector.load %arg4[%c0_40, %c0_41, %c0_42] : memref<6x1x16xf32, #tpu.memory_space<vmem>>, vector<6x1x16xf32>
      %c0_43 = arith.constant 0 : index
      %c0_44 = arith.constant 0 : index
      %c0_45 = arith.constant 0 : index
      %37 = vector.load %arg5[%c0_43, %c0_44, %c0_45] : memref<6x8x1xf32, #tpu.memory_space<vmem>>, vector<6x8x1xf32>
      %c0_46 = arith.constant 0 : index
      %c0_47 = arith.constant 0 : index
      %c0_48 = arith.constant 0 : index
      %38 = vector.load %arg6[%c0_46, %c0_47, %c0_48] : memref<6x8x1xf32, #tpu.memory_space<vmem>>, vector<6x8x1xf32>
      %cst_49 = arith.constant dense<0x7F800000> : vector<6x16xf32>
      %39 = vector.multi_reduction <minimumf>, %33, %cst_49 [1] : vector<6x8x16xf32> to vector<6x16xf32>
      %40 = vector.shape_cast %39 : vector<6x16xf32> to vector<6x1x16xf32>
      %41 = vector.broadcast %40 : vector<6x1x16xf32> to vector<6x8x16xf32>
      %42 = arith.subf %33, %41 : vector<6x8x16xf32>
      %43 = vector.broadcast %34 : vector<6x1x16xf32> to vector<6x8x16xf32>
      %44 = arith.mulf %43, %42 : vector<6x8x16xf32>
      %45 = vector.broadcast %40 : vector<6x1x16xf32> to vector<6x8x16xf32>
      %46 = arith.addf %44, %45 : vector<6x8x16xf32>
      %cst_50 = arith.constant dense<0xFF800000> : vector<6x8xf32>
      %47 = vector.multi_reduction <maximumf>, %46, %cst_50 [2] : vector<6x8x16xf32> to vector<6x8xf32>
      %48 = vector.shape_cast %47 : vector<6x8xf32> to vector<6x8x1xf32>
      %49 = vector.broadcast %48 : vector<6x8x1xf32> to vector<6x8x16xf32>
      %50 = arith.subf %46, %49 : vector<6x8x16xf32>
      %51 = math.exp %50 : vector<6x8x16xf32>
      %cst_51 = arith.constant dense<0.000000e+00> : vector<6x8xf32>
      %52 = vector.multi_reduction <add>, %51, %cst_51 [2] : vector<6x8x16xf32> to vector<6x8xf32>
      %53 = vector.shape_cast %52 : vector<6x8xf32> to vector<6x8x1xf32>
      %c0_52 = arith.constant 0 : index
      %c0_53 = arith.constant 0 : index
      %c0_54 = arith.constant 0 : index
      %54 = vector.load %arg13[%c0_52, %c0_53, %c0_54] : memref<6x8x1xf32, #tpu.memory_space<vmem>>, vector<6x8x1xf32>
      tpu.vector_store %arg13[%c0_52, %c0_53, %c0_54], %48 {strides = array<i32>} : memref<6x8x1xf32, #tpu.memory_space<vmem>>, vector<6x8x1xf32>,
      %cst_55 = arith.constant 1.000000e+00 : f32
      %55 = vector.broadcast %cst_55 : f32 to vector<6x8x1xf32>
      %56 = arith.divf %55, %53 : vector<6x8x1xf32>
      %c0_56 = arith.constant 0 : index
      %c0_57 = arith.constant 0 : index
      %c0_58 = arith.constant 0 : index
      %57 = vector.load %arg14[%c0_56, %c0_57, %c0_58] : memref<6x8x1xf32, #tpu.memory_space<vmem>>, vector<6x8x1xf32>
      tpu.vector_store %arg14[%c0_56, %c0_57, %c0_58], %56 {strides = array<i32>} : memref<6x8x1xf32, #tpu.memory_space<vmem>>, vector<6x8x1xf32>,
      %58 = tpu.concatenate %33, %46 in 0 : vector<6x8x16xf32>, vector<6x8x16xf32> -> vector<12x8x16xf32>
      %cst_59 = arith.constant dense<0x7F800000> : vector<12x8xf32>
      %59 = vector.multi_reduction <minimumf>, %58, %cst_59 [2] : vector<12x8x16xf32> to vector<12x8xf32>
      %60 = vector.shape_cast %59 : vector<12x8xf32> to vector<12x8x1xf32>
      %cst_60 = arith.constant dense<0xFF800000> : vector<12x8xf32>
      %61 = vector.multi_reduction <maximumf>, %58, %cst_60 [2] : vector<12x8x16xf32> to vector<12x8xf32>
      %62 = vector.shape_cast %61 : vector<12x8xf32> to vector<12x8x1xf32>
      %cst_61 = arith.constant 2.000000e+00 : f32
      %c0_i32_62 = arith.constant 0 : i32
      %c30_i32 = arith.constant 30 : i32
      %63 = arith.addi %c0_i32_62, %c30_i32 : i32
      %c1_i32 = arith.constant 1 : i32
      %64:2 = scf.for %arg16 = %c0_i32_62 to %63 step %c1_i32 iter_args(%arg17 = %60, %arg18 = %62) -> (vector<12x8x1xf32>, vector<12x8x1xf32>)  : i32 {
        %185 = arith.addf %arg17, %arg18 : vector<12x8x1xf32>
        %cst_103 = arith.constant 5.000000e-01 : f32
        %186 = vector.broadcast %cst_103 : f32 to vector<12x8x1xf32>
        %187 = arith.mulf %186, %185 : vector<12x8x1xf32>
        %188 = vector.broadcast %187 : vector<12x8x1xf32> to vector<12x8x16xf32>
        %189 = arith.cmpf oge, %58, %188 : vector<12x8x16xf32>
        %190 = arith.extui %189 : vector<12x8x16xi1> to vector<12x8x16xi32>
        %191 = arith.sitofp %190 : vector<12x8x16xi32> to vector<12x8x16xf32>
        %cst_104 = arith.constant dense<0.000000e+00> : vector<12x8xf32>
        %192 = vector.multi_reduction <add>, %191, %cst_104 [2] : vector<12x8x16xf32> to vector<12x8xf32>
        %193 = vector.shape_cast %192 : vector<12x8xf32> to vector<12x8x1xf32>
        %194 = vector.broadcast %cst_61 : f32 to vector<12x8x1xf32>
        %195 = arith.cmpf oge, %193, %194 : vector<12x8x1xf32>
        %196 = arith.select %195, %187, %arg17 : vector<12x8x1xi1>, vector<12x8x1xf32>
        %197 = arith.select %195, %arg18, %187 : vector<12x8x1xi1>, vector<12x8x1xf32>
        scf.yield %196, %197 : vector<12x8x1xf32>, vector<12x8x1xf32>
      }
      %65 = vector.broadcast %64#0 : vector<12x8x1xf32> to vector<12x8x16xf32>
      %66 = arith.cmpf ogt, %58, %65 : vector<12x8x16xf32>
      %67 = arith.extui %66 : vector<12x8x16xi1> to vector<12x8x16xi32>
      %68 = arith.sitofp %67 : vector<12x8x16xi32> to vector<12x8x16xf32>
      %cst_63 = arith.constant dense<0.000000e+00> : vector<12x8xf32>
      %69 = vector.multi_reduction <add>, %68, %cst_63 [2] : vector<12x8x16xf32> to vector<12x8xf32>
      %70 = vector.shape_cast %69 : vector<12x8xf32> to vector<12x8x1xf32>
      %cst_64 = arith.constant 0.000000e+00 : f32
      %71 = vector.broadcast %cst_64 : f32 to vector<12x8x16xf32>
      %72 = arith.select %66, %58, %71 : vector<12x8x16xi1>, vector<12x8x16xf32>
      %cst_65 = arith.constant dense<0.000000e+00> : vector<12x8xf32>
      %73 = vector.multi_reduction <add>, %72, %cst_65 [2] : vector<12x8x16xf32> to vector<12x8xf32>
      %74 = vector.shape_cast %73 : vector<12x8xf32> to vector<12x8x1xf32>
      %cst_66 = arith.constant 2.000000e+00 : f32
      %75 = vector.broadcast %cst_66 : f32 to vector<12x8x1xf32>
      %76 = arith.subf %75, %70 : vector<12x8x1xf32>
      %77 = arith.mulf %76, %64#0 : vector<12x8x1xf32>
      %78 = arith.addf %74, %77 : vector<12x8x1xf32>
      %cst_67 = arith.constant 2.000000e+00 : f32
      %79 = vector.broadcast %cst_67 : f32 to vector<12x8x1xf32>
      %80 = arith.divf %78, %79 : vector<12x8x1xf32>
      %81 = vector.extract_strided_slice %80 {offsets = [0, 0, 0], sizes = [6, 8, 1], strides = [1, 1, 1]} : vector<12x8x1xf32> to vector<6x8x1xf32>
      %82 = vector.extract_strided_slice %80 {offsets = [6, 0, 0], sizes = [6, 8, 1], strides = [1, 1, 1]} : vector<12x8x1xf32> to vector<6x8x1xf32>
      %cst_68 = arith.constant dense<0.000000e+00> : vector<6x1xf32>
      %83 = vector.multi_reduction <add>, %37, %cst_68 [1] : vector<6x8x1xf32> to vector<6x1xf32>
      %84 = vector.shape_cast %83 : vector<6x1xf32> to vector<6x1x1xf32>
      %cst_69 = arith.constant 9.99999974E-5 : f32
      %85 = vector.broadcast %cst_69 : f32 to vector<6x1x1xf32>
      %86 = arith.addf %84, %85 : vector<6x1x1xf32>
      %87 = vector.broadcast %86 : vector<6x1x1xf32> to vector<6x8x1xf32>
      %88 = arith.divf %37, %87 : vector<6x8x1xf32>
      %cst_70 = arith.constant dense<0xFF800000> : vector<6x1xf32>
      %89 = vector.multi_reduction <maximumf>, %81, %cst_70 [1] : vector<6x8x1xf32> to vector<6x1xf32>
      %90 = vector.shape_cast %89 : vector<6x1xf32> to vector<6x1x1xf32>
      %91 = vector.broadcast %90 : vector<6x1x1xf32> to vector<6x8x1xf32>
      %92 = arith.subf %81, %91 : vector<6x8x1xf32>
      %93 = math.exp %92 : vector<6x8x1xf32>
      %cst_71 = arith.constant dense<0.000000e+00> : vector<6x1xf32>
      %94 = vector.multi_reduction <add>, %93, %cst_71 [1] : vector<6x8x1xf32> to vector<6x1xf32>
      %95 = vector.shape_cast %94 : vector<6x1xf32> to vector<6x1x1xf32>
      %96 = math.log %95 : vector<6x1x1xf32>
      %97 = vector.broadcast %96 : vector<6x1x1xf32> to vector<6x8x1xf32>
      %98 = arith.subf %92, %97 : vector<6x8x1xf32>
      %99 = arith.mulf %88, %98 : vector<6x8x1xf32>
      %100 = vector.shape_cast %99 : vector<6x8x1xf32> to vector<1x6x8x1xf32>
      %cst_72 = arith.constant dense<0.000000e+00> : vector<1xf32>
      %101 = vector.multi_reduction <add>, %100, %cst_72 [1, 2, 3] : vector<1x6x8x1xf32> to vector<1xf32>
      %102 = vector.shape_cast %101 : vector<1xf32> to vector<1x1x1x1xf32>
      %103 = vector.extract %102[0, 0, 0, 0] : f32 from vector<1x1x1x1xf32>
      %cst_73 = arith.constant 0.000000e+00 : f32
      %104 = arith.subf %cst_73, %103 : f32
      %cst_74 = arith.constant dense<0.000000e+00> : vector<6x1xf32>
      %105 = vector.multi_reduction <add>, %38, %cst_74 [1] : vector<6x8x1xf32> to vector<6x1xf32>
      %106 = vector.shape_cast %105 : vector<6x1xf32> to vector<6x1x1xf32>
      %cst_75 = arith.constant 9.99999974E-5 : f32
      %107 = vector.broadcast %cst_75 : f32 to vector<6x1x1xf32>
      %108 = arith.addf %106, %107 : vector<6x1x1xf32>
      %109 = vector.broadcast %108 : vector<6x1x1xf32> to vector<6x8x1xf32>
      %110 = arith.divf %38, %109 : vector<6x8x1xf32>
      %cst_76 = arith.constant dense<0xFF800000> : vector<6x1xf32>
      %111 = vector.multi_reduction <maximumf>, %82, %cst_76 [1] : vector<6x8x1xf32> to vector<6x1xf32>
      %112 = vector.shape_cast %111 : vector<6x1xf32> to vector<6x1x1xf32>
      %113 = vector.broadcast %112 : vector<6x1x1xf32> to vector<6x8x1xf32>
      %114 = arith.subf %82, %113 : vector<6x8x1xf32>
      %115 = math.exp %114 : vector<6x8x1xf32>
      %cst_77 = arith.constant dense<0.000000e+00> : vector<6x1xf32>
      %116 = vector.multi_reduction <add>, %115, %cst_77 [1] : vector<6x8x1xf32> to vector<6x1xf32>
      %117 = vector.shape_cast %116 : vector<6x1xf32> to vector<6x1x1xf32>
      %118 = math.log %117 : vector<6x1x1xf32>
      %119 = vector.broadcast %118 : vector<6x1x1xf32> to vector<6x8x1xf32>
      %120 = arith.subf %114, %119 : vector<6x8x1xf32>
      %121 = arith.mulf %110, %120 : vector<6x8x1xf32>
      %122 = vector.shape_cast %121 : vector<6x8x1xf32> to vector<1x6x8x1xf32>
      %cst_78 = arith.constant dense<0.000000e+00> : vector<1xf32>
      %123 = vector.multi_reduction <add>, %122, %cst_78 [1, 2, 3] : vector<1x6x8x1xf32> to vector<1xf32>
      %124 = vector.shape_cast %123 : vector<1xf32> to vector<1x1x1x1xf32>
      %125 = vector.extract %124[0, 0, 0, 0] : f32 from vector<1x1x1x1xf32>
      %cst_79 = arith.constant 0.000000e+00 : f32
      %126 = arith.subf %cst_79, %125 : f32
      %127 = arith.addf %104, %126 : f32
      %cst_80 = arith.constant 6.000000e+00 : f32
      %128 = arith.divf %127, %cst_80 : f32
      %cst_81 = arith.constant dense<0xFF800000> : vector<6x16xf32>
      %129 = vector.multi_reduction <maximumf>, %33, %cst_81 [1] : vector<6x8x16xf32> to vector<6x16xf32>
      %130 = vector.shape_cast %129 : vector<6x16xf32> to vector<6x1x16xf32>
      %131 = vector.broadcast %130 : vector<6x1x16xf32> to vector<6x8x16xf32>
      %132 = arith.subf %33, %131 : vector<6x8x16xf32>
      %133 = math.exp %132 : vector<6x8x16xf32>
      %134 = vector.extract_strided_slice %133 {offsets = [0, 7, 0], sizes = [6, 1, 16], strides = [1, 1, 1]} : vector<6x8x16xf32> to vector<6x1x16xf32>
      %cst_82 = arith.constant dense<0.000000e+00> : vector<6x16xf32>
      %135 = vector.multi_reduction <add>, %133, %cst_82 [1] : vector<6x8x16xf32> to vector<6x16xf32>
      %136 = vector.shape_cast %135 : vector<6x16xf32> to vector<6x1x16xf32>
      %137 = arith.divf %134, %136 : vector<6x1x16xf32>
      %cst_83 = arith.constant 1.000000e+00 : f32
      %138 = vector.broadcast %cst_83 : f32 to vector<6x1x16xf32>
      %139 = arith.subf %138, %137 : vector<6x1x16xf32>
      %140 = vector.shape_cast %34 : vector<6x1x16xf32> to vector<1x6x1x16xf32>
      %cst_84 = arith.constant dense<0.000000e+00> : vector<1xf32>
      %141 = vector.multi_reduction <add>, %140, %cst_84 [1, 2, 3] : vector<1x6x1x16xf32> to vector<1xf32>
      %142 = vector.shape_cast %141 : vector<1xf32> to vector<1x1x1x1xf32>
      %143 = vector.extract %142[0, 0, 0, 0] : f32 from vector<1x1x1x1xf32>
      %144 = vector.shape_cast %35 : vector<6x1x16xf32> to vector<1x6x1x16xf32>
      %cst_85 = arith.constant dense<0.000000e+00> : vector<1xf32>
      %145 = vector.multi_reduction <add>, %144, %cst_85 [1, 2, 3] : vector<1x6x1x16xf32> to vector<1xf32>
      %146 = vector.shape_cast %145 : vector<1xf32> to vector<1x1x1x1xf32>
      %147 = vector.extract %146[0, 0, 0, 0] : f32 from vector<1x1x1x1xf32>
      %148 = arith.addf %143, %147 : f32
      %149 = vector.shape_cast %36 : vector<6x1x16xf32> to vector<1x6x1x16xf32>
      %cst_86 = arith.constant dense<0.000000e+00> : vector<1xf32>
      %150 = vector.multi_reduction <add>, %149, %cst_86 [1, 2, 3] : vector<1x6x1x16xf32> to vector<1xf32>
      %151 = vector.shape_cast %150 : vector<1xf32> to vector<1x1x1x1xf32>
      %152 = vector.extract %151[0, 0, 0, 0] : f32 from vector<1x1x1x1xf32>
      %153 = arith.addf %148, %152 : f32
      %cst_87 = arith.constant 8.000000e-01 : f32
      %154 = arith.mulf %cst_87, %153 : f32
      %cst_88 = arith.constant 2.880000e+02 : f32
      %155 = arith.divf %154, %cst_88 : f32
      %156 = arith.subf %139, %34 : vector<6x1x16xf32>
      %157 = math.absf %156 : vector<6x1x16xf32>
      %158 = vector.shape_cast %157 : vector<6x1x16xf32> to vector<1x6x1x16xf32>
      %cst_89 = arith.constant dense<0.000000e+00> : vector<1xf32>
      %159 = vector.multi_reduction <add>, %158, %cst_89 [1, 2, 3] : vector<1x6x1x16xf32> to vector<1xf32>
      %160 = vector.shape_cast %159 : vector<1xf32> to vector<1x1x1x1xf32>
      %161 = vector.extract %160[0, 0, 0, 0] : f32 from vector<1x1x1x1xf32>
      %162 = arith.subf %139, %35 : vector<6x1x16xf32>
      %163 = math.absf %162 : vector<6x1x16xf32>
      %164 = vector.shape_cast %163 : vector<6x1x16xf32> to vector<1x6x1x16xf32>
      %cst_90 = arith.constant dense<0.000000e+00> : vector<1xf32>
      %165 = vector.multi_reduction <add>, %164, %cst_90 [1, 2, 3] : vector<1x6x1x16xf32> to vector<1xf32>
      %166 = vector.shape_cast %165 : vector<1xf32> to vector<1x1x1x1xf32>
      %167 = vector.extract %166[0, 0, 0, 0] : f32 from vector<1x1x1x1xf32>
      %168 = arith.addf %161, %167 : f32
      %169 = arith.subf %139, %36 : vector<6x1x16xf32>
      %170 = math.absf %169 : vector<6x1x16xf32>
      %171 = vector.shape_cast %170 : vector<6x1x16xf32> to vector<1x6x1x16xf32>
      %cst_91 = arith.constant dense<0.000000e+00> : vector<1xf32>
      %172 = vector.multi_reduction <add>, %171, %cst_91 [1, 2, 3] : vector<1x6x1x16xf32> to vector<1xf32>
      %173 = vector.shape_cast %172 : vector<1xf32> to vector<1x1x1x1xf32>
      %174 = vector.extract %173[0, 0, 0, 0] : f32 from vector<1x1x1x1xf32>
      %175 = arith.addf %168, %174 : f32
      %cst_92 = arith.constant 8.000000e-01 : f32
      %176 = arith.mulf %cst_92, %175 : f32
      %cst_93 = arith.constant 2.880000e+02 : f32
      %177 = arith.divf %176, %cst_93 : f32
      %c0_94 = arith.constant 0 : index
      %178 = memref.load %arg15[%c0_94] : memref<4xf32, #tpu.memory_space<smem>>
      memref.store %128, %arg15[%c0_94] : memref<4xf32, #tpu.memory_space<smem>>
      %c1 = arith.constant 1 : index
      %179 = memref.load %arg15[%c1] : memref<4xf32, #tpu.memory_space<smem>>
      memref.store %155, %arg15[%c1] : memref<4xf32, #tpu.memory_space<smem>>
      %c2 = arith.constant 2 : index
      %180 = memref.load %arg15[%c2] : memref<4xf32, #tpu.memory_space<smem>>
      memref.store %177, %arg15[%c2] : memref<4xf32, #tpu.memory_space<smem>>
      %cst_95 = arith.constant 0.000000e+00 : f32
      %181 = vector.broadcast %cst_95 : f32 to vector<6x8x32xf32>
      %c0_96 = arith.constant 0 : index
      %c0_97 = arith.constant 0 : index
      %c0_98 = arith.constant 0 : index
      %182 = vector.load %arg11[%c0_96, %c0_97, %c0_98] : memref<6x8x32xf32, #tpu.memory_space<vmem>>, vector<6x8x32xf32>
      tpu.vector_store %arg11[%c0_96, %c0_97, %c0_98], %181 {strides = array<i32>} : memref<6x8x32xf32, #tpu.memory_space<vmem>>, vector<6x8x32xf32>,
      %cst_99 = arith.constant 0.000000e+00 : f32
      %183 = vector.broadcast %cst_99 : f32 to vector<6x1x32xf32>
      %c0_100 = arith.constant 0 : index
      %c0_101 = arith.constant 0 : index
      %c0_102 = arith.constant 0 : index
      %184 = vector.load %arg12[%c0_100, %c0_101, %c0_102] : memref<6x1x32xf32, #tpu.memory_space<vmem>>, vector<6x1x32xf32>
      tpu.vector_store %arg12[%c0_100, %c0_101, %c0_102], %183 {strides = array<i32>} : memref<6x1x32xf32, #tpu.memory_space<vmem>>, vector<6x1x32xf32>,
    } else {
    }
    %c0 = arith.constant 0 : index
    %c0_1 = arith.constant 0 : index
    %c0_2 = arith.constant 0 : index
    %3 = vector.load %arg7[%c0, %c0_1, %c0_2] : memref<6x8x16xf32, #tpu.memory_space<vmem>>, vector<6x8x16xf32>
    %c0_3 = arith.constant 0 : index
    %c0_4 = arith.constant 0 : index
    %c0_5 = arith.constant 0 : index
    %4 = vector.load %arg8[%c0_3, %c0_4, %c0_5] : memref<6x1x16xf32, #tpu.memory_space<vmem>>, vector<6x1x16xf32>
    %cst = arith.constant dense<0x7F800000> : vector<6x16xf32>
    %5 = vector.multi_reduction <minimumf>, %3, %cst [1] : vector<6x8x16xf32> to vector<6x16xf32>
    %6 = vector.shape_cast %5 : vector<6x16xf32> to vector<6x1x16xf32>
    %7 = vector.broadcast %6 : vector<6x1x16xf32> to vector<6x8x16xf32>
    %8 = arith.subf %3, %7 : vector<6x8x16xf32>
    %9 = vector.broadcast %4 : vector<6x1x16xf32> to vector<6x8x16xf32>
    %10 = arith.mulf %9, %8 : vector<6x8x16xf32>
    %11 = vector.broadcast %6 : vector<6x1x16xf32> to vector<6x8x16xf32>
    %12 = arith.addf %10, %11 : vector<6x8x16xf32>
    %c0_6 = arith.constant 0 : index
    %c0_7 = arith.constant 0 : index
    %c0_8 = arith.constant 0 : index
    %13 = vector.load %arg13[%c0_6, %c0_7, %c0_8] : memref<6x8x1xf32, #tpu.memory_space<vmem>>, vector<6x8x1xf32>
    %14 = vector.broadcast %13 : vector<6x8x1xf32> to vector<6x8x16xf32>
    %15 = arith.subf %12, %14 : vector<6x8x16xf32>
    %16 = math.exp %15 : vector<6x8x16xf32>
    %c0_9 = arith.constant 0 : index
    %c0_10 = arith.constant 0 : index
    %c0_11 = arith.constant 0 : index
    %17 = vector.load %arg14[%c0_9, %c0_10, %c0_11] : memref<6x8x1xf32, #tpu.memory_space<vmem>>, vector<6x8x1xf32>
    %18 = vector.broadcast %17 : vector<6x8x1xf32> to vector<6x8x16xf32>
    %19 = arith.mulf %16, %18 : vector<6x8x16xf32>
    %c0_12 = arith.constant 0 : index
    %c0_13 = arith.constant 0 : index
    %c0_14 = arith.constant 0 : index
    %20 = vector.load %arg9[%c0_12, %c0_13, %c0_14] : memref<6x16x32xf32, #tpu.memory_space<vmem>>, vector<6x16x32xf32>
    %c0_15 = arith.constant 0 : index
    %c0_16 = arith.constant 0 : index
    %c0_17 = arith.constant 0 : index
    %21 = vector.load %arg11[%c0_15, %c0_16, %c0_17] : memref<6x8x32xf32, #tpu.memory_space<vmem>>, vector<6x8x32xf32>
    "tpu.trace_start"() <{level = 10 : i32, message = "vct,vtf->vcf"}> : () -> ()
    %cst_18 = arith.constant dense<0.000000e+00> : vector<6x8x32xf32>
    %22 = tpu.matmul %19, %20, %cst_18 {dimension_numbers = #tpu.dot_dimension_numbers<[2], [1], [1], [2], [0, 0, 0, 1, 1, 2], [0], [0]>} : vector<6x8x16xf32>, vector<6x16x32xf32>, vector<6x8x32xf32> -> vector<6x8x32xf32>
    "tpu.trace_stop"() : () -> ()
    %23 = arith.addf %21, %22 : vector<6x8x32xf32>
    %c0_19 = arith.constant 0 : index
    %c0_20 = arith.constant 0 : index
    %c0_21 = arith.constant 0 : index
    %24 = vector.load %arg11[%c0_19, %c0_20, %c0_21] : memref<6x8x32xf32, #tpu.memory_space<vmem>>, vector<6x8x32xf32>
    tpu.vector_store %arg11[%c0_19, %c0_20, %c0_21], %23 {strides = array<i32>} : memref<6x8x32xf32, #tpu.memory_space<vmem>>, vector<6x8x32xf32>,
    %c0_22 = arith.constant 0 : index
    %c0_23 = arith.constant 0 : index
    %c0_24 = arith.constant 0 : index
    %25 = vector.load %arg12[%c0_22, %c0_23, %c0_24] : memref<6x1x32xf32, #tpu.memory_space<vmem>>, vector<6x1x32xf32>
    %cst_25 = arith.constant dense<0.000000e+00> : vector<6x32xf32>
    %26 = vector.multi_reduction <add>, %20, %cst_25 [1] : vector<6x16x32xf32> to vector<6x32xf32>
    %27 = vector.shape_cast %26 : vector<6x32xf32> to vector<6x1x32xf32>
    %28 = arith.addf %25, %27 : vector<6x1x32xf32>
    %c0_26 = arith.constant 0 : index
    %c0_27 = arith.constant 0 : index
    %c0_28 = arith.constant 0 : index
    %29 = vector.load %arg12[%c0_26, %c0_27, %c0_28] : memref<6x1x32xf32, #tpu.memory_space<vmem>>, vector<6x1x32xf32>
    tpu.vector_store %arg12[%c0_26, %c0_27, %c0_28], %28 {strides = array<i32>} : memref<6x1x32xf32, #tpu.memory_space<vmem>>, vector<6x1x32xf32>,
    %c0_i32_29 = arith.constant 0 : i32
    %30 = arith.cmpi eq, %arg0, %c0_i32_29 : i32
    %31 = arith.extui %30 : i1 to i32
    %c0_i32_30 = arith.constant 0 : i32
    %32 = arith.cmpi ne, %31, %c0_i32_30 : i32
    scf.if %32 {
      %c0_31 = arith.constant 0 : index
      %c0_32 = arith.constant 0 : index
      %c0_33 = arith.constant 0 : index
      %33 = vector.load %arg11[%c0_31, %c0_32, %c0_33] : memref<6x8x32xf32, #tpu.memory_space<vmem>>, vector<1x8x32xf32>
      %34 = vector.shape_cast %33 : vector<1x8x32xf32> to vector<8x32xf32>
      %c1 = arith.constant 1 : index
      %c0_34 = arith.constant 0 : index
      %c0_35 = arith.constant 0 : index
      %35 = vector.load %arg11[%c1, %c0_34, %c0_35] : memref<6x8x32xf32, #tpu.memory_space<vmem>>, vector<1x8x32xf32>
      %36 = vector.shape_cast %35 : vector<1x8x32xf32> to vector<8x32xf32>
      %c0_36 = arith.constant 0 : index
      %c0_37 = arith.constant 0 : index
      %c0_38 = arith.constant 0 : index
      %37 = vector.load %arg12[%c0_36, %c0_37, %c0_38] : memref<6x1x32xf32, #tpu.memory_space<vmem>>, vector<1x1x32xf32>
      %38 = vector.shape_cast %37 : vector<1x1x32xf32> to vector<1x32xf32>
      %39 = vector.broadcast %38 : vector<1x32xf32> to vector<8x32xf32>
      %40 = arith.subf %39, %34 : vector<8x32xf32>
      %cst_39 = arith.constant 0.0666666701 : f32
      %41 = vector.broadcast %cst_39 : f32 to vector<8x32xf32>
      %42 = arith.mulf %40, %41 : vector<8x32xf32>
      %c1_40 = arith.constant 1 : index
      %c0_41 = arith.constant 0 : index
      %c0_42 = arith.constant 0 : index
      %43 = vector.load %arg12[%c1_40, %c0_41, %c0_42] : memref<6x1x32xf32, #tpu.memory_space<vmem>>, vector<1x1x32xf32>
      %44 = vector.shape_cast %43 : vector<1x1x32xf32> to vector<1x32xf32>
      %45 = vector.broadcast %44 : vector<1x32xf32> to vector<8x32xf32>
      %46 = arith.subf %45, %36 : vector<8x32xf32>
      %cst_43 = arith.constant 0.0666666701 : f32
      %47 = vector.broadcast %cst_43 : f32 to vector<8x32xf32>
      %48 = arith.mulf %46, %47 : vector<8x32xf32>
      %49 = arith.mulf %34, %34 : vector<8x32xf32>
      %cst_44 = arith.constant dense<0.000000e+00> : vector<8xf32>
      %50 = vector.multi_reduction <add>, %49, %cst_44 [1] : vector<8x32xf32> to vector<8xf32>
      %51 = vector.shape_cast %50 : vector<8xf32> to vector<8x1xf32>
      %52 = math.sqrt %51 : vector<8x1xf32>
      %53 = arith.mulf %36, %36 : vector<8x32xf32>
      %cst_45 = arith.constant dense<0.000000e+00> : vector<8xf32>
      %54 = vector.multi_reduction <add>, %53, %cst_45 [1] : vector<8x32xf32> to vector<8xf32>
      %55 = vector.shape_cast %54 : vector<8xf32> to vector<8x1xf32>
      %56 = math.sqrt %55 : vector<8x1xf32>
      %57 = arith.mulf %42, %42 : vector<8x32xf32>
      %cst_46 = arith.constant dense<0.000000e+00> : vector<8xf32>
      %58 = vector.multi_reduction <add>, %57, %cst_46 [1] : vector<8x32xf32> to vector<8xf32>
      %59 = vector.shape_cast %58 : vector<8xf32> to vector<8x1xf32>
      %60 = math.sqrt %59 : vector<8x1xf32>
      %61 = arith.mulf %48, %48 : vector<8x32xf32>
      %cst_47 = arith.constant dense<0.000000e+00> : vector<8xf32>
      %62 = vector.multi_reduction <add>, %61, %cst_47 [1] : vector<8x32xf32> to vector<8xf32>
      %63 = vector.shape_cast %62 : vector<8xf32> to vector<8x1xf32>
      %64 = math.sqrt %63 : vector<8x1xf32>
      %65 = arith.mulf %34, %36 : vector<8x32xf32>
      %cst_48 = arith.constant dense<0.000000e+00> : vector<8xf32>
      %66 = vector.multi_reduction <add>, %65, %cst_48 [1] : vector<8x32xf32> to vector<8xf32>
      %67 = vector.shape_cast %66 : vector<8xf32> to vector<8x1xf32>
      %68 = arith.mulf %52, %56 : vector<8x1xf32>
      %69 = arith.divf %67, %68 : vector<8x1xf32>
      %cst_49 = arith.constant 1.000000e+00 : f32
      %70 = vector.broadcast %cst_49 : f32 to vector<8x1xf32>
      %71 = arith.subf %70, %69 : vector<8x1xf32>
      %72 = arith.mulf %34, %48 : vector<8x32xf32>
      %cst_50 = arith.constant dense<0.000000e+00> : vector<8xf32>
      %73 = vector.multi_reduction <add>, %72, %cst_50 [1] : vector<8x32xf32> to vector<8xf32>
      %74 = vector.shape_cast %73 : vector<8xf32> to vector<8x1xf32>
      %75 = arith.mulf %52, %64 : vector<8x1xf32>
      %76 = arith.divf %74, %75 : vector<8x1xf32>
      %cst_51 = arith.constant 1.000000e+00 : f32
      %77 = vector.broadcast %cst_51 : f32 to vector<8x1xf32>
      %78 = arith.subf %77, %76 : vector<8x1xf32>
      %79 = arith.mulf %36, %42 : vector<8x32xf32>
      %cst_52 = arith.constant dense<0.000000e+00> : vector<8xf32>
      %80 = vector.multi_reduction <add>, %79, %cst_52 [1] : vector<8x32xf32> to vector<8xf32>
      %81 = vector.shape_cast %80 : vector<8xf32> to vector<8x1xf32>
      %82 = arith.mulf %56, %60 : vector<8x1xf32>
      %83 = arith.divf %81, %82 : vector<8x1xf32>
      %cst_53 = arith.constant 1.000000e+00 : f32
      %84 = vector.broadcast %cst_53 : f32 to vector<8x1xf32>
      %85 = arith.subf %84, %83 : vector<8x1xf32>
      %c0_54 = arith.constant 0 : index
      %c0_55 = arith.constant 0 : index
      %c0_56 = arith.constant 0 : index
      %86 = vector.load %arg6[%c0_54, %c0_55, %c0_56] : memref<6x8x1xf32, #tpu.memory_space<vmem>>, vector<1x8x1xf32>
      %87 = vector.shape_cast %86 : vector<1x8x1xf32> to vector<8x1xf32>
      %c1_57 = arith.constant 1 : index
      %c0_58 = arith.constant 0 : index
      %c0_59 = arith.constant 0 : index
      %88 = vector.load %arg6[%c1_57, %c0_58, %c0_59] : memref<6x8x1xf32, #tpu.memory_space<vmem>>, vector<1x8x1xf32>
      %89 = vector.shape_cast %88 : vector<1x8x1xf32> to vector<8x1xf32>
      %90 = arith.mulf %87, %89 : vector<8x1xf32>
      %91 = arith.subf %71, %78 : vector<8x1xf32>
      %cst_60 = arith.constant 5.000000e-01 : f32
      %92 = vector.broadcast %cst_60 : f32 to vector<8x1xf32>
      %93 = arith.addf %91, %92 : vector<8x1xf32>
      %cst_61 = arith.constant 0.000000e+00 : f32
      %94 = vector.broadcast %cst_61 : f32 to vector<8x1xf32>
      %95 = arith.maximumf %93, %94 : vector<8x1xf32>
      %96 = arith.mulf %95, %90 : vector<8x1xf32>
      %97 = vector.shape_cast %96 : vector<8x1xf32> to vector<1x8x1xf32>
      %cst_62 = arith.constant dense<0.000000e+00> : vector<1xf32>
      %98 = vector.multi_reduction <add>, %97, %cst_62 [1, 2] : vector<1x8x1xf32> to vector<1xf32>
      %99 = vector.shape_cast %98 : vector<1xf32> to vector<1x1x1xf32>
      %100 = vector.extract %99[0, 0, 0] : f32 from vector<1x1x1xf32>
      %cst_63 = arith.constant 5.000000e-01 : f32
      %101 = arith.mulf %cst_63, %100 : f32
      %cst_64 = arith.constant 0.000000e+00 : f32
      %102 = arith.addf %cst_64, %101 : f32
      %103 = arith.subf %71, %85 : vector<8x1xf32>
      %cst_65 = arith.constant 5.000000e-01 : f32
      %104 = vector.broadcast %cst_65 : f32 to vector<8x1xf32>
      %105 = arith.addf %103, %104 : vector<8x1xf32>
      %cst_66 = arith.constant 0.000000e+00 : f32
      %106 = vector.broadcast %cst_66 : f32 to vector<8x1xf32>
      %107 = arith.maximumf %105, %106 : vector<8x1xf32>
      %108 = arith.mulf %107, %90 : vector<8x1xf32>
      %109 = vector.shape_cast %108 : vector<8x1xf32> to vector<1x8x1xf32>
      %cst_67 = arith.constant dense<0.000000e+00> : vector<1xf32>
      %110 = vector.multi_reduction <add>, %109, %cst_67 [1, 2] : vector<1x8x1xf32> to vector<1xf32>
      %111 = vector.shape_cast %110 : vector<1xf32> to vector<1x1x1xf32>
      %112 = vector.extract %111[0, 0, 0] : f32 from vector<1x1x1xf32>
      %cst_68 = arith.constant 5.000000e-01 : f32
      %113 = arith.mulf %cst_68, %112 : f32
      %114 = arith.addf %102, %113 : f32
      %115 = vector.shape_cast %90 : vector<8x1xf32> to vector<1x8x1xf32>
      %cst_69 = arith.constant dense<0.000000e+00> : vector<1xf32>
      %116 = vector.multi_reduction <add>, %115, %cst_69 [1, 2] : vector<1x8x1xf32> to vector<1xf32>
      %117 = vector.shape_cast %116 : vector<1xf32> to vector<1x1x1xf32>
      %118 = vector.extract %117[0, 0, 0] : f32 from vector<1x1x1xf32>
      %cst_70 = arith.constant 0.000000e+00 : f32
      %119 = arith.addf %cst_70, %118 : f32
      %c2 = arith.constant 2 : index
      %c0_71 = arith.constant 0 : index
      %c0_72 = arith.constant 0 : index
      %120 = vector.load %arg11[%c2, %c0_71, %c0_72] : memref<6x8x32xf32, #tpu.memory_space<vmem>>, vector<1x8x32xf32>
      %121 = vector.shape_cast %120 : vector<1x8x32xf32> to vector<8x32xf32>
      %c3 = arith.constant 3 : index
      %c0_73 = arith.constant 0 : index
      %c0_74 = arith.constant 0 : index
      %122 = vector.load %arg11[%c3, %c0_73, %c0_74] : memref<6x8x32xf32, #tpu.memory_space<vmem>>, vector<1x8x32xf32>
      %123 = vector.shape_cast %122 : vector<1x8x32xf32> to vector<8x32xf32>
      %c2_75 = arith.constant 2 : index
      %c0_76 = arith.constant 0 : index
      %c0_77 = arith.constant 0 : index
      %124 = vector.load %arg12[%c2_75, %c0_76, %c0_77] : memref<6x1x32xf32, #tpu.memory_space<vmem>>, vector<1x1x32xf32>
      %125 = vector.shape_cast %124 : vector<1x1x32xf32> to vector<1x32xf32>
      %126 = vector.broadcast %125 : vector<1x32xf32> to vector<8x32xf32>
      %127 = arith.subf %126, %121 : vector<8x32xf32>
      %cst_78 = arith.constant 0.0666666701 : f32
      %128 = vector.broadcast %cst_78 : f32 to vector<8x32xf32>
      %129 = arith.mulf %127, %128 : vector<8x32xf32>
      %c3_79 = arith.constant 3 : index
      %c0_80 = arith.constant 0 : index
      %c0_81 = arith.constant 0 : index
      %130 = vector.load %arg12[%c3_79, %c0_80, %c0_81] : memref<6x1x32xf32, #tpu.memory_space<vmem>>, vector<1x1x32xf32>
      %131 = vector.shape_cast %130 : vector<1x1x32xf32> to vector<1x32xf32>
      %132 = vector.broadcast %131 : vector<1x32xf32> to vector<8x32xf32>
      %133 = arith.subf %132, %123 : vector<8x32xf32>
      %cst_82 = arith.constant 0.0666666701 : f32
      %134 = vector.broadcast %cst_82 : f32 to vector<8x32xf32>
      %135 = arith.mulf %133, %134 : vector<8x32xf32>
      %136 = arith.mulf %121, %121 : vector<8x32xf32>
      %cst_83 = arith.constant dense<0.000000e+00> : vector<8xf32>
      %137 = vector.multi_reduction <add>, %136, %cst_83 [1] : vector<8x32xf32> to vector<8xf32>
      %138 = vector.shape_cast %137 : vector<8xf32> to vector<8x1xf32>
      %139 = math.sqrt %138 : vector<8x1xf32>
      %140 = arith.mulf %123, %123 : vector<8x32xf32>
      %cst_84 = arith.constant dense<0.000000e+00> : vector<8xf32>
      %141 = vector.multi_reduction <add>, %140, %cst_84 [1] : vector<8x32xf32> to vector<8xf32>
      %142 = vector.shape_cast %141 : vector<8xf32> to vector<8x1xf32>
      %143 = math.sqrt %142 : vector<8x1xf32>
      %144 = arith.mulf %129, %129 : vector<8x32xf32>
      %cst_85 = arith.constant dense<0.000000e+00> : vector<8xf32>
      %145 = vector.multi_reduction <add>, %144, %cst_85 [1] : vector<8x32xf32> to vector<8xf32>
      %146 = vector.shape_cast %145 : vector<8xf32> to vector<8x1xf32>
      %147 = math.sqrt %146 : vector<8x1xf32>
      %148 = arith.mulf %135, %135 : vector<8x32xf32>
      %cst_86 = arith.constant dense<0.000000e+00> : vector<8xf32>
      %149 = vector.multi_reduction <add>, %148, %cst_86 [1] : vector<8x32xf32> to vector<8xf32>
      %150 = vector.shape_cast %149 : vector<8xf32> to vector<8x1xf32>
      %151 = math.sqrt %150 : vector<8x1xf32>
      %152 = arith.mulf %121, %123 : vector<8x32xf32>
      %cst_87 = arith.constant dense<0.000000e+00> : vector<8xf32>
      %153 = vector.multi_reduction <add>, %152, %cst_87 [1] : vector<8x32xf32> to vector<8xf32>
      %154 = vector.shape_cast %153 : vector<8xf32> to vector<8x1xf32>
      %155 = arith.mulf %139, %143 : vector<8x1xf32>
      %156 = arith.divf %154, %155 : vector<8x1xf32>
      %cst_88 = arith.constant 1.000000e+00 : f32
      %157 = vector.broadcast %cst_88 : f32 to vector<8x1xf32>
      %158 = arith.subf %157, %156 : vector<8x1xf32>
      %159 = arith.mulf %121, %135 : vector<8x32xf32>
      %cst_89 = arith.constant dense<0.000000e+00> : vector<8xf32>
      %160 = vector.multi_reduction <add>, %159, %cst_89 [1] : vector<8x32xf32> to vector<8xf32>
      %161 = vector.shape_cast %160 : vector<8xf32> to vector<8x1xf32>
      %162 = arith.mulf %139, %151 : vector<8x1xf32>
      %163 = arith.divf %161, %162 : vector<8x1xf32>
      %cst_90 = arith.constant 1.000000e+00 : f32
      %164 = vector.broadcast %cst_90 : f32 to vector<8x1xf32>
      %165 = arith.subf %164, %163 : vector<8x1xf32>
      %166 = arith.mulf %123, %129 : vector<8x32xf32>
      %cst_91 = arith.constant dense<0.000000e+00> : vector<8xf32>
      %167 = vector.multi_reduction <add>, %166, %cst_91 [1] : vector<8x32xf32> to vector<8xf32>
      %168 = vector.shape_cast %167 : vector<8xf32> to vector<8x1xf32>
      %169 = arith.mulf %143, %147 : vector<8x1xf32>
      %170 = arith.divf %168, %169 : vector<8x1xf32>
      %cst_92 = arith.constant 1.000000e+00 : f32
      %171 = vector.broadcast %cst_92 : f32 to vector<8x1xf32>
      %172 = arith.subf %171, %170 : vector<8x1xf32>
      %c2_93 = arith.constant 2 : index
      %c0_94 = arith.constant 0 : index
      %c0_95 = arith.constant 0 : index
      %173 = vector.load %arg6[%c2_93, %c0_94, %c0_95] : memref<6x8x1xf32, #tpu.memory_space<vmem>>, vector<1x8x1xf32>
      %174 = vector.shape_cast %173 : vector<1x8x1xf32> to vector<8x1xf32>
      %c3_96 = arith.constant 3 : index
      %c0_97 = arith.constant 0 : index
      %c0_98 = arith.constant 0 : index
      %175 = vector.load %arg6[%c3_96, %c0_97, %c0_98] : memref<6x8x1xf32, #tpu.memory_space<vmem>>, vector<1x8x1xf32>
      %176 = vector.shape_cast %175 : vector<1x8x1xf32> to vector<8x1xf32>
      %177 = arith.mulf %174, %176 : vector<8x1xf32>
      %178 = arith.subf %158, %165 : vector<8x1xf32>
      %cst_99 = arith.constant 5.000000e-01 : f32
      %179 = vector.broadcast %cst_99 : f32 to vector<8x1xf32>
      %180 = arith.addf %178, %179 : vector<8x1xf32>
      %cst_100 = arith.constant 0.000000e+00 : f32
      %181 = vector.broadcast %cst_100 : f32 to vector<8x1xf32>
      %182 = arith.maximumf %180, %181 : vector<8x1xf32>
      %183 = arith.mulf %182, %177 : vector<8x1xf32>
      %184 = vector.shape_cast %183 : vector<8x1xf32> to vector<1x8x1xf32>
      %cst_101 = arith.constant dense<0.000000e+00> : vector<1xf32>
      %185 = vector.multi_reduction <add>, %184, %cst_101 [1, 2] : vector<1x8x1xf32> to vector<1xf32>
      %186 = vector.shape_cast %185 : vector<1xf32> to vector<1x1x1xf32>
      %187 = vector.extract %186[0, 0, 0] : f32 from vector<1x1x1xf32>
      %cst_102 = arith.constant 5.000000e-01 : f32
      %188 = arith.mulf %cst_102, %187 : f32
      %189 = arith.addf %114, %188 : f32
      %190 = arith.subf %158, %172 : vector<8x1xf32>
      %cst_103 = arith.constant 5.000000e-01 : f32
      %191 = vector.broadcast %cst_103 : f32 to vector<8x1xf32>
      %192 = arith.addf %190, %191 : vector<8x1xf32>
      %cst_104 = arith.constant 0.000000e+00 : f32
      %193 = vector.broadcast %cst_104 : f32 to vector<8x1xf32>
      %194 = arith.maximumf %192, %193 : vector<8x1xf32>
      %195 = arith.mulf %194, %177 : vector<8x1xf32>
      %196 = vector.shape_cast %195 : vector<8x1xf32> to vector<1x8x1xf32>
      %cst_105 = arith.constant dense<0.000000e+00> : vector<1xf32>
      %197 = vector.multi_reduction <add>, %196, %cst_105 [1, 2] : vector<1x8x1xf32> to vector<1xf32>
      %198 = vector.shape_cast %197 : vector<1xf32> to vector<1x1x1xf32>
      %199 = vector.extract %198[0, 0, 0] : f32 from vector<1x1x1xf32>
      %cst_106 = arith.constant 5.000000e-01 : f32
      %200 = arith.mulf %cst_106, %199 : f32
      %201 = arith.addf %189, %200 : f32
      %202 = vector.shape_cast %177 : vector<8x1xf32> to vector<1x8x1xf32>
      %cst_107 = arith.constant dense<0.000000e+00> : vector<1xf32>
      %203 = vector.multi_reduction <add>, %202, %cst_107 [1, 2] : vector<1x8x1xf32> to vector<1xf32>
      %204 = vector.shape_cast %203 : vector<1xf32> to vector<1x1x1xf32>
      %205 = vector.extract %204[0, 0, 0] : f32 from vector<1x1x1xf32>
      %206 = arith.addf %119, %205 : f32
      %c4 = arith.constant 4 : index
      %c0_108 = arith.constant 0 : index
      %c0_109 = arith.constant 0 : index
      %207 = vector.load %arg11[%c4, %c0_108, %c0_109] : memref<6x8x32xf32, #tpu.memory_space<vmem>>, vector<1x8x32xf32>
      %208 = vector.shape_cast %207 : vector<1x8x32xf32> to vector<8x32xf32>
      %c5 = arith.constant 5 : index
      %c0_110 = arith.constant 0 : index
      %c0_111 = arith.constant 0 : index
      %209 = vector.load %arg11[%c5, %c0_110, %c0_111] : memref<6x8x32xf32, #tpu.memory_space<vmem>>, vector<1x8x32xf32>
      %210 = vector.shape_cast %209 : vector<1x8x32xf32> to vector<8x32xf32>
      %c4_112 = arith.constant 4 : index
      %c0_113 = arith.constant 0 : index
      %c0_114 = arith.constant 0 : index
      %211 = vector.load %arg12[%c4_112, %c0_113, %c0_114] : memref<6x1x32xf32, #tpu.memory_space<vmem>>, vector<1x1x32xf32>
      %212 = vector.shape_cast %211 : vector<1x1x32xf32> to vector<1x32xf32>
      %213 = vector.broadcast %212 : vector<1x32xf32> to vector<8x32xf32>
      %214 = arith.subf %213, %208 : vector<8x32xf32>
      %cst_115 = arith.constant 0.0666666701 : f32
      %215 = vector.broadcast %cst_115 : f32 to vector<8x32xf32>
      %216 = arith.mulf %214, %215 : vector<8x32xf32>
      %c5_116 = arith.constant 5 : index
      %c0_117 = arith.constant 0 : index
      %c0_118 = arith.constant 0 : index
      %217 = vector.load %arg12[%c5_116, %c0_117, %c0_118] : memref<6x1x32xf32, #tpu.memory_space<vmem>>, vector<1x1x32xf32>
      %218 = vector.shape_cast %217 : vector<1x1x32xf32> to vector<1x32xf32>
      %219 = vector.broadcast %218 : vector<1x32xf32> to vector<8x32xf32>
      %220 = arith.subf %219, %210 : vector<8x32xf32>
      %cst_119 = arith.constant 0.0666666701 : f32
      %221 = vector.broadcast %cst_119 : f32 to vector<8x32xf32>
      %222 = arith.mulf %220, %221 : vector<8x32xf32>
      %223 = arith.mulf %208, %208 : vector<8x32xf32>
      %cst_120 = arith.constant dense<0.000000e+00> : vector<8xf32>
      %224 = vector.multi_reduction <add>, %223, %cst_120 [1] : vector<8x32xf32> to vector<8xf32>
      %225 = vector.shape_cast %224 : vector<8xf32> to vector<8x1xf32>
      %226 = math.sqrt %225 : vector<8x1xf32>
      %227 = arith.mulf %210, %210 : vector<8x32xf32>
      %cst_121 = arith.constant dense<0.000000e+00> : vector<8xf32>
      %228 = vector.multi_reduction <add>, %227, %cst_121 [1] : vector<8x32xf32> to vector<8xf32>
      %229 = vector.shape_cast %228 : vector<8xf32> to vector<8x1xf32>
      %230 = math.sqrt %229 : vector<8x1xf32>
      %231 = arith.mulf %216, %216 : vector<8x32xf32>
      %cst_122 = arith.constant dense<0.000000e+00> : vector<8xf32>
      %232 = vector.multi_reduction <add>, %231, %cst_122 [1] : vector<8x32xf32> to vector<8xf32>
      %233 = vector.shape_cast %232 : vector<8xf32> to vector<8x1xf32>
      %234 = math.sqrt %233 : vector<8x1xf32>
      %235 = arith.mulf %222, %222 : vector<8x32xf32>
      %cst_123 = arith.constant dense<0.000000e+00> : vector<8xf32>
      %236 = vector.multi_reduction <add>, %235, %cst_123 [1] : vector<8x32xf32> to vector<8xf32>
      %237 = vector.shape_cast %236 : vector<8xf32> to vector<8x1xf32>
      %238 = math.sqrt %237 : vector<8x1xf32>
      %239 = arith.mulf %208, %210 : vector<8x32xf32>
      %cst_124 = arith.constant dense<0.000000e+00> : vector<8xf32>
      %240 = vector.multi_reduction <add>, %239, %cst_124 [1] : vector<8x32xf32> to vector<8xf32>
      %241 = vector.shape_cast %240 : vector<8xf32> to vector<8x1xf32>
      %242 = arith.mulf %226, %230 : vector<8x1xf32>
      %243 = arith.divf %241, %242 : vector<8x1xf32>
      %cst_125 = arith.constant 1.000000e+00 : f32
      %244 = vector.broadcast %cst_125 : f32 to vector<8x1xf32>
      %245 = arith.subf %244, %243 : vector<8x1xf32>
      %246 = arith.mulf %208, %222 : vector<8x32xf32>
      %cst_126 = arith.constant dense<0.000000e+00> : vector<8xf32>
      %247 = vector.multi_reduction <add>, %246, %cst_126 [1] : vector<8x32xf32> to vector<8xf32>
      %248 = vector.shape_cast %247 : vector<8xf32> to vector<8x1xf32>
      %249 = arith.mulf %226, %238 : vector<8x1xf32>
      %250 = arith.divf %248, %249 : vector<8x1xf32>
      %cst_127 = arith.constant 1.000000e+00 : f32
      %251 = vector.broadcast %cst_127 : f32 to vector<8x1xf32>
      %252 = arith.subf %251, %250 : vector<8x1xf32>
      %253 = arith.mulf %210, %216 : vector<8x32xf32>
      %cst_128 = arith.constant dense<0.000000e+00> : vector<8xf32>
      %254 = vector.multi_reduction <add>, %253, %cst_128 [1] : vector<8x32xf32> to vector<8xf32>
      %255 = vector.shape_cast %254 : vector<8xf32> to vector<8x1xf32>
      %256 = arith.mulf %230, %234 : vector<8x1xf32>
      %257 = arith.divf %255, %256 : vector<8x1xf32>
      %cst_129 = arith.constant 1.000000e+00 : f32
      %258 = vector.broadcast %cst_129 : f32 to vector<8x1xf32>
      %259 = arith.subf %258, %257 : vector<8x1xf32>
      %c4_130 = arith.constant 4 : index
      %c0_131 = arith.constant 0 : index
      %c0_132 = arith.constant 0 : index
      %260 = vector.load %arg6[%c4_130, %c0_131, %c0_132] : memref<6x8x1xf32, #tpu.memory_space<vmem>>, vector<1x8x1xf32>
      %261 = vector.shape_cast %260 : vector<1x8x1xf32> to vector<8x1xf32>
      %c5_133 = arith.constant 5 : index
      %c0_134 = arith.constant 0 : index
      %c0_135 = arith.constant 0 : index
      %262 = vector.load %arg6[%c5_133, %c0_134, %c0_135] : memref<6x8x1xf32, #tpu.memory_space<vmem>>, vector<1x8x1xf32>
      %263 = vector.shape_cast %262 : vector<1x8x1xf32> to vector<8x1xf32>
      %264 = arith.mulf %261, %263 : vector<8x1xf32>
      %265 = arith.subf %245, %252 : vector<8x1xf32>
      %cst_136 = arith.constant 5.000000e-01 : f32
      %266 = vector.broadcast %cst_136 : f32 to vector<8x1xf32>
      %267 = arith.addf %265, %266 : vector<8x1xf32>
      %cst_137 = arith.constant 0.000000e+00 : f32
      %268 = vector.broadcast %cst_137 : f32 to vector<8x1xf32>
      %269 = arith.maximumf %267, %268 : vector<8x1xf32>
      %270 = arith.mulf %269, %264 : vector<8x1xf32>
      %271 = vector.shape_cast %270 : vector<8x1xf32> to vector<1x8x1xf32>
      %cst_138 = arith.constant dense<0.000000e+00> : vector<1xf32>
      %272 = vector.multi_reduction <add>, %271, %cst_138 [1, 2] : vector<1x8x1xf32> to vector<1xf32>
      %273 = vector.shape_cast %272 : vector<1xf32> to vector<1x1x1xf32>
      %274 = vector.extract %273[0, 0, 0] : f32 from vector<1x1x1xf32>
      %cst_139 = arith.constant 5.000000e-01 : f32
      %275 = arith.mulf %cst_139, %274 : f32
      %276 = arith.addf %201, %275 : f32
      %277 = arith.subf %245, %259 : vector<8x1xf32>
      %cst_140 = arith.constant 5.000000e-01 : f32
      %278 = vector.broadcast %cst_140 : f32 to vector<8x1xf32>
      %279 = arith.addf %277, %278 : vector<8x1xf32>
      %cst_141 = arith.constant 0.000000e+00 : f32
      %280 = vector.broadcast %cst_141 : f32 to vector<8x1xf32>
      %281 = arith.maximumf %279, %280 : vector<8x1xf32>
      %282 = arith.mulf %281, %264 : vector<8x1xf32>
      %283 = vector.shape_cast %282 : vector<8x1xf32> to vector<1x8x1xf32>
      %cst_142 = arith.constant dense<0.000000e+00> : vector<1xf32>
      %284 = vector.multi_reduction <add>, %283, %cst_142 [1, 2] : vector<1x8x1xf32> to vector<1xf32>
      %285 = vector.shape_cast %284 : vector<1xf32> to vector<1x1x1xf32>
      %286 = vector.extract %285[0, 0, 0] : f32 from vector<1x1x1xf32>
      %cst_143 = arith.constant 5.000000e-01 : f32
      %287 = arith.mulf %cst_143, %286 : f32
      %288 = arith.addf %276, %287 : f32
      %289 = vector.shape_cast %264 : vector<8x1xf32> to vector<1x8x1xf32>
      %cst_144 = arith.constant dense<0.000000e+00> : vector<1xf32>
      %290 = vector.multi_reduction <add>, %289, %cst_144 [1, 2] : vector<1x8x1xf32> to vector<1xf32>
      %291 = vector.shape_cast %290 : vector<1xf32> to vector<1x1x1xf32>
      %292 = vector.extract %291[0, 0, 0] : f32 from vector<1x1x1xf32>
      %293 = arith.addf %206, %292 : f32
      %cst_145 = arith.constant 1.000000e+00 : f32
      %294 = arith.mulf %cst_145, %288 : f32
      %295 = arith.divf %294, %293 : f32
      %c0_146 = arith.constant 0 : index
      %296 = memref.load %arg15[%c0_146] : memref<4xf32, #tpu.memory_space<smem>>
      %c1_147 = arith.constant 1 : index
      %297 = memref.load %arg15[%c1_147] : memref<4xf32, #tpu.memory_space<smem>>
      %c2_148 = arith.constant 2 : index
      %298 = memref.load %arg15[%c2_148] : memref<4xf32, #tpu.memory_space<smem>>
      %299 = arith.addf %296, %297 : f32
      %300 = arith.addf %299, %298 : f32
      %301 = arith.addf %300, %295 : f32
      %cst_149 = arith.constant 0.000000e+00 : f32
      %302 = arith.addf %301, %cst_149 : f32
      %c0_150 = arith.constant 0 : index
      %c0_151 = arith.constant 0 : index
      %303 = memref.load %arg10[%c0_150, %c0_151] : memref<1x8xf32, #tpu.memory_space<smem>>
      memref.store %302, %arg10[%c0_150, %c0_151] : memref<1x8xf32, #tpu.memory_space<smem>>
      %c0_152 = arith.constant 0 : index
      %c1_153 = arith.constant 1 : index
      %304 = memref.load %arg10[%c0_152, %c1_153] : memref<1x8xf32, #tpu.memory_space<smem>>
      memref.store %296, %arg10[%c0_152, %c1_153] : memref<1x8xf32, #tpu.memory_space<smem>>
      %c0_154 = arith.constant 0 : index
      %c2_155 = arith.constant 2 : index
      %305 = memref.load %arg10[%c0_154, %c2_155] : memref<1x8xf32, #tpu.memory_space<smem>>
      memref.store %297, %arg10[%c0_154, %c2_155] : memref<1x8xf32, #tpu.memory_space<smem>>
      %c0_156 = arith.constant 0 : index
      %c3_157 = arith.constant 3 : index
      %306 = memref.load %arg10[%c0_156, %c3_157] : memref<1x8xf32, #tpu.memory_space<smem>>
      memref.store %298, %arg10[%c0_156, %c3_157] : memref<1x8xf32, #tpu.memory_space<smem>>
      %c0_158 = arith.constant 0 : index
      %c4_159 = arith.constant 4 : index
      %307 = memref.load %arg10[%c0_158, %c4_159] : memref<1x8xf32, #tpu.memory_space<smem>>
      memref.store %295, %arg10[%c0_158, %c4_159] : memref<1x8xf32, #tpu.memory_space<smem>>
      %cst_160 = arith.constant 0.000000e+00 : f32
      %c0_161 = arith.constant 0 : index
      %c5_162 = arith.constant 5 : index
      %308 = memref.load %arg10[%c0_161, %c5_162] : memref<1x8xf32, #tpu.memory_space<smem>>
      memref.store %cst_160, %arg10[%c0_161, %c5_162] : memref<1x8xf32, #tpu.memory_space<smem>>
      %cst_163 = arith.constant 0.000000e+00 : f32
      %c0_164 = arith.constant 0 : index
      %c6 = arith.constant 6 : index
      %309 = memref.load %arg10[%c0_164, %c6] : memref<1x8xf32, #tpu.memory_space<smem>>
      memref.store %cst_163, %arg10[%c0_164, %c6] : memref<1x8xf32, #tpu.memory_space<smem>>
      %cst_165 = arith.constant 0.000000e+00 : f32
      %c0_166 = arith.constant 0 : index
      %c7 = arith.constant 7 : index
      %310 = memref.load %arg10[%c0_166, %c7] : memref<1x8xf32, #tpu.memory_space<smem>>
      memref.store %cst_165, %arg10[%c0_166, %c7] : memref<1x8xf32, #tpu.memory_space<smem>>
    } else {
    }
    return
  }
  func.func @transform_0(%arg0: i32) -> (i32, i32, i32) {
    %c0_i32 = arith.constant 0 : i32
    %c0_i32_0 = arith.constant 0 : i32
    %c0_i32_1 = arith.constant 0 : i32
    %c0_i32_2 = arith.constant 0 : i32
    return %c0_i32, %c0_i32_0, %c0_i32_1 : i32, i32, i32
  }
  func.func @transform_1(%arg0: i32) -> (i32, i32, i32) {
    %c0_i32 = arith.constant 0 : i32
    %c0_i32_0 = arith.constant 0 : i32
    %c0_i32_1 = arith.constant 0 : i32
    %c0_i32_2 = arith.constant 0 : i32
    return %c0_i32, %c0_i32_0, %c0_i32_1 : i32, i32, i32
  }
  func.func @transform_2(%arg0: i32) -> (i32, i32, i32) {
    %c0_i32 = arith.constant 0 : i32
    %c0_i32_0 = arith.constant 0 : i32
    %c0_i32_1 = arith.constant 0 : i32
    %c0_i32_2 = arith.constant 0 : i32
    return %c0_i32, %c0_i32_0, %c0_i32_1 : i32, i32, i32
  }
  func.func @transform_3(%arg0: i32) -> (i32, i32, i32) {
    %c0_i32 = arith.constant 0 : i32
    %c0_i32_0 = arith.constant 0 : i32
    %c0_i32_1 = arith.constant 0 : i32
    %c0_i32_2 = arith.constant 0 : i32
    return %c0_i32, %c0_i32_0, %c0_i32_1 : i32, i32, i32
  }
  func.func @transform_4(%arg0: i32) -> (i32, i32, i32) {
    %c0_i32 = arith.constant 0 : i32
    %c0_i32_0 = arith.constant 0 : i32
    %c0_i32_1 = arith.constant 0 : i32
    %c0_i32_2 = arith.constant 0 : i32
    return %c0_i32, %c0_i32_0, %c0_i32_1 : i32, i32, i32
  }
  func.func @transform_5(%arg0: i32) -> (i32, i32, i32) {
    %c0_i32 = arith.constant 0 : i32
    %c0_i32_0 = arith.constant 0 : i32
    %c0_i32_1 = arith.constant 0 : i32
    %c0_i32_2 = arith.constant 0 : i32
    return %c0_i32, %c0_i32_0, %c0_i32_1 : i32, i32, i32
  }
  func.func @transform_6(%arg0: i32) -> (i32, i32, i32) {
    %c0_i32 = arith.constant 0 : i32
    %c0_i32_0 = arith.constant 0 : i32
    %c0_i32_1 = arith.constant 0 : i32
    return %c0_i32, %c0_i32_0, %arg0 : i32, i32, i32
  }
  func.func @transform_7(%arg0: i32) -> (i32, i32, i32) {
    %c0_i32 = arith.constant 0 : i32
    %c0_i32_0 = arith.constant 0 : i32
    %c0_i32_1 = arith.constant 0 : i32
    return %c0_i32, %c0_i32_0, %arg0 : i32, i32, i32
  }
  func.func @transform_8(%arg0: i32) -> (i32, i32, i32) {
    %c0_i32 = arith.constant 0 : i32
    %c0_i32_0 = arith.constant 0 : i32
    %c0_i32_1 = arith.constant 0 : i32
    return %c0_i32, %arg0, %c0_i32_0 : i32, i32, i32
  }
  func.func @transform_9(%arg0: i32) -> (i32, i32) {
    %c0_i32 = arith.constant 0 : i32
    %c0_i32_0 = arith.constant 0 : i32
    %c0_i32_1 = arith.constant 0 : i32
    return %c0_i32, %c0_i32_0 : i32, i32
  }
}

</mosaic_0001>

<bundles_post_ra>
// kernel: tpu_custom_call.1
= control target key start
LH: loop header
LB: loop body
LE: loop exit
PB: predicated region body
PF: predicated region fallthrough
CT: control target
= control target key end

     0   :  { %14 = vsyncpa [#allocation8], 0  ;;  %s5309_s0 = inlined_call_operand.hbm [shape: f32[6,8,16], index: 0, kind: input, shape index: {}]   ;;  %s5310_s1 = inlined_call_operand.vmem [shape: f32[6,1,16], index: 1, kind: input, shape index: {}]   ;;  %s5311_s2 = inlined_call_operand.vmem [shape: f32[6,1,16], index: 2, kind: input, shape index: {}]   ;;  %s5312_s3 = inlined_call_operand.vmem [shape: f32[6,1,16], index: 3, kind: input, shape index: {}]   ;;  %s5313_s4 = inlined_call_operand.vmem [shape: f32[6,8,1], index: 4, kind: input, shape index: {}]   ;;  %s5314_s5 = inlined_call_operand.vmem [shape: f32[6,8,1], index: 5, kind: input, shape index: {}]   ;;  %s5315_s6 = inlined_call_operand.hbm [shape: f32[6,8,16], index: 6, kind: input, shape index: {}]   ;;  %s5316_s7 = inlined_call_operand.vmem [shape: f32[6,1,16], index: 7, kind: input, shape index: {}]   ;;  %s5317_s8 = inlined_call_operand.vmem [shape: f32[6,16,32], index: 8, kind: input, shape index: {}]   ;;  %s5318_s9 = inlined_call_operand.hbm [shape: f32[1,8], index: 9, kind: output, shape index: {}]  }
   0x1   :  { %15 = vsyncpa [#allocation11], 0 }
   0x2   :  { %16 = vsyncpa [#allocation9], 0  ;;  %s3553_s30 = smov [#allocation7]  }
   0x3   :  { %s22_s10 = sshll.u32 %s3553_s30, 4  ;;  %s23_s10 = int_to_ptr.vmem [resolvable:$true] %s22_s10 }
   0x4   :  { %s3307_s11 = scalar_lea.vmem %s23_s10, 768  ;;  %p3312_p1 = scmp.lt.s32.totalorder %s23_s10, %s23_s10 }
   0x5   :  { %p3308_p0 = scmp.ne.s32.totalorder %s23_s10, %s3307_s11  ;;  %p3313_p2 = scmp.lt.s32.totalorder %s3307_s11, %s3307_s11 }
   0x7   :  { %p3314_p3 = por %p3313_p2, %p3312_p1 }
   0x9   :  { %p3315_p4 = pnand %p3314_p3, %p3308_p0 }
   0xb   :  { %3318 = shalt.err (!%p3315_p4)
}
   0xc   :  { %s3554_s12 = smov 128   ;;  %s3555_s13 = smov 8  }
   0xd   :  { %28 = dma.hbm_to_vmem [thread:$0]  %s5309_s0, 768, %s23_s10, [#allocation8], %s3554_s12, %s3554_s12, %s3555_s13  }
   0xe   :  { %s3556_s16 = smov [#allocation10]  }
   0xf   :  { %s44_s17 = sshll.u32 %s3556_s16, 4  ;;  %s45_s17 = int_to_ptr.vmem [resolvable:$true] %s44_s17 }
  0x10   :  { %s3327_s18 = scalar_lea.vmem %s45_s17, 768  ;;  %p3332_p6 = scmp.lt.s32.totalorder %s45_s17, %s45_s17 }
  0x11   :  { %p3328_p5 = scmp.ne.s32.totalorder %s45_s17, %s3327_s18  ;;  %p3333_p7 = scmp.lt.s32.totalorder %s3327_s18, %s3327_s18 }
  0x13   :  { %p3334_p8 = por %p3333_p7, %p3332_p6 }
  0x15   :  { %p3335_p9 = pnand %p3334_p8, %p3328_p5 }
  0x17   :  { %3338 = shalt.err (!%p3335_p9)
}
  0x18   :  { %50 = dma.hbm_to_vmem [thread:$0]  %s5315_s6, 768, %s45_s17, [#allocation11], %s3554_s12, %s3554_s12, %s3555_s13  }
  0x19   :  { %3447 = dma.done.wait [#allocation8], 768  }
  0x1a   :  { %3448 = vsyncadd [#allocation8], 4294966528 }
  0x1b   :  { %3449 = dma.done.wait [#allocation11], 768  }
  0x1c   :  { %3450 = vsyncadd [#allocation11], 4294966528  ;;  %v3622_v0 = vld [vmem:[%s5311_s2] sm:$0x1]  ;;  %v3627_v1 = vld [vmem:[%s5311_s2 + $0x1] sm:$0x1]  ;;  %v156_v24 = vlaneseq }
  0x1d   :  { %5372 = vst [vmem:[#allocation16_spill] sm:$0xff] %v3622_v0  ;;  %5373 = vst [vmem:[#allocation17_spill] sm:$0xff] %v3627_v1  ;;  %v3632_v2 = vld [vmem:[%s5311_s2 + $0x2] sm:$0x1]  ;;  %v3637_v3 = vld [vmem:[%s5311_s2 + $0x3] sm:$0x1] }
  0x1e   :  { %5374 = vst [vmem:[#allocation18_spill] sm:$0xff] %v3632_v2  ;;  %5375 = vst [vmem:[#allocation19_spill] sm:$0xff] %v3637_v3  ;;  %v3642_v4 = vld [vmem:[%s5311_s2 + $0x4] sm:$0x1]  ;;  %v3647_v5 = vld [vmem:[%s5311_s2 + $0x5] sm:$0x1] }
  0x1f   :  { %5376 = vst [vmem:[#allocation20_spill] sm:$0xff] %v3642_v4  ;;  %5377 = vst [vmem:[#allocation21_spill] sm:$0xff] %v3647_v5  ;;  %v3652_v6 = vld [vmem:[%s5312_s3] sm:$0x1]  ;;  %v3657_v7 = vld [vmem:[%s5312_s3 + $0x1] sm:$0x1] }
  0x20   :  { %5378 = vst [vmem:[#allocation22_spill] sm:$0xff] %v3652_v6  ;;  %5379 = vst [vmem:[#allocation23_spill] sm:$0xff] %v3657_v7  ;;  %v3662_v8 = vld [vmem:[%s5312_s3 + $0x2] sm:$0x1]  ;;  %v3667_v9 = vld [vmem:[%s5312_s3 + $0x3] sm:$0x1] }
  0x21   :  { %5380 = vst [vmem:[#allocation24_spill] sm:$0xff] %v3662_v8  ;;  %5381 = vst [vmem:[#allocation25_spill] sm:$0xff] %v3667_v9  ;;  %v3672_v10 = vld [vmem:[%s5312_s3 + $0x4] sm:$0x1]  ;;  %v3677_v11 = vld [vmem:[%s5312_s3 + $0x5] sm:$0x1] }
  0x22   :  { %5382 = vst [vmem:[#allocation26_spill] sm:$0xff] %v3672_v10  ;;  %5383 = vst [vmem:[#allocation27_spill] sm:$0xff] %v3677_v11  ;;  %v3682_v12 = vld [vmem:[%s5313_s4] sm:$0xff]  ;;  %v3687_v13 = vld [vmem:[%s5313_s4 + $0x8] sm:$0xff]  ;;  %vm101_vm0 = vcmask 130048   ;;  %v157_v35 = vshrl.u32 %v156_v24, 7 }
  0x23   :  { %5384 = vst [vmem:[#allocation28_spill] sm:$0xff] %v3687_v13  ;;  %v3692_v14 = vld [vmem:[%s5313_s4 + $0x10] sm:$0xff]  ;;  %v3697_v15 = vld [vmem:[%s5313_s4 + $0x18] sm:$0xff]  ;;  %v3702_v16 = vld [vmem:[%s5313_s4 + $0x20] sm:$0xff]  ;;  %vm252_vm1 = vcmask 7168  }
  0x24   :  { %5385 = vst [vmem:[#allocation29_spill] sm:$0xff] %v3692_v14  ;;  %5386 = vst [vmem:[#allocation30_spill] sm:$0xff] %v3697_v15  ;;  %v3707_v17 = vld [vmem:[%s5313_s4 + $0x28] sm:$0xff]  ;;  %v3712_v18 = vld [vmem:[%s5314_s5] sm:$0xff]  ;;  %v3784_v49 = vsub.s32 0, %v157_v35 }
  0x25   :  { %5387 = vst [vmem:[#allocation31_spill] sm:$0xff] %v3702_v16  ;;  %5388 = vst [vmem:[#allocation32_spill] sm:$0xff] %v3707_v17  ;;  %v3717_v19 = vld [vmem:[%s5314_s5 + $0x8] sm:$0xff]  ;;  %v3722_v20 = vld [vmem:[%s5314_s5 + $0x10] sm:$0xff] }
  0x26   :  { %5389 = vst [vmem:[#allocation33_spill] sm:$0xff] %v3712_v18  ;;  %5390 = vst [vmem:[#allocation34_spill] sm:$0xff] %v3717_v19  ;;  %v3727_v21 = vld [vmem:[%s5314_s5 + $0x18] sm:$0xff]  ;;  %v3732_v22 = vld [vmem:[%s5314_s5 + $0x20] sm:$0xff] }
  0x27   :  { %5391 = vst [vmem:[#allocation35_spill] sm:$0xff] %v3722_v20  ;;  %5392 = vst [vmem:[#allocation36_spill] sm:$0xff] %v3727_v21  ;;  %v3737_v23 = vld [vmem:[%s5314_s5 + $0x28] sm:$0xff]  ;;  %v3739_v25 = vld [vmem:[#allocation7] sm:$0xff] }
  0x28   :  { %5393 = vst [vmem:[#allocation37_spill] sm:$0xff] %v3732_v22  ;;  %5394 = vst [vmem:[#allocation38_spill] sm:$0xff] %v3737_v23  ;;  %v3741_v26 = vld [vmem:[#allocation7 + $0x10] sm:$0xff]  ;;  %v3745_v27 = vsel %vm101_vm0, %v3739_v25, inf  ;;  %v3751_v29 = vld [vmem:[#allocation7 + $0x8] sm:$0xff] }
  0x29   :  { %v3749_v28 = vsel %vm101_vm0, %v3741_v26, inf  ;;  %v3753_v30 = vld [vmem:[#allocation7 + $0x18] sm:$0xff]  ;;  %v103_v31 = vrot.slane %v3745_v27, 4  ;;  %v3759_v33 = vsel %vm101_vm0, %v3751_v29, inf  ;;  %v3761_v34 = vld [vmem:[#allocation7 + $0x28] sm:$0xff]  ;;  %v3771_v41 = vld [vmem:[#allocation7 + $0x20] sm:$0xff] }
  0x2a   :  { %v117_v32 = vrot.slane %v3749_v28, 4  ;;  %v110_v36 = vrot.slane %v3759_v33, 4  ;;  %v3766_v37 = vsel %vm101_vm0, %v3753_v30, inf  ;;  %v3776_v43 = vsel %vm101_vm0, %v3761_v34, inf  ;;  %5395 = vst [vmem:[#allocation39_spill] sm:$0xff] %v3784_v49 }
  0x2b   :  { %v104_v38 = vmin.f32 %v3745_v27, %v103_v31  ;;  %v124_v40 = vrot.slane %v3766_v37, 4  ;;  %v3780_v44 = vsel %vm101_vm0, %v3771_v41, inf  ;;  %v138_v48 = vrot.slane %v3776_v43, 4  ;;  %v3790_v52 = vld [vmem:[%s5310_s1] sm:$0x1] }
  0x2c   :  { %v118_v39 = vmin.f32 %v3749_v28, %v117_v32  ;;  %v111_v42 = vmin.f32 %v3759_v33, %v110_v36  ;;  %v131_v51 = vrot.slane %v3780_v44, 4  ;;  %5396 = vst [vmem:[#allocation40_spill] sm:$0xff] %v3790_v52  ;;  %v3795_v54 = vld [vmem:[%s5310_s1 + $0x2] sm:$0x1]  ;;  %v3801_v58 = vld [vmem:[%s5310_s1 + $0x1] sm:$0x1]  ;;  %v3811_v32 = vrot.slane %v3790_v52, %v3784_v49 }
  0x2d   :  { %v105_v45 = vrot.slane %v104_v38, 2  ;;  %v125_v47 = vmin.f32 %v3766_v37, %v124_v40  ;;  %5397 = vst [vmem:[#allocation41_spill] sm:$0xff] %v3795_v54  ;;  %v139_v57 = vmin.f32 %v3776_v43, %v138_v48  ;;  %5398 = vst [vmem:[#allocation42_spill] sm:$0xff] %v3801_v58  ;;  %v3807_v63 = vld [vmem:[%s5310_s1 + $0x3] sm:$0x1]  ;;  %v3815_v35 = vrot.slane %v3795_v54, %v3784_v49 }
  0x2e   :  { %v119_v46 = vrot.slane %v118_v39, 2  ;;  %v112_v50 = vrot.slane %v111_v42, 2  ;;  %v132_v60 = vmin.f32 %v3780_v44, %v131_v51  ;;  %5399 = vst [vmem:[#allocation43_spill] sm:$0xff] %v3807_v63  ;;  %5400 = vst [vmem:[#allocation44_spill] sm:$0xff] %v3811_v32  ;;  %v3824_v48 = vrot.slane %v3801_v58, %v3784_v49 }
  0x2f   :  { %v106_v53 = vmin.f32 %v104_v38, %v105_v45  ;;  %v126_v56 = vrot.slane %v125_v47, 2  ;;  %v140_v31 = vrot.slane %v139_v57, 2  ;;  %5401 = vst [vmem:[#allocation45_spill] sm:$0xff] %v3815_v35  ;;  %v3820_v45 = vld [vmem:[%s5310_s1 + $0x5] sm:$0x1] }
  0x30   :  { %v120_v55 = vmin.f32 %v118_v39, %v119_v46  ;;  %v113_v59 = vmin.f32 %v111_v42, %v112_v50  ;;  %v133_v38 = vrot.slane %v132_v60, 2  ;;  %5402 = vst [vmem:[#allocation46_spill] sm:$0xff] %v3820_v45  ;;  %5403 = vst [vmem:[#allocation47_spill] sm:$0xff] %v3824_v48  ;;  %v3828_v50 = vrot.slane %v3807_v63, %v3784_v49 }
  0x31   :  { %v107_v61 = vrot.slane %v106_v53, 1  ;;  %v127_v24 = vmin.f32 %v125_v47, %v126_v56  ;;  %v141_v46 = vmin.f32 %v139_v57, %v140_v31  ;;  %v3835_v57 = vld [vmem:[%s5310_s1 + $0x4] sm:$0x1]  ;;  %s4059_s1 = smov 0  }
  0x32   :  { %v121_v62 = vrot.slane %v120_v55, 1  ;;  %v114_v36 = vrot.slane %v113_v59, 1  ;;  %5404 = vst [vmem:[#allocation48_spill] sm:$0xff] %v3828_v50  ;;  %v134_v51 = vmin.f32 %v132_v60, %v133_v38  ;;  %5405 = vst [vmem:[#allocation49_spill] sm:$0xff] %v3835_v57  ;;  %v3848_v10 = vrot.slane %v3835_v57, %v3784_v49 }
  0x33   :  { %v108_v39 = vmin.f32 %v106_v53, %v107_v61  ;;  %v128_v42 = vrot.slane %v127_v24, 1  ;;  %v142_v61 = vrot.slane %v141_v46, 1 }
  0x34   :  { %v122_v40 = vmin.f32 %v120_v55, %v121_v62  ;;  %v115_v47 = vmin.f32 %v113_v59, %v114_v36  ;;  %v3840_v62 = vrot.slane %v3820_v45, %v3784_v49  ;;  %v135_v31 = vrot.slane %v134_v51, 1  ;;  %5407 = vst [vmem:[#allocation51_spill] sm:$0xff] %v3848_v10 }
  0x35   :  { %v144_v53 = vsub.f32 %v3739_v25, %v108_v39  ;;  %v129_v56 = vmin.f32 %v127_v24, %v128_v42  ;;  %v143_v24 = vmin.f32 %v141_v46, %v142_v61 }
  0x36   :  { %v146_v55 = vsub.f32 %v3741_v26, %v122_v40  ;;  %v145_v59 = vsub.f32 %v3751_v29, %v115_v47  ;;  %5406 = vst [vmem:[#allocation50_spill] sm:$0xff] %v3840_v62  ;;  %v136_v11 = vmin.f32 %v134_v51, %v135_v31 }
  0x37   :  { %v186_v60 = vmul.f32 %v3811_v32, %v144_v53  ;;  %v147_v38 = vsub.f32 %v3753_v30, %v129_v56  ;;  %v149_v53 = vsub.f32 %v3761_v34, %v143_v24 }
  0x38   :  { %v188_v36 = vmul.f32 %v3815_v35, %v146_v55  ;;  %v187_v42 = vmul.f32 %v3824_v48, %v145_v59  ;;  %v148_v55 = vsub.f32 %v3771_v41, %v136_v11 }
  0x39   :  { %v3850_v9 = vadd.f32 %v186_v60, %v108_v39  ;;  %v189_v5 = vmul.f32 %v3828_v50, %v147_v38  ;;  %v191_v39 = vmul.f32 %v3840_v62, %v149_v53 }
  0x3a   :  { %v3852_v8 = vadd.f32 %v188_v36, %v122_v40  ;;  %v3856_v32 = vadd.f32 %v187_v42, %v115_v47  ;;  %v190_v40 = vmul.f32 %v3848_v10, %v148_v55 }
  0x3b   :  { %v198_v46 = vsel %vm101_vm0, %v3850_v9, -inf  ;;  %v3863_v61 = vadd.f32 %v189_v5, %v129_v56  ;;  %v3871_v31 = vadd.f32 %v191_v39, %v143_v24 }
  0x3c   :  { %v204_v51 = vsel %vm101_vm0, %v3852_v8, -inf  ;;  %199 = vmax.xlane.f32.xlu0 %v198_v46  ;;  %v201_v47 = vsel %vm101_vm0, %v3856_v32, -inf  ;;  %v3873_v60 = vadd.f32 %v190_v40, %v136_v11  ;;  %v289_v11 = vsel %vm101_vm0, %v3850_v9, inf }
  0x3d   :  { %205 = vmax.xlane.f32.xlu1 %v204_v51  ;;  %v207_v59 = vsel %vm101_vm0, %v3863_v61, -inf  ;;  %v213_v5 = vsel %vm101_vm0, %v3871_v31, -inf  ;;  %v292_v36 = vsel %vm101_vm0, %v3856_v32, inf }
  0x3e   :  { %v210_v56 = vsel %vm101_vm0, %v3873_v60, -inf }
  0x40   :  { %202 = vmax.xlane.f32.xlu0 %v201_v47 }
  0x41   :  { %208 = vmax.xlane.f32.xlu1 %v207_v59 }
  0x44   :  { %211 = vmax.xlane.f32.xlu0 %v210_v56 }
  0x45   :  { %214 = vmax.xlane.f32.xlu1 %v213_v5 }
  0x48   :  { %277 = vmin.xlane.f32.xlu0 %v3745_v27  ;;  %v295_v27 = vsel %vm101_vm0, %v3852_v8, inf }
  0x49   :  { %279 = vmin.xlane.f32.xlu1 %v3759_v33 }
  0x4c   :  { %281 = vmin.xlane.f32.xlu0 %v3749_v28  ;;  %v298_v28 = vsel %vm101_vm0, %v3863_v61, inf }
  0x4d   :  { %283 = vmin.xlane.f32.xlu1 %v3766_v37 }
  0x50   :  { %285 = vmin.xlane.f32.xlu0 %v3780_v44 }
  0x51   :  { %287 = vmin.xlane.f32.xlu1 %v3776_v43 }
  0x54   :  { %290 = vmin.xlane.f32.xlu0 %v289_v11 }
  0x55   :  { %293 = vmin.xlane.f32.xlu1 %v292_v36 }
  0x58   :  { %296 = vmin.xlane.f32.xlu0 %v295_v27 }
  0x59   :  { %299 = vmin.xlane.f32.xlu1 %v298_v28 }
  0xc5   :  { %v3893_v33 = vpop.xlane.xlu0 %199  }
  0xc6   :  { %v3895_v37 = vpop.xlane.xlu1 %205   ;;  %v216_v43 = vsub.f32 %v3850_v9, %v3893_v33  ;;  %253 = vst.msk [vmem:[#allocation4] sm:$0xff] %vm252_vm1, %v3893_v33 }
  0xc7   :  { %v218_v44 = vsub.f32 %v3852_v8, %v3895_v37  ;;  %255 = vst.msk [vmem:[#allocation4 + $0x10] sm:$0xff] %vm252_vm1, %v3895_v37 }
  0xc8   :  { %v222_v38 = vmul.f32 1.442695, %v216_v43 }
  0xc9   :  { %v226_v24 = vmul.f32 1.442695, %v218_v44  ;;  %v3905_v42 = vpop.xlane.xlu0 %202  }
  0xca   :  { %v3907_v53 = vpop.xlane.xlu1 %208   ;;  %3121 = vpow2.f32 %v222_v38  ;;  %v217_v55 = vsub.f32 %v3856_v32, %v3905_v42  ;;  %254 = vst.msk [vmem:[#allocation4 + $0x8] sm:$0xff] %vm252_vm1, %v3905_v42 }
  0xcb   :  { %v219_v46 = vsub.f32 %v3863_v61, %v3907_v53  ;;  %256 = vst.msk [vmem:[#allocation4 + $0x18] sm:$0xff] %vm252_vm1, %v3907_v53  ;;  %3123 = vpow2.f32 %v226_v24 }
  0xcc   :  { %v224_v51 = vmul.f32 1.442695, %v217_v55 }
  0xcd   :  { %v228_v39 = vmul.f32 1.442695, %v219_v46  ;;  %v3919_v47 = vpop.xlane.xlu0 %211  }
  0xce   :  { %v3917_v40 = vpop.xlane.xlu1 %214   ;;  %3125 = vpow2.f32 %v224_v51  ;;  %v220_v5 = vsub.f32 %v3873_v60, %v3919_v47  ;;  %257 = vst.msk [vmem:[#allocation4 + $0x20] sm:$0xff] %vm252_vm1, %v3919_v47 }
  0xcf   :  { %v221_v59 = vsub.f32 %v3871_v31, %v3917_v40  ;;  %258 = vst.msk [vmem:[#allocation4 + $0x28] sm:$0xff] %vm252_vm1, %v3917_v40  ;;  %3127 = vpow2.f32 %v228_v39 }
  0xd0   :  { %v230_v11 = vmul.f32 1.442695, %v220_v5 }
  0xd1   :  { %v232_v56 = vmul.f32 1.442695, %v221_v59  ;;  %v3929_v36 = vpop.xlane.xlu0 %277  }
  0xd2   :  { %v3931_v27 = vpop.xlane.xlu1 %279  }
  0xd3   :  { %3129 = vpow2.f32 %v232_v56 }
  0xd4   :  { %3131 = vpow2.f32 %v230_v11 }
  0xd5   :  { %v3933_v28 = vpop.xlane.xlu0 %281  }
  0xd6   :  { %v3935_v43 = vpop.xlane.xlu1 %283  }
  0xd7   :  { %v3122_v44 = vpop.eup %3121 }
  0xd8   :  { %v3124_v38 = vpop.eup %3123  ;;  %v234_v24 = vsel %vm101_vm0, %v3122_v44, 0.0 }
  0xd9   :  { %235 = vadd.xlane.f32.xlu0 %v234_v24  ;;  %v3938_v55 = vpop.xlane.xlu0 %285   ;;  %v240_v51 = vsel %vm101_vm0, %v3124_v38, 0.0 }
  0xda   :  { %v3940_v46 = vpop.xlane.xlu1 %287  }
  0xdb   :  { %v3126_v39 = vpop.eup %3125 }
  0xdc   :  { %v3128_v59 = vpop.eup %3127  ;;  %v237_v5 = vsel %vm101_vm0, %v3126_v39, 0.0  ;;  %v304_v39 = vsel %vm101_vm0, %v3871_v31, inf }
  0xdd   :  { %241 = vadd.xlane.f32.xlu0 %v240_v51  ;;  %238 = vadd.xlane.f32.xlu1 %v237_v5  ;;  %v3944_v56 = vpop.xlane.xlu0 %290   ;;  %v243_v62 = vsel %vm101_vm0, %v3128_v59, 0.0  ;;  %v301_v51 = vsel %vm101_vm0, %v3873_v60, inf  ;;  %v3965_v59 = vsel %vm101_vm0, %v3751_v29, -inf  ;;  %v3980_v5 = vsel %vm101_vm0, %v3771_v41, -inf }
  0xde   :  { %v3946_v11 = vpop.xlane.xlu1 %293   ;;  %5409 = vst [vmem:[#allocation53_spill] sm:$0xff] %v3965_v59  ;;  %5412 = vst [vmem:[#allocation56_spill] sm:$0xff] %v3980_v5 }
  0xe0   :  { %v3130_v44 = vpop.eup %3129 }
  0xe1   :  { %v3132_v24 = vpop.eup %3131  ;;  %244 = vadd.xlane.f32.xlu1 %v243_v62  ;;  %v3950_v50 = vpop.xlane.xlu0 %296   ;;  %v249_v35 = vsel %vm101_vm0, %v3130_v44, 0.0  ;;  %v3961_v62 = vsel %vm101_vm0, %v3739_v25, -inf  ;;  %v3985_v44 = vsel %vm101_vm0, %v3761_v34, -inf }
  0xe2   :  { %v246_v10 = vsel %vm101_vm0, %v3132_v24, 0.0  ;;  %v3952_v38 = vpop.xlane.xlu1 %299   ;;  %5408 = vst [vmem:[#allocation52_spill] sm:$0xff] %v3961_v62  ;;  %5413 = vst [vmem:[#allocation57_spill] sm:$0xff] %v3985_v44 }
  0xe3   :  { %247 = vadd.xlane.f32.xlu0 %v246_v10  ;;  %v3970_v10 = vsel %vm101_vm0, %v3741_v26, -inf }
  0xe4   :  { %5410 = vst [vmem:[#allocation54_spill] sm:$0xff] %v3970_v10 }
  0xe5   :  { %250 = vadd.xlane.f32.xlu1 %v249_v35  ;;  %v3975_v35 = vsel %vm101_vm0, %v3753_v30, -inf }
  0xe6   :  { %5411 = vst [vmem:[#allocation55_spill] sm:$0xff] %v3975_v35 }
  0xe7   :  { %302 = vmin.xlane.f32.xlu0 %v301_v51 }
  0xe9   :  { %305 = vmin.xlane.f32.xlu1 %v304_v39 }
  0xeb   :  { %308 = vmax.xlane.f32.xlu0 %v3961_v62 }
  0xed   :  { %311 = vmax.xlane.f32.xlu1 %v3965_v59 }
  0xef   :  { %314 = vmax.xlane.f32.xlu0 %v3970_v10 }
  0xf1   :  { %317 = vmax.xlane.f32.xlu1 %v3975_v35 }
  0xf3   :  { %320 = vmax.xlane.f32.xlu0 %v3980_v5 }
  0xf5   :  { %323 = vmax.xlane.f32.xlu1 %v3985_v44 }
 0x162   :  { %v236_v24 = vpop.xlane.xlu0 %235 }
 0x163   :  { %3133 = vrcp.f32 %v236_v24 }
 0x166   :  { %v239_v51 = vpop.xlane.xlu1 %238  ;;  %v242_v39 = vpop.xlane.xlu0 %241 }
 0x167   :  { %3135 = vrcp.f32 %v239_v51 }
 0x168   :  { %3137 = vrcp.f32 %v242_v39 }
 0x16a   :  { %v245_v48 = vpop.xlane.xlu1 %244 }
 0x16b   :  { %3139 = vrcp.f32 %v245_v48 }
 0x16c   :  { %v248_v49 = vpop.xlane.xlu0 %247 }
 0x16d   :  { %3141 = vrcp.f32 %v248_v49 }
 0x16e   :  { %v251_v4 = vpop.xlane.xlu1 %250 }
 0x16f   :  { %3143 = vrcp.f32 %v251_v4 }
 0x170   :  { %v303_v45 = vpop.xlane.xlu0 %302   ;;  %v3134_v7 = vpop.eup %3133 }
 0x171   :  { %271 = vst.msk [vmem:[#allocation5] sm:$0xff] %vm252_vm1, %v3134_v7 }
 0x172   :  { %v306_v6 = vpop.xlane.xlu1 %305  }
 0x174   :  { %v309_v3 = vpop.xlane.xlu0 %308   ;;  %v3136_v57 = vpop.eup %3135 }
 0x175   :  { %v3138_v2 = vpop.eup %3137  ;;  %272 = vst.msk [vmem:[#allocation5 + $0x8] sm:$0xff] %vm252_vm1, %v3136_v57 }
 0x176   :  { %273 = vst.msk [vmem:[#allocation5 + $0x10] sm:$0xff] %vm252_vm1, %v3138_v2  ;;  %v312_v24 = vpop.xlane.xlu1 %311  }
 0x178   :  { %v315_v51 = vpop.xlane.xlu0 %314   ;;  %v3140_v39 = vpop.eup %3139 }
 0x179   :  { %274 = vst.msk [vmem:[#allocation5 + $0x18] sm:$0xff] %vm252_vm1, %v3140_v39 }
 0x17a   :  { %v3142_v48 = vpop.eup %3141  ;;  %v318_v4 = vpop.xlane.xlu1 %317  }
 0x17b   :  { %275 = vst.msk [vmem:[#allocation5 + $0x20] sm:$0xff] %vm252_vm1, %v3142_v48 }
 0x17c   :  { %v321_v49 = vpop.xlane.xlu0 %320   ;;  %v3144_v63 = vpop.eup %3143 }
 0x17d   :  { %276 = vst.msk [vmem:[#allocation5 + $0x28] sm:$0xff] %vm252_vm1, %v3144_v63 }
 0x17e   :  { %v324_v7 = vpop.xlane.xlu1 %323  }
 0x17f LB: > { %v355_v2 = vadd.f32 %v3499_v3, %v3547_v36  ;;  %v357_v63 = vadd.f32 %v3491_v51, %v3539_v28  ;;  %v356_v39 = vadd.f32 %v3495_v24, %v3543_v27  ;;  %v358_v0 = vadd.f32 %v3487_v4, %v3535_v43  ;;  %s330_s1 = sadd.s32 1, %s3551_s1   ;;  %s3551_s1 = sphi %s4059_s1, %s330_s1   ;;  %v3547_v36 = vphi %v3929_v36, %v5438_v36   ;;  %v3543_v27 = vphi %v3931_v27, %v5437_v27   ;;  %v3539_v28 = vphi %v3933_v28, %v5436_v28   ;;  %v3535_v43 = vphi %v3935_v43, %v5435_v43   ;;  %v3531_v55 = vphi %v3938_v55, %v5434_v55   ;;  %v3527_v46 = vphi %v3940_v46, %v5433_v46   ;;  %v3523_v56 = vphi %v3944_v56, %v5432_v56   ;;  %v3519_v11 = vphi %v3946_v11, %v5431_v11   ;;  %v3515_v50 = vphi %v3950_v50, %v5430_v50   ;;  %v3511_v38 = vphi %v3952_v38, %v5429_v38   ;;  %v3507_v45 = vphi %v303_v45, %v5428_v45   ;;  %v3503_v6 = vphi %v306_v6, %v5427_v6   ;;  %v3499_v3 = vphi %v309_v3, %v475_v3   ;;  %v3495_v24 = vphi %v312_v24, %v476_v24   ;;  %v3491_v51 = vphi %v315_v51, %v477_v51   ;;  %v3487_v4 = vphi %v318_v4, %v478_v4   ;;  %v3483_v49 = vphi %v321_v49, %v479_v49   ;;  %v3479_v7 = vphi %v324_v7, %v480_v7   ;;  %v3475_v33 = vphi %v3893_v33, %v481_v33   ;;  %v3471_v42 = vphi %v3905_v42, %v482_v42   ;;  %v3467_v37 = vphi %v3895_v37, %v483_v37   ;;  %v3463_v53 = vphi %v3907_v53, %v484_v53   ;;  %v3459_v47 = vphi %v3919_v47, %v485_v47   ;;  %v3455_v40 = vphi %v3917_v40, %v486_v40  }
 0x180   : > { %v3557_v54 = vmov 0.0   ;;  %v359_v5 = vadd.f32 %v3483_v49, %v3531_v55  ;;  %v365_v20 = vadd.f32 %v3459_v47, %v3507_v45  ;;  %p4273_p10 = scmp.ge.s32.totalorder %s330_s1, 30  }
 0x181   : > { %v4140_v57 = vmul.f32 0.5, %v355_v2  ;;  %v4144_v48 = vmul.f32 0.5, %v357_v63  ;;  %v4148_v1 = vmul.f32 0.5, %v356_v39  ;;  %v4157_v63 = vmul.f32 0.5, %v358_v0  ;;  %s3561_s2 = smov (%p4273_p10), 0.0  }
 0x182   : > { %v4165_v23 = vmul.f32 0.5, %v359_v5  ;;  %v360_v0 = vadd.f32 %v3479_v7, %v3527_v46  ;;  %v362_v5 = vadd.f32 %v3471_v42, %v3519_v11  ;;  %2669 = sst [smem:[#allocation12 + $0x5]] (%p4273_p10), %s3561_s2 }
 0x183   : > { %vm379_vm2 = vcmp.ge.f32.partialorder %v3739_v25, %v4140_v57  ;;  %vm381_vm3 = vcmp.ge.f32.partialorder %v3741_v26, %v4144_v48  ;;  %vm380_vm4 = vcmp.ge.f32.partialorder %v3751_v29, %v4148_v1  ;;  %vm382_vm5 = vcmp.ge.f32.partialorder %v3753_v30, %v4157_v63  ;;  %2671 = sst [smem:[#allocation12 + $0x6]] (%p4273_p10), %s3561_s2 }
 0x184   : > { %v2766_v58 = vsel %vm379_vm2, 1.0, %v3557_v54  ;;  %v2768_v52 = vsel %vm381_vm3, 1.0, %v3557_v54  ;;  %v2767_v44 = vsel %vm380_vm4, 1.0, %v3557_v54  ;;  %vm383_vm6 = vcmp.ge.f32.partialorder %v3771_v41, %v4165_v23  ;;  %2673 = sst [smem:[#allocation12 + $0x7]] (%p4273_p10), %s3561_s2 }
 0x185   : > { %v415_v2 = vsel %vm101_vm0, %v2766_v58, 0.0  ;;  %v421_v39 = vsel %vm101_vm0, %v2768_v52, 0.0  ;;  %v418_v35 = vsel %vm101_vm0, %v2767_v44, 0.0  ;;  %v2769_v58 = vsel %vm382_vm5, 1.0, %v3557_v54 }
 0x186   : > { %416 = vadd.xlane.f32.xlu0 %v415_v2  ;;  %422 = vadd.xlane.f32.xlu1 %v421_v39  ;;  %v424_v2 = vsel %vm101_vm0, %v2769_v58, 0.0  ;;  %v4172_v52 = vmul.f32 0.5, %v360_v0  ;;  %v2770_v39 = vsel %vm383_vm6, 1.0, %v3557_v54  ;;  %v361_v44 = vadd.f32 %v3475_v33, %v3523_v56 }
 0x187   : > { %v427_v10 = vsel %vm101_vm0, %v2770_v39, 0.0  ;;  %v4184_v22 = vmul.f32 0.5, %v362_v5 }
 0x188   : > { %vm384_vm7 = vcmp.ge.f32.partialorder %v3761_v34, %v4172_v52 }
 0x189   : > { %v2771_v58 = vsel %vm384_vm7, 1.0, %v3557_v54  ;;  %vm386_vm9 = vcmp.ge.f32.partialorder %v3856_v32, %v4184_v22 }
 0x18a   : > { %419 = vadd.xlane.f32.xlu0 %v418_v35  ;;  %425 = vadd.xlane.f32.xlu1 %v424_v2  ;;  %v4181_v35 = vmul.f32 0.5, %v361_v44  ;;  %v430_v0 = vsel %vm101_vm0, %v2771_v58, 0.0  ;;  %v363_v2 = vadd.f32 %v3467_v37, %v3515_v50  ;;  %v2773_v44 = vsel %vm386_vm9, 1.0, %v3557_v54 }
 0x18b   : > { %v436_v5 = vsel %vm101_vm0, %v2773_v44, 0.0 }
 0x18c   : > { %vm385_vm8 = vcmp.ge.f32.partialorder %v3850_v9, %v4181_v35  ;;  %v375_v21 = vmul.f32 0.5, %v363_v2  ;;  %v366_v2 = vadd.f32 %v3455_v40, %v3503_v6 }
 0x18d   : > { %v2772_v39 = vsel %vm385_vm8, 1.0, %v3557_v54 }
 0x18e   : > { %428 = vadd.xlane.f32.xlu0 %v427_v10  ;;  %431 = vadd.xlane.f32.xlu1 %v430_v0  ;;  %v433_v59 = vsel %vm101_vm0, %v2772_v39, 0.0  ;;  %v364_v10 = vadd.f32 %v3463_v53, %v3511_v38  ;;  %vm387_vm10 = vcmp.ge.f32.partialorder %v3852_v8, %v375_v21 }
 0x18f   : > { %v2774_v0 = vsel %vm387_vm10, 1.0, %v3557_v54 }
 0x190   : > { %v376_v58 = vmul.f32 0.5, %v364_v10  ;;  %v439_v17 = vsel %vm101_vm0, %v2774_v0, 0.0 }
 0x192   : > { %434 = vadd.xlane.f32.xlu0 %v433_v59  ;;  %437 = vadd.xlane.f32.xlu1 %v436_v5  ;;  %vm388_vm11 = vcmp.ge.f32.partialorder %v3863_v61, %v376_v58  ;;  %v377_v59 = vmul.f32 0.5, %v365_v20  ;;  %v378_v5 = vmul.f32 0.5, %v366_v2 }
 0x193   : > { %v2775_v39 = vsel %vm388_vm11, 1.0, %v3557_v54 }
 0x194   : > { %v442_v44 = vsel %vm101_vm0, %v2775_v39, 0.0  ;;  %vm389_vm12 = vcmp.ge.f32.partialorder %v3873_v60, %v377_v59  ;;  %vm390_vm13 = vcmp.ge.f32.partialorder %v3871_v31, %v378_v5  ;;  %v3558_v39 = vmov (%p4273_p10), 0  }
 0x195   : > { %v2776_v10 = vsel %vm389_vm12, 1.0, %v3557_v54  ;;  %v2777_v0 = vsel %vm390_vm13, 1.0, %v3557_v54  ;;  %3146 = vset.pattern.permute.xlu1 (%p4273_p10), %v3558_v39  ;;  %3145 = vset.pattern.permute.xlu0 (%p4273_p10), %v3558_v39  ;;  %vm3560_vm12 = vmmov (%p4273_p10), 0   ;;  %vm1465_vm13 = vcmask (%p4273_p10), 261120  }
 0x196   : > { %440 = vadd.xlane.f32.xlu0 %v439_v17  ;;  %443 = vadd.xlane.f32.xlu1 %v442_v44  ;;  %v445_v16 = vsel %vm101_vm0, %v2776_v10, 0.0  ;;  %v448_v62 = vsel %vm101_vm0, %v2777_v0, 0.0  ;;  %v1589_v44 = vld [vmem:[#allocation4 + $0x8] sm:$0xff] (%p4273_p10)  ;;  %v1592_v10 = vld [vmem:[#allocation4 + $0x20] sm:$0xff] (%p4273_p10)  ;;  %v1643_v0 = vld [vmem:[#allocation5 + $0x8] sm:$0xff] (%p4273_p10) }
 0x19a   : > { %446 = vadd.xlane.f32.xlu0 %v445_v16  ;;  %449 = vadd.xlane.f32.xlu1 %v448_v62 }
 0x20f   : > { %v417_v15 = vpop.xlane.xlu0 %416  ;;  %v423_v17 = vpop.xlane.xlu1 %422 }
 0x210   : > { %vm451_vm14 = vcmp.ge.f32.partialorder %v417_v15, 2.0  ;;  %vm453_vm15 = vcmp.ge.f32.partialorder %v423_v17, 2.0  ;;  %v1642_v17 = vld [vmem:[#allocation5] sm:$0xff] (%p4273_p10) }
 0x211   : > { %v4210_v36 = vsel %vm451_vm14, %v4140_v57, %v3547_v36   ;;  %v475_v3 = vsel %vm451_vm14, %v3499_v3, %v4140_v57   ;;  %v4216_v28 = vsel %vm453_vm15, %v4144_v48, %v3539_v28   ;;  %v477_v51 = vsel %vm453_vm15, %v3491_v51, %v4144_v48  }
 0x212   : > { %v5414_v20 = vmov %v4210_v36  ;;  %v5415_v2 = vmov %v4216_v28  ;;  %v1644_v3 = vld [vmem:[#allocation5 + $0x10] sm:$0xff] (%p4273_p10)  ;;  %vm1472_vm14 = vcmask (%p4273_p10), 253952  }
 0x213   : > { %v420_v16 = vpop.xlane.xlu0 %419  ;;  %v426_v54 = vpop.xlane.xlu1 %425  ;;  %vm487_vm15 = vcmp.gt.f32.partialorder (%p4273_p10), %v3739_v25, %v5414_v20 }
 0x214   : > { %vm452_vm2 = vcmp.ge.f32.partialorder %v420_v16, 2.0  ;;  %vm454_vm3 = vcmp.ge.f32.partialorder %v426_v54, 2.0  ;;  %v1645_v16 = vld [vmem:[#allocation5 + $0x18] sm:$0xff] (%p4273_p10) }
 0x215   : > { %v4222_v27 = vsel %vm452_vm2, %v4148_v1, %v3543_v27   ;;  %v476_v24 = vsel %vm452_vm2, %v3495_v24, %v4148_v1   ;;  %v4228_v43 = vsel %vm454_vm3, %v4157_v63, %v3535_v43   ;;  %v478_v4 = vsel %vm454_vm3, %v3487_v4, %v4157_v63   ;;  %v4406_v54 = vld [vmem:[%s5317_s8 + $0x38] sm:$0xff] (%p4273_p10) }
 0x216   : > { %v5416_v15 = vmov %v4222_v27  ;;  %v5417_v62 = vmov %v4228_v43 }
 0x217   : > { %v429_v36 = vpop.xlane.xlu0 %428  ;;  %v432_v28 = vpop.xlane.xlu1 %431  ;;  %vm488_vm3 = vcmp.gt.f32.partialorder (%p4273_p10), %v3751_v29, %v5416_v15 }
 0x218   : > { %vm455_vm4 = vcmp.ge.f32.partialorder %v429_v36, 2.0  ;;  %vm456_vm5 = vcmp.ge.f32.partialorder %v432_v28, 2.0  ;;  %v5436_v28 = vmov %v5415_v2  ;;  %v5438_v36 = vmov %v5414_v20 }
 0x219   : > { %v4234_v55 = vsel %vm455_vm4, %v4165_v23, %v3531_v55   ;;  %v479_v49 = vsel %vm455_vm4, %v3483_v49, %v4165_v23   ;;  %v4240_v46 = vsel %vm456_vm5, %v4172_v52, %v3527_v46   ;;  %v480_v7 = vsel %vm456_vm5, %v3479_v7, %v4172_v52   ;;  %v4411_v36 = vld [vmem:[%s5317_s8 + $0x48] sm:$0xff] (%p4273_p10) }
 0x21a   : > { %v5418_v57 = vmov %v4234_v55  ;;  %v5419_v1 = vmov %v4240_v46  ;;  %v4401_v7 = vld [vmem:[%s5317_s8 + $0x20] sm:$0xff] (%p4273_p10)  ;;  %vm489_vm5 = vcmp.gt.f32.partialorder (%p4273_p10), %v3741_v26, %v5415_v2 }
 0x21b   : > { %v435_v27 = vpop.xlane.xlu0 %434  ;;  %v438_v43 = vpop.xlane.xlu1 %437 }
 0x21c   : > { %vm457_vm6 = vcmp.ge.f32.partialorder %v435_v27, 2.0  ;;  %vm458_vm7 = vcmp.ge.f32.partialorder %v438_v43, 2.0  ;;  %v5435_v43 = vmov %v5417_v62  ;;  %v5437_v27 = vmov %v5416_v15 }
 0x21d   : > { %v4246_v56 = vsel %vm457_vm6, %v4181_v35, %v3523_v56   ;;  %v481_v33 = vsel %vm457_vm6, %v3475_v33, %v4181_v35   ;;  %v4252_v11 = vsel %vm458_vm7, %v4184_v22, %v3519_v11   ;;  %v482_v42 = vsel %vm458_vm7, %v3471_v42, %v4184_v22  }
 0x21e   : > { %v5420_v48 = vmov %v4246_v56  ;;  %v5421_v23 = vmov %v4252_v11  ;;  %v1647_v33 = vld [vmem:[#allocation5 + $0x28] sm:$0xff] (%p4273_p10)  ;;  %v1687_v42 = vld [vmem:[%s5317_s8 + $0x18] sm:$0xff] (%p4273_p10)  ;;  %v2177_v27 = vsel (%p4273_p10), %vm1465_vm13, %v4401_v7, 0.0  ;;  %v2187_v43 = vsel (%p4273_p10), %vm1465_vm13, %v4406_v54, 0.0 }
 0x21f   : > { %v441_v55 = vpop.xlane.xlu0 %440  ;;  %v444_v46 = vpop.xlane.xlu1 %443  ;;  %v2169_v51 = vsel (%p4273_p10), %vm1465_vm13, %v1687_v42, 0.0  ;;  %vm493_vm2 = vcmp.gt.f32.partialorder (%p4273_p10), %v3850_v9, %v5420_v48  ;;  %vm494_vm4 = vcmp.gt.f32.partialorder (%p4273_p10), %v3856_v32, %v5421_v23  ;;  %vm490_vm7 = vcmp.gt.f32.partialorder (%p4273_p10), %v3753_v30, %v5417_v62 }
 0x220   : > { %vm459_vm8 = vcmp.ge.f32.partialorder %v441_v55, 2.0  ;;  %vm460_vm9 = vcmp.ge.f32.partialorder %v444_v46, 2.0  ;;  %v5433_v46 = vmov %v5419_v1  ;;  %v5434_v55 = vmov %v5418_v57 }
 0x221   : > { %v4257_v50 = vsel %vm459_vm8, %v375_v21, %v3515_v50   ;;  %v483_v37 = vsel %vm459_vm8, %v3467_v37, %v375_v21   ;;  %v4261_v38 = vsel %vm460_vm9, %v376_v58, %v3511_v38   ;;  %v484_v53 = vsel %vm460_vm9, %v3463_v53, %v376_v58   ;;  %v1590_v21 = vld [vmem:[#allocation4 + $0x10] sm:$0xff] (%p4273_p10)  ;;  %v1588_v58 = vld [vmem:[#allocation4] sm:$0xff] (%p4273_p10) }
 0x222   : > { %v5422_v63 = vmov %v4257_v50  ;;  %v5423_v52 = vmov %v4261_v38  ;;  %1606 = vperm.xlu1 (%p4273_p10), %3146, %v1590_v21   ;;  %1596 = vperm.xlu0 (%p4273_p10), %3145, %v1588_v58   ;;  %v1646_v37 = vld [vmem:[#allocation5 + $0x20] sm:$0xff] (%p4273_p10)  ;;  %v1686_v53 = vld [vmem:[%s5317_s8 + $0x10] sm:$0xff] (%p4273_p10)  ;;  %v2196_v55 = vsel (%p4273_p10), %vm1465_vm13, %v4411_v36, 0.0  ;;  %vm491_vm9 = vcmp.gt.f32.partialorder (%p4273_p10), %v3771_v41, %v5418_v57 }
 0x223   : > { %v447_v56 = vpop.xlane.xlu0 %446  ;;  %v450_v11 = vpop.xlane.xlu1 %449  ;;  %v5429_v38 = vmov %v5423_v52  ;;  %v5430_v50 = vmov %v5422_v63  ;;  %329 = sbr.rel (!%p4273_p10) target bundleno = 383 (0x17f), region = 105  ;;  %v2168_v49 = vsel (%p4273_p10), %vm1465_vm13, %v1686_v53, 0.0  ;;  %v4422_v46 = vld [vmem:[%s5317_s8 + $0x30] sm:$0xff] (%p4273_p10)  ;;  %vm495_vm6 = vcmp.gt.f32.partialorder (%p4273_p10), %v3852_v8, %v5422_v63 }
 0x224   : > { %vm461_vm10 = vcmp.ge.f32.partialorder %v447_v56, 2.0  ;;  %vm462_vm11 = vcmp.ge.f32.partialorder %v450_v11, 2.0  ;;  %v5431_v11 = vmov %v5421_v23  ;;  %v5432_v56 = vmov %v5420_v48  ;;  %v1684_v50 = vld [vmem:[%s5317_s8] sm:$0xff] (%p4273_p10)  ;;  %v4379_v38 = vld [vmem:[%s5317_s8 + $0x28] sm:$0xff] (%p4273_p10) }
 0x225   : > { %v4265_v45 = vsel %vm461_vm10, %v377_v59, %v3507_v45   ;;  %v485_v47 = vsel %vm461_vm10, %v3459_v47, %v377_v59   ;;  %v4269_v6 = vsel %vm462_vm11, %v378_v5, %v3503_v6   ;;  %v486_v40 = vsel %vm462_vm11, %v3455_v40, %v378_v5   ;;  %v1591_v59 = vld [vmem:[#allocation4 + $0x18] sm:$0xff] (%p4273_p10)  ;;  %v1593_v5 = vld [vmem:[#allocation4 + $0x28] sm:$0xff] (%p4273_p10) }
 0x226   : > { %v5424_v22 = vmov %v4265_v45  ;;  %v5425_v35 = vmov %v4269_v6  ;;  %1611 = vperm.xlu1 (%p4273_p10), %3146, %v1591_v59   ;;  %1601 = vperm.xlu0 (%p4273_p10), %3145, %v1589_v44   ;;  %v2159_v47 = vsel (%p4273_p10), %vm1465_vm13, %v1684_v50, 0.0  ;;  %v2178_v4 = vsel (%p4273_p10), %vm1465_vm13, %v4379_v38, 0.0  ;;  %v4427_v56 = vld [vmem:[%s5317_s8 + $0x40] sm:$0xff] (%p4273_p10) }
 0x227   : > { %v5427_v6 = vmov %v5425_v35  ;;  %v5428_v45 = vmov %v5424_v22  ;;  %v2170_v28 = vadd.f32 (%p4273_p10), %v2169_v51, %v2168_v49  ;;  %v2179_v21 = vadd.f32 (%p4273_p10), %v2178_v4, %v2177_v27 }
 0x228   :  { %v5364_v6 = vmov 0.0   ;;  %v1685_v45 = vld [vmem:[%s5317_s8 + $0x8] sm:$0xff]  ;;  %v2186_v58 = vsel %vm1465_vm13, %v4422_v46, 0.0  ;;  %v2195_v39 = vsel %vm1465_vm13, %v4427_v56, 0.0  ;;  %vm496_vm8 = vcmp.gt.f32.partialorder %v3863_v61, %v5423_v52 }
 0x229   :  { %2833 = vmatprep.subr.mxu0 %v5364_v6  ;;  %2840 = vmatprep.subr.mxu1 %v5364_v6  ;;  %1466 = vst.msk [vmem:[#allocation2] sm:$0xff] %vm1465_vm13, %v5364_v6  ;;  %1467 = vst.msk [vmem:[#allocation2 + $0x8] sm:$0xff] %vm1465_vm13, %v5364_v6  ;;  %v2160_v40 = vsel %vm1465_vm13, %v1685_v45, 0.0  ;;  %v2171_v59 = vrot.slane %v2170_v28, 4  ;;  %v2188_v44 = vadd.f32 %v2187_v43, %v2186_v58 }
 0x22a   :  { %1621 = vperm.xlu1 %3146, %v1593_v5   ;;  %1616 = vperm.xlu0 %3145, %v1592_v10   ;;  %1468 = vst.msk [vmem:[#allocation2 + $0x10] sm:$0xff] %vm1465_vm13, %v5364_v6  ;;  %1469 = vst.msk [vmem:[#allocation2 + $0x18] sm:$0xff] %vm1465_vm13, %v5364_v6  ;;  %v2161_v24 = vadd.f32 %v2160_v40, %v2159_v47  ;;  %v2197_v5 = vadd.f32 %v2196_v55, %v2195_v39  ;;  %v4436_v10 = vld [vmem:[%s5317_s8 + $0x58] sm:$0xff] }
 0x22b   :  { %2834 = vmatpush3.msra.mxu0 %v1685_v45  ;;  %2837 = vmatprep.mubr.msk.f32.mxu0 %vm3560_vm12, %v5364_v6  ;;  %1470 = vst.msk [vmem:[#allocation2 + $0x20] sm:$0xff] %vm1465_vm13, %v5364_v6  ;;  %1471 = vst.msk [vmem:[#allocation2 + $0x28] sm:$0xff] %vm1465_vm13, %v5364_v6  ;;  %v2189_v45 = vrot.slane %v2188_v44, 4  ;;  %vm497_vm10 = vcmp.gt.f32.partialorder %v3873_v60, %v5424_v22  ;;  %vm492_vm11 = vcmp.gt.f32.partialorder %v3761_v34, %v5419_v1 }
 0x22c   :  { %2835 = vmatprep.subr.mxu0 %v5364_v6  ;;  %2841 = vmatpush3.msra.mxu1 %v1687_v42  ;;  %1473 = vst.msk [vmem:[#allocation3] sm:$0x1] %vm1472_vm14, %v5364_v6  ;;  %1474 = vst.msk [vmem:[#allocation3 + $0x1] sm:$0x1] %vm1472_vm14, %v5364_v6  ;;  %v2162_v11 = vrot.slane %v2161_v24, 4 }
 0x22d   :  { %2836 = vmatpush3.msra.mxu0 %v1684_v50  ;;  %2842 = vmatprep.subr.mxu1 %v5364_v6  ;;  %1475 = vst.msk [vmem:[#allocation3 + $0x2] sm:$0x1] %vm1472_vm14, %v5364_v6  ;;  %1476 = vst.msk [vmem:[#allocation3 + $0x3] sm:$0x1] %vm1472_vm14, %v5364_v6  ;;  %v2198_v50 = vrot.slane %v2197_v5, 4  ;;  %v2190_v47 = vadd.f32 %v2189_v45, %v2188_v44 }
 0x22e   :  { %1655 = vperm.xlu1 %3146, %v1643_v0   ;;  %1650 = vperm.xlu0 %3145, %v1642_v17   ;;  %1477 = vst.msk [vmem:[#allocation3 + $0x4] sm:$0x1] %vm1472_vm14, %v5364_v6  ;;  %1478 = vst.msk [vmem:[#allocation3 + $0x5] sm:$0x1] %vm1472_vm14, %v5364_v6  ;;  %v2163_v0 = vadd.f32 %v2162_v11, %v2161_v24  ;;  %v2180_v17 = vrot.slane %v2179_v21, 4 }
 0x22f   :  { %2847 = vmatprep.subr.mxu0 %v5364_v6  ;;  %2843 = vmatpush3.msra.mxu1 %v1686_v53  ;;  %v2199_v24 = vadd.f32 %v2198_v50, %v2197_v5 }
 0x230   :  { %2844 = vmatprep.mubr.msk.f32.mxu1 %vm3560_vm12, %v5364_v6  ;;  %2854 = vmatprep.subr.mxu1 %v5364_v6  ;;  %v2181_v42 = vadd.f32 %v2180_v17, %v2179_v21 }
 0x231   :  { %v2200_v43 = vrot.slane %v2199_v24, 2 }
 0x232   :  { %1665 = vperm.xlu1 %3146, %v1645_v16   ;;  %1660 = vperm.xlu0 %3145, %v1644_v3   ;;  %v2205_v16 = vsel %vm1465_vm13, %v4436_v10, 0.0  ;;  %v2172_v3 = vadd.f32 %v2171_v59, %v2170_v28  ;;  %v2182_v49 = vrot.slane %v2181_v42, 2  ;;  %v2191_v28 = vrot.slane %v2190_v47, 2 }
 0x233   :  { %v2153_v39 = vld [vmem:[#allocation3] sm:$0x1]  ;;  %v2201_v14 = vadd.f32 %v2200_v43, %v2199_v24  ;;  %v2154_v17 = vld [vmem:[#allocation3 + $0x1] sm:$0x1] }
 0x234   :  { %v2173_v40 = vrot.slane %v2172_v3, 2  ;;  %v2183_v11 = vadd.f32 %v2182_v49, %v2181_v42  ;;  %v2192_v6 = vadd.f32 %v2191_v28, %v2190_v47  ;;  %v2155_v44 = vld [vmem:[#allocation3 + $0x2] sm:$0x1] }
 0x235   :  { %v2157_v50 = vld [vmem:[#allocation3 + $0x4] sm:$0x1] }
 0x236   :  { %1675 = vperm.xlu1 %3146, %v1647_v33   ;;  %1670 = vperm.xlu0 %3145, %v1646_v37   ;;  %v4443_v33 = vld [vmem:[%s5317_s8 + $0x50] sm:$0xff]  ;;  %v2164_v37 = vrot.slane %v2163_v0, 2  ;;  %v2174_v27 = vadd.f32 %v2173_v40, %v2172_v3  ;;  %v2184_v19 = vrot.slane %v2183_v11, 1  ;;  %v2193_v5 = vrot.slane %v2192_v6, 1 }
 0x237   :  { %v2204_v53 = vsel %vm1465_vm13, %v4443_v33, 0.0  ;;  %v2156_v3 = vld [vmem:[#allocation3 + $0x3] sm:$0x1] }
 0x238   :  { %v2206_v51 = vadd.f32 %v2205_v16, %v2204_v53  ;;  %v2165_v4 = vadd.f32 %v2164_v37, %v2163_v0  ;;  %v2175_v59 = vrot.slane %v2174_v27, 1  ;;  %v2202_v16 = vrot.slane %v2201_v14, 1 }
 0x239   :  { %v2185_v45 = vadd.f32 %v2184_v19, %v2183_v11  ;;  %v2194_v42 = vadd.f32 %v2193_v5, %v2192_v6  ;;  %v5439_v19 = vmov 0.0  }
 0x23a   :  { %v2166_v55 = vrot.slane %v2165_v4, 1  ;;  %v2207_v58 = vrot.slane %v2206_v51, 4  ;;  %v2176_v13 = vadd.f32 %v2175_v59, %v2174_v27  ;;  %v2203_v40 = vadd.f32 %v2202_v16, %v2201_v14 }
 0x23b   :  { %v2215_v47 = vadd.f32 %v2185_v45, %v2155_v44  ;;  %v2784_v28 = vsel %vm493_vm2, 1.0, %v5439_v19  ;;  %v2779_v43 = vsel %vm488_vm3, 1.0, %v5439_v19  ;;  %v2781_v44 = vsel %vm490_vm7, 1.0, %v5439_v19 }
 0x23c   :  { %v2167_v21 = vadd.f32 %v2166_v55, %v2165_v4  ;;  %v2208_v18 = vadd.f32 %v2207_v58, %v2206_v51  ;;  %v2214_v53 = vadd.f32 %v2176_v13, %v2154_v17  ;;  %v2216_v4 = vadd.f32 %v2194_v42, %v2156_v3  ;;  %v2158_v13 = vld [vmem:[#allocation3 + $0x5] sm:$0x1] }
 0x23d   :  { %v2217_v51 = vadd.f32 %v2203_v40, %v2157_v50  ;;  %2222 = vst.msk [vmem:[#allocation3 + $0x2] sm:$0x1] %vm1472_vm14, %v2215_v47  ;;  %v541_v55 = vsel %vm101_vm0, %v2784_v28, 0.0  ;;  %v526_v11 = vsel %vm101_vm0, %v2779_v43, 0.0  ;;  %v2785_v58 = vsel %vm494_vm4, 1.0, %v5439_v19  ;;  %v4568_v43 = vld [vmem:[#allocation10] sm:$0xff] }
 0x23e   :  { %v2213_v0 = vadd.f32 %v2167_v21, %v2153_v39  ;;  %v2209_v37 = vrot.slane %v2208_v18, 2  ;;  %2221 = vst.msk [vmem:[#allocation3 + $0x1] sm:$0x1] %vm1472_vm14, %v2214_v53  ;;  %2223 = vst.msk [vmem:[#allocation3 + $0x3] sm:$0x1] %vm1472_vm14, %v2216_v4  ;;  %v2780_v39 = vsel %vm489_vm5, 1.0, %v5439_v19 }
 0x23f   :  { %2224 = vst.msk [vmem:[#allocation3 + $0x4] sm:$0x1] %vm1472_vm14, %v2217_v51  ;;  %v544_v59 = vsel %vm101_vm0, %v2785_v58, 0.0  ;;  %v529_v21 = vsel %vm101_vm0, %v2780_v39, 0.0  ;;  %v2786_v17 = vsel %vm495_vm6, 1.0, %v5439_v19  ;;  %v532_v16 = vsel %vm101_vm0, %v2781_v44, 0.0 }
 0x240   :  { %2220 = vst.msk [vmem:[#allocation3] sm:$0x1] %vm1472_vm14, %v2213_v0  ;;  %v2210_v24 = vadd.f32 %v2209_v37, %v2208_v18  ;;  %v2778_v18 = vsel %vm487_vm15, 1.0, %v5439_v19  ;;  %v547_v5 = vsel %vm101_vm0, %v2786_v17, 0.0  ;;  %v2787_v0 = vsel %vm496_vm8, 1.0, %v5439_v19 }
 0x241   :  { %v523_v27 = vsel %vm101_vm0, %v2778_v18, 0.0  ;;  %v559_v45 = vsel %vm487_vm15, %v3739_v25, 0.0  ;;  %v550_v3 = vsel %vm101_vm0, %v2787_v0, 0.0  ;;  %v560_v37 = vsel %vm488_vm3, %v3751_v29, 0.0 }
 0x242   :  { %v2211_v49 = vrot.slane %v2210_v24, 1  ;;  %v571_v50 = vsel %vm101_vm0, %v559_v45, 0.0  ;;  %v565_v53 = vsel %vm493_vm2, %v3850_v9, 0.0  ;;  %v574_v42 = vsel %vm101_vm0, %v560_v37, 0.0 }
 0x243   :  { %v589_v40 = vsel %vm101_vm0, %v565_v53, 0.0  ;;  %v566_v47 = vsel %vm494_vm4, %v3856_v32, 0.0  ;;  %v2788_v51 = vsel %vm497_vm10, 1.0, %v5439_v19  ;;  %v561_v32 = vsel %vm489_vm5, %v3741_v26, 0.0  ;;  %v4602_v53 = vld [vmem:[#allocation10 + $0x20] sm:$0xff] }
 0x244   :  { %v2212_v14 = vadd.f32 %v2211_v49, %v2210_v24  ;;  %v2782_v24 = vsel %vm491_vm9, 1.0, %v5439_v19  ;;  %v592_v9 = vsel %vm101_vm0, %v566_v47, 0.0  ;;  %v553_v49 = vsel %vm101_vm0, %v2788_v51, 0.0 }
 0x245   :  { %v535_v4 = vsel %vm101_vm0, %v2782_v24, 0.0  ;;  %v2783_v18 = vsel %vm492_vm11, 1.0, %v5439_v19  ;;  %v1492_v39 = vsel %vm101_vm0, %v4568_v43, inf  ;;  %v568_v44 = vsel %vm496_vm8, %v3863_v61, 0.0  ;;  %v4608_v24 = vld [vmem:[#allocation10 + $0x28] sm:$0xff] }
 0x246   :  { %v2218_v6 = vadd.f32 %v2212_v14, %v2158_v13  ;;  %v577_v13 = vsel %vm101_vm0, %v561_v32, 0.0  ;;  %v567_v14 = vsel %vm495_vm6, %v3852_v8, 0.0  ;;  %v538_v28 = vsel %vm101_vm0, %v2783_v18, 0.0 }
 0x247   :  { %v1493_v0 = vrot.slane %v1492_v39, 4  ;;  %v569_v61 = vsel %vm497_vm10, %v3873_v60, 0.0  ;;  %v1520_v60 = vsel %vm101_vm0, %v4602_v53, inf }
 0x248   :  { %2225 = vst.msk [vmem:[#allocation3 + $0x5] sm:$0x1] %vm1472_vm14, %v2218_v6  ;;  %vm498_vm14 = vcmp.gt.f32.partialorder %v3871_v31, %v5425_v35  ;;  %v595_v6 = vsel %vm101_vm0, %v567_v14, 0.0  ;;  %v601_v51 = vsel %vm101_vm0, %v569_v61, 0.0 }
 0x249   :  { %v2789_v8 = vsel %vm498_vm14, 1.0, %v5439_v19 }
 0x24a   :  { %v556_v58 = vsel %vm101_vm0, %v2789_v8, 0.0  ;;  %v1521_v8 = vrot.slane %v1520_v60, 4 }
 0x255   :  { %524 = vadd.xlane.f32.xlu0 %v523_v27  ;;  %v4561_v27 = vld [vmem:[#allocation10 + $0x10] sm:$0xff] }
 0x259   :  { %542 = vadd.xlane.f32.xlu0 %v541_v55  ;;  %v562_v55 = vsel %vm490_vm7, %v3753_v30, 0.0 }
 0x25a   :  { %527 = vadd.xlane.f32.xlu1 %v526_v11  ;;  %v1506_v11 = vsel %vm101_vm0, %v4561_v27, inf  ;;  %v580_v17 = vsel %vm101_vm0, %v562_v55, 0.0 }
 0x25d   :  { %545 = vadd.xlane.f32.xlu0 %v544_v59  ;;  %v4579_v59 = vld [vmem:[#allocation10 + $0x18] sm:$0xff] }
 0x25e   :  { %530 = vadd.xlane.f32.xlu1 %v529_v21  ;;  %v4581_v21 = vld [vmem:[#allocation10 + $0x8] sm:$0xff]  ;;  %v1513_v45 = vsel %vm101_vm0, %v4579_v59, inf }
 0x261   :  { %548 = vadd.xlane.f32.xlu0 %v547_v5  ;;  %v563_v5 = vsel %vm491_vm9, %v3771_v41, 0.0 }
 0x262   :  { %533 = vadd.xlane.f32.xlu1 %v532_v16  ;;  %v1507_v16 = vrot.slane %v1506_v11, 4  ;;  %v583_v37 = vsel %vm101_vm0, %v563_v5, 0.0  ;;  %v1522_v5 = vmin.f32 %v1520_v60, %v1521_v8 }
 0x265   :  { %551 = vadd.xlane.f32.xlu0 %v550_v3  ;;  %v1499_v3 = vsel %vm101_vm0, %v4581_v21, inf }
 0x266   :  { %572 = vadd.xlane.f32.xlu1 %v571_v50  ;;  %v598_v50 = vsel %vm101_vm0, %v568_v44, 0.0  ;;  %v1500_v47 = vrot.slane %v1499_v3, 4 }
 0x268   :  { %v1501_v18 = vmin.f32 %v1499_v3, %v1500_v47  ;;  %v1523_v3 = vrot.slane %v1522_v5, 2 }
 0x269   :  { %575 = vadd.xlane.f32.xlu0 %v574_v42  ;;  %v564_v42 = vsel %vm492_vm11, %v3761_v34, 0.0 }
 0x26a   :  { %590 = vadd.xlane.f32.xlu1 %v589_v40  ;;  %v1514_v40 = vrot.slane %v1513_v45, 4  ;;  %v586_v32 = vsel %vm101_vm0, %v564_v42, 0.0  ;;  %v1502_v44 = vrot.slane %v1501_v18, 2 }
 0x26c   :  { %v1515_v14 = vmin.f32 %v1513_v45, %v1514_v40  ;;  %v1503_v45 = vmin.f32 %v1501_v18, %v1502_v44 }
 0x26d   :  { %593 = vadd.xlane.f32.xlu0 %v592_v9  ;;  %v1508_v9 = vmin.f32 %v1506_v11, %v1507_v16 }
 0x26e   :  { %536 = vadd.xlane.f32.xlu1 %v535_v4  ;;  %v1494_v4 = vmin.f32 %v1492_v39, %v1493_v0  ;;  %v1504_v47 = vrot.slane %v1503_v45, 1 }
 0x271   :  { %554 = vadd.xlane.f32.xlu0 %v553_v49  ;;  %v570_v49 = vsel %vm498_vm14, %v3871_v31, 0.0 }
 0x272   :  { %578 = vadd.xlane.f32.xlu1 %v577_v13  ;;  %v1527_v13 = vsel %vm101_vm0, %v4608_v24, inf  ;;  %v604_v55 = vsel %vm101_vm0, %v570_v49, 0.0 }
 0x273   :  { %v1528_v11 = vrot.slane %v1527_v13, 4 }
 0x275   :  { %596 = vadd.xlane.f32.xlu0 %v595_v6  ;;  %v1509_v6 = vrot.slane %v1508_v9, 2  ;;  %v1529_v31 = vmin.f32 %v1527_v13, %v1528_v11  ;;  %v2792_v13 = vld [vmem:[%s5316_s7 + $0x2] ss:$0 sm:$0xff] }
 0x276   :  { %539 = vadd.xlane.f32.xlu1 %v538_v28  ;;  %v1495_v28 = vrot.slane %v1494_v4, 2 }
 0x277   :  { %v1510_v39 = vmin.f32 %v1508_v9, %v1509_v6 }
 0x279   :  { %557 = vadd.xlane.f32.xlu0 %v556_v58  ;;  %v1516_v58 = vrot.slane %v1515_v14, 2  ;;  %v1511_v0 = vrot.slane %v1510_v39, 1 }
 0x27a   :  { %581 = vadd.xlane.f32.xlu1 %v580_v17  ;;  %v1496_v17 = vmin.f32 %v1494_v4, %v1495_v28  ;;  %v1505_v4 = vmin.f32 %v1503_v45, %v1504_v47 }
 0x27b   :  { %v1517_v16 = vmin.f32 %v1515_v14, %v1516_v58  ;;  %v1512_v42 = vmin.f32 %v1510_v39, %v1511_v0  ;;  %v2790_v14 = vld [vmem:[%s5316_s7] ss:$0 sm:$0xff]  ;;  %v2791_v58 = vld [vmem:[%s5316_s7 + $0x1] ss:$0 sm:$0xff]  ;;  %v2794_v0 = vld [vmem:[%s5316_s7 + $0x4] ss:$0 sm:$0xff] }
 0x27d   :  { %599 = vadd.xlane.f32.xlu0 %v598_v50  ;;  %v1497_v50 = vrot.slane %v1496_v17, 1  ;;  %v1518_v61 = vrot.slane %v1517_v16, 1 }
 0x27e   :  { %584 = vadd.xlane.f32.xlu1 %v583_v37  ;;  %v1530_v37 = vrot.slane %v1529_v31, 2 }
 0x27f   :  { %v1498_v40 = vmin.f32 %v1496_v17, %v1497_v50  ;;  %v1519_v49 = vmin.f32 %v1517_v16, %v1518_v61 }
 0x281   :  { %602 = vadd.xlane.f32.xlu0 %v601_v51  ;;  %v1524_v51 = vmin.f32 %v1522_v5, %v1523_v3  ;;  %v1534_v9 = vsub.f32 %v4568_v43, %v1498_v40  ;;  %v1537_v6 = vsub.f32 %v4579_v59, %v1519_v49  ;;  %v1535_v43 = vsub.f32 %v4581_v21, %v1505_v4  ;;  %v2795_v21 = vld [vmem:[%s5316_s7 + $0x5] ss:$0 sm:$0xff] }
 0x282   :  { %587 = vadd.xlane.f32.xlu1 %v586_v32  ;;  %v1531_v32 = vmin.f32 %v1529_v31, %v1530_v37 }
 0x283   :  { %v1525_v60 = vrot.slane %v1524_v51, 1  ;;  %v1576_v8 = vmul.f32 %v2790_v14, %v1534_v9  ;;  %v1577_v31 = vmul.f32 %v2791_v58, %v1535_v43 }
 0x284   :  { %v1532_v18 = vrot.slane %v1531_v32, 1 }
 0x285   :  { %605 = vadd.xlane.f32.xlu0 %v604_v55  ;;  %v1536_v55 = vsub.f32 %v4561_v27, %v1512_v42  ;;  %v2793_v27 = vld [vmem:[%s5316_s7 + $0x3] ss:$0 sm:$0xff]  ;;  %v1526_v11 = vmin.f32 %v1524_v51, %v1525_v60  ;;  %v1582_v5 = vadd.f32 %v1576_v8, %v1498_v40 }
 0x286   :  { %v1533_v39 = vmin.f32 %v1531_v32, %v1532_v18  ;;  %v1579_v17 = vmul.f32 %v2793_v27, %v1537_v6 }
 0x287   :  { %v1578_v28 = vmul.f32 %v2792_v13, %v1536_v55  ;;  %v1538_v59 = vsub.f32 %v4602_v53, %v1526_v11 }
 0x288   :  { %v1539_v16 = vsub.f32 %v4608_v24, %v1533_v39  ;;  %v1585_v3 = vadd.f32 %v1579_v17, %v1519_v49 }
 0x289   :  { %v1584_v44 = vadd.f32 %v1578_v28, %v1512_v42  ;;  %v1583_v42 = vadd.f32 %v1577_v31, %v1505_v4  ;;  %v1580_v40 = vmul.f32 %v2794_v0, %v1538_v59 }
 0x28a   :  { %v1581_v47 = vmul.f32 %v2795_v21, %v1539_v16 }
 0x28b   :  { %v1586_v60 = vadd.f32 %v1580_v40, %v1526_v11 }
 0x28c   :  { %v1587_v13 = vadd.f32 %v1581_v47, %v1533_v39 }
 0x29d   :  { %v1607_v50 = vpop.permute.xlu1 %1606  ;;  %v1597_v45 = vpop.permute.xlu0 %1596 }
 0x29e   :  { %v1626_v37 = vsub.f32 %v1584_v44, %v1607_v50  ;;  %v1624_v61 = vsub.f32 %v1582_v5, %v1597_v45 }
 0x2a0   :  { %v1630_v51 = vmul.f32 1.442695, %v1624_v61  ;;  %v1634_v53 = vmul.f32 1.442695, %v1626_v37 }
 0x2a1   :  { %v1612_v32 = vpop.permute.xlu1 %1611  ;;  %v1602_v24 = vpop.permute.xlu0 %1601 }
 0x2a2   :  { %v1627_v55 = vsub.f32 %v1585_v3, %v1612_v32  ;;  %v1625_v9 = vsub.f32 %v1583_v42, %v1602_v24  ;;  %3147 = vpow2.f32 %v1630_v51 }
 0x2a3   :  { %3149 = vpow2.f32 %v1634_v53 }
 0x2a4   :  { %v1632_v14 = vmul.f32 1.442695, %v1625_v9  ;;  %v1636_v28 = vmul.f32 1.442695, %v1627_v55 }
 0x2a5   :  { %v1622_v18 = vpop.permute.xlu1 %1621  ;;  %v1617_v6 = vpop.permute.xlu0 %1616 }
 0x2a6   :  { %v1628_v49 = vsub.f32 %v1586_v60, %v1617_v6  ;;  %3151 = vpow2.f32 %v1632_v14  ;;  %v1629_v8 = vsub.f32 %v1587_v13, %v1622_v18 }
 0x2a7   :  { %3153 = vpow2.f32 %v1636_v28 }
 0x2a8   :  { %v1638_v4 = vmul.f32 1.442695, %v1628_v49  ;;  %v1640_v27 = vmul.f32 1.442695, %v1629_v8 }
 0x2a9   :  { %v1651_v43 = vpop.permute.xlu0 %1650  ;;  %v1656_v11 = vpop.permute.xlu1 %1655 }
 0x2aa   :  { %3155 = vpow2.f32 %v1638_v4 }
 0x2ab   :  { %3157 = vpow2.f32 %v1640_v27 }
 0x2ad   :  { %v1661_v5 = vpop.permute.xlu0 %1660  ;;  %v1666_v21 = vpop.permute.xlu1 %1665 }
 0x2af   :  { %v3148_v58 = vpop.eup %3147 }
 0x2b0   :  { %v1678_v17 = vmul.f32 %v3148_v58, %v1651_v43  ;;  %v3150_v44 = vpop.eup %3149 }
 0x2b1   :  { %v1680_v59 = vmul.f32 %v3150_v44, %v1661_v5  ;;  %v1671_v50 = vpop.permute.xlu0 %1670 }
 0x2b2   :  { %2838 = vmatmul.mubr.msk.f32.vlgmr.msra.gmra.mxu0 %vm101_vm0, %v1678_v17 }
 0x2b3   :  { %v3152_v39 = vpop.eup %3151  ;;  %2848 = vmatpush3.msra.mxu0 %v4379_v38  ;;  %2851 = vmatprep.mubr.msk.f32.mxu0 %vm3560_vm12, %v5439_v19 }
 0x2b4   :  { %v1679_v31 = vmul.f32 %v3152_v39, %v1656_v11  ;;  %2849 = vmatprep.subr.mxu0 %v5439_v19  ;;  %v3154_v16 = vpop.eup %3153 }
 0x2b5   :  { %2850 = vmatpush3.msra.mxu0 %v4401_v7  ;;  %v1681_v45 = vmul.f32 %v3154_v16, %v1666_v21 }
 0x2b6   :  { %2845 = vmatmul.mubr.msk.f32.vlgmr.msra.gmra.mxu1 %vm101_vm0, %v1679_v31  ;;  %2852 = vmatmul.mubr.msk.f32.vlgmr.msra.gmra.mxu0 %vm101_vm0, %v1680_v59 }
 0x2b7   :  { %v3156_v0 = vpop.eup %3155  ;;  %2861 = vmatprep.subr.mxu0 %v5439_v19  ;;  %2855 = vmatpush3.msra.mxu1 %v4406_v54  ;;  %v1676_v54 = vpop.permute.xlu1 %1675 }
 0x2b8   :  { %v1682_v38 = vmul.f32 %v3156_v0, %v1671_v50  ;;  %2862 = vmatpush3.msra.mxu0 %v4411_v36  ;;  %2856 = vmatprep.subr.mxu1 %v5439_v19  ;;  %v3158_v7 = vpop.eup %3157 }
 0x2b9   :  { %2863 = vmatprep.subr.mxu0 %v5439_v19  ;;  %2857 = vmatpush3.msra.mxu1 %v4422_v46  ;;  %v1683_v36 = vmul.f32 %v3158_v7, %v1676_v54 }
 0x2ba   :  { %2858 = vmatprep.mubr.msk.f32.mxu1 %vm3560_vm12, %v5439_v19  ;;  %2864 = vmatpush3.msra.mxu0 %v4427_v56 }
 0x2bb   :  { %2865 = vmatprep.mubr.msk.f32.mxu0 %vm3560_vm12, %v5439_v19  ;;  %2859 = vmatmul.mubr.msk.f32.vlgmr.msra.gmra.mxu1 %vm101_vm0, %v1681_v45 }
 0x2bc   :  { %2866 = vmatmul.mubr.msk.f32.vlgmr.msra.gmra.mxu0 %vm101_vm0, %v1682_v38  ;;  %2868 = vmatprep.subr.mxu1 %v5439_v19 }
 0x2bd   :  { %2869 = vmatpush3.msra.mxu1 %v4436_v10  ;;  %2872 = vmatprep.mubr.msk.f32.mxu1 %vm3560_vm12, %v5439_v19  ;;  %vm1164_vm12 = vcmask 122880  }
 0x2be   :  { %2870 = vmatprep.subr.mxu1 %v5439_v19 }
 0x2bf   :  { %2871 = vmatpush3.msra.mxu1 %v4443_v33 }
 0x2c0   :  { %2873 = vmatmul.mubr.msk.f32.vlgmr.msra.gmra.mxu1 %vm101_vm0, %v1683_v36 }
 0x2de   :  { %v525_v46 = vpop.xlane.xlu0 %524 }
 0x2df   :  { %v607_v42 = vsub.f32 2.0, %v525_v46 }
 0x2e1   :  { %v619_v10 = vmul.f32 %v607_v42, %v5414_v20 }
 0x2e2   :  { %v543_v56 = vpop.xlane.xlu0 %542 }
 0x2e3   :  { %v528_v3 = vpop.xlane.xlu1 %527  ;;  %v613_v53 = vsub.f32 2.0, %v543_v56 }
 0x2e4   :  { %v608_v47 = vsub.f32 2.0, %v528_v3 }
 0x2e5   :  { %v625_v33 = vmul.f32 %v613_v53, %v5420_v48 }
 0x2e6   :  { %v546_v37 = vpop.xlane.xlu0 %545  ;;  %v620_v24 = vmul.f32 %v608_v47, %v5416_v15 }
 0x2e7   :  { %v531_v61 = vpop.xlane.xlu1 %530  ;;  %v614_v19 = vsub.f32 2.0, %v546_v37 }
 0x2e8   :  { %v609_v28 = vsub.f32 2.0, %v531_v61 }
 0x2e9   :  { %v626_v14 = vmul.f32 %v614_v19, %v5421_v23 }
 0x2ea   :  { %v549_v40 = vpop.xlane.xlu0 %548  ;;  %v621_v48 = vmul.f32 %v609_v28, %v5415_v2  ;;  %v4683_v2 = vsel %vm252_vm1, %v3682_v12, 0.0 }
 0x2eb   :  { %v534_v51 = vpop.xlane.xlu1 %533  ;;  %v615_v58 = vsub.f32 2.0, %v549_v40 }
 0x2ec   :  { %v610_v45 = vsub.f32 2.0, %v534_v51 }
 0x2ed   :  { %v627_v0 = vmul.f32 %v615_v58, %v5422_v63 }
 0x2ee   :  { %v552_v32 = vpop.xlane.xlu0 %551  ;;  %v622_v51 = vmul.f32 %v610_v45, %v5417_v62 }
 0x2ef   :  { %v573_v55 = vpop.xlane.xlu1 %572  ;;  %v616_v3 = vsub.f32 2.0, %v552_v32 }
 0x2f0   :  { %v631_v9 = vadd.f32 %v619_v10, %v573_v55 }
 0x2f1   :  { %v628_v32 = vmul.f32 %v616_v3, %v5423_v52 }
 0x2f2   :  { %v644_v60 = vmul.f32 0.5, %v631_v9  ;;  %v576_v13 = vpop.xlane.xlu0 %575 }
 0x2f3   :  { %v632_v18 = vadd.f32 %v620_v24, %v576_v13  ;;  %v591_v6 = vpop.xlane.xlu1 %590 }
 0x2f4   :  { %v716_v49 = vrot.slane %v644_v60, 4  ;;  %v637_v8 = vadd.f32 %v625_v33, %v591_v6 }
 0x2f5   :  { %v645_v4 = vmul.f32 0.5, %v632_v18  ;;  %v657_v18 = vrot.slane %v4683_v2, 4 }
 0x2f6   :  { %v717_v20 = vmax.f32 %v644_v60, %v716_v49  ;;  %v650_v27 = vmul.f32 0.5, %v637_v8  ;;  %v594_v43 = vpop.xlane.xlu0 %593 }
 0x2f7   :  { %v722_v15 = vrot.slane %v645_v4, 4  ;;  %v638_v17 = vadd.f32 %v626_v14, %v594_v43  ;;  %v537_v44 = vpop.xlane.xlu1 %536 }
 0x2f8   :  { %v718_v11 = vrot.slane %v717_v20, 2  ;;  %v911_v5 = vrot.slane %v650_v27, 4  ;;  %v611_v10 = vsub.f32 2.0, %v537_v44 }
 0x2f9   :  { %v723_v39 = vmax.f32 %v645_v4, %v722_v15  ;;  %v651_v31 = vmul.f32 0.5, %v638_v17 }
 0x2fa   :  { %v719_v23 = vmax.f32 %v717_v20, %v718_v11  ;;  %v912_v59 = vmax.f32 %v650_v27, %v911_v5  ;;  %v4678_v16 = vpop.xlane.xlu0 %554  ;;  %v623_v62 = vmul.f32 %v611_v10, %v5418_v57 }
 0x2fb   :  { %v724_v21 = vrot.slane %v723_v39, 2  ;;  %v917_v50 = vrot.slane %v651_v31, 4  ;;  %v579_v38 = vpop.xlane.xlu1 %578  ;;  %v617_v3 = vsub.f32 2.0, %v4678_v16  ;;  %v658_v16 = vadd.f32 %v657_v18, %v4683_v2 }
 0x2fc   :  { %v720_v7 = vrot.slane %v719_v23, 1  ;;  %v913_v54 = vrot.slane %v912_v59, 2  ;;  %v633_v36 = vadd.f32 %v621_v48, %v579_v38  ;;  %v5440_v48 = vld [vmem:[#allocation28_spill] sm:$0xff] }
 0x2fd   :  { %v725_v46 = vmax.f32 %v723_v39, %v724_v21  ;;  %v918_v56 = vmax.f32 %v651_v31, %v917_v50  ;;  %v663_v11 = vsel %vm252_vm1, %v5440_v48, 0.0 }
 0x2fe   :  { %v721_v37 = vmax.f32 %v719_v23, %v720_v7  ;;  %v914_v61 = vmax.f32 %v912_v59, %v913_v54  ;;  %v646_v42 = vmul.f32 0.5, %v633_v36  ;;  %v597_v40 = vpop.xlane.xlu0 %596  ;;  %v5441_v23 = vld [vmem:[#allocation33_spill] sm:$0xff] }
 0x2ff   :  { %v726_v47 = vrot.slane %v725_v46, 1  ;;  %v919_v63 = vrot.slane %v918_v56, 2  ;;  %v639_v53 = vadd.f32 %v627_v0, %v597_v40  ;;  %v540_v24 = vpop.xlane.xlu1 %539  ;;  %v851_v57 = vsel %vm252_vm1, %v5441_v23, 0.0 }
 0x300   :  { %v915_v19 = vrot.slane %v914_v61, 1  ;;  %v728_v55 = vrot.slane %v646_v42, 4  ;;  %v4686_v33 = vsub.f32 %v644_v60, %v721_v37  ;;  %v612_v17 = vsub.f32 2.0, %v540_v24 }
 0x301   :  { %v727_v9 = vmax.f32 %v725_v46, %v726_v47  ;;  %v920_v13 = vmax.f32 %v918_v56, %v919_v63  ;;  %v4688_v14 = vmul.f32 0.5, %v639_v53 }
 0x302   :  { %v916_v6 = vmax.f32 %v914_v61, %v915_v19  ;;  %v729_v28 = vmax.f32 %v646_v42, %v728_v55  ;;  %v4692_v49 = vpop.xlane.xlu0 %557  ;;  %v758_v52 = vmul.f32 1.442695, %v4686_v33  ;;  %v624_v36 = vmul.f32 %v612_v17, %v5419_v1 }
 0x303   :  { %v4694_v8 = vsub.f32 %v645_v4, %v727_v9  ;;  %v921_v20 = vrot.slane %v920_v13, 1  ;;  %v923_v60 = vrot.slane %v4688_v14, 4  ;;  %v582_v43 = vpop.xlane.xlu1 %581  ;;  %v852_v9 = vrot.slane %v851_v57, 4 }
 0x304   :  { %v4698_v58 = vsub.f32 %v650_v27, %v916_v6  ;;  %v730_v15 = vrot.slane %v729_v28, 2  ;;  %v634_v44 = vadd.f32 %v622_v51, %v582_v43  ;;  %3159 = vpow2.f32 %v758_v52 }
 0x305   :  { %v922_v5 = vmax.f32 %v920_v13, %v921_v20  ;;  %v924_v4 = vmax.f32 %v4688_v14, %v923_v60  ;;  %v760_v39 = vmul.f32 1.442695, %v4694_v8  ;;  %v664_v51 = vrot.slane %v663_v11, 4  ;;  %v5442_v13 = vld [vmem:[#allocation34_spill] sm:$0xff] }
 0x306   :  { %v731_v59 = vmax.f32 %v729_v28, %v730_v15  ;;  %v647_v0 = vmul.f32 0.5, %v634_v44  ;;  %v600_v27 = vpop.xlane.xlu0 %599  ;;  %v953_v21 = vmul.f32 1.442695, %v4698_v58  ;;  %v629_v28 = vmul.f32 %v617_v3, %v5424_v22 }
 0x307   :  { %v4708_v50 = vsub.f32 %v651_v31, %v922_v5  ;;  %v925_v38 = vrot.slane %v924_v4, 2  ;;  %v640_v45 = vadd.f32 %v628_v32, %v600_v27  ;;  %v585_v7 = vpop.xlane.xlu1 %584  ;;  %3161 = vpow2.f32 %v760_v39 }
 0x308   :  { %v732_v54 = vrot.slane %v731_v59, 1  ;;  %v734_v46 = vrot.slane %v647_v0, 4  ;;  %v635_v56 = vadd.f32 %v623_v62, %v585_v7  ;;  %3163 = vpow2.f32 %v953_v21 }
 0x309   :  { %v926_v37 = vmax.f32 %v924_v4, %v925_v38  ;;  %v653_v61 = vmul.f32 0.5, %v640_v45  ;;  %v955_v31 = vmul.f32 1.442695, %v4708_v50  ;;  %v858_v32 = vsel %vm252_vm1, %v5442_v13, 0.0 }
 0x30a   :  { %v733_v40 = vmax.f32 %v731_v59, %v732_v54  ;;  %v735_v47 = vmax.f32 %v647_v0, %v734_v46  ;;  %v4712_v63 = vmul.f32 0.5, %v635_v56  ;;  %v603_v60 = vpop.xlane.xlu0 %602  ;;  %v618_v15 = vsub.f32 2.0, %v4692_v49 }
 0x30b   :  { %v927_v10 = vrot.slane %v926_v37, 1  ;;  %v929_v53 = vrot.slane %v653_v61, 4  ;;  %v588_v24 = vpop.xlane.xlu1 %587  ;;  %3165 = vpow2.f32 %v955_v31  ;;  %v665_v44 = vadd.f32 %v664_v51, %v663_v11 }
 0x30c   :  { %v4715_v1 = vsub.f32 %v646_v42, %v733_v40  ;;  %v736_v19 = vrot.slane %v735_v47, 2  ;;  %v636_v55 = vadd.f32 %v624_v36, %v588_v24  ;;  %v740_v62 = vrot.slane %v4712_v63, 4 }
 0x30d   :  { %v930_v6 = vmax.f32 %v653_v61, %v929_v53  ;;  %v928_v42 = vmax.f32 %v926_v37, %v927_v10  ;;  %v659_v5 = vrot.slane %v658_v16, 2  ;;  %v853_v4 = vadd.f32 %v852_v9, %v851_v57 }
 0x30e   :  { %v737_v20 = vmax.f32 %v735_v47, %v736_v19  ;;  %v4722_v43 = vmul.f32 0.5, %v636_v55  ;;  %v762_v2 = vmul.f32 1.442695, %v4715_v1  ;;  %v859_v22 = vrot.slane %v858_v32, 4  ;;  %v606_v36 = vpop.xlane.xlu0 %605 }
 0x30f   :  { %v931_v17 = vrot.slane %v930_v6, 2  ;;  %v741_v27 = vmax.f32 %v4712_v63, %v740_v62  ;;  %v641_v21 = vadd.f32 %v629_v28, %v603_v60  ;;  %v4729_v38 = vsub.f32 %v4688_v14, %v928_v42 }
 0x310   :  { %v738_v18 = vrot.slane %v737_v20, 1  ;;  %v746_v52 = vrot.slane %v4722_v43, 4  ;;  %v630_v49 = vmul.f32 %v618_v15, %v5425_v35  ;;  %v666_v11 = vrot.slane %v665_v44, 2 }
 0x311   :  { %v932_v39 = vmax.f32 %v930_v6, %v931_v17  ;;  %3167 = vpow2.f32 %v762_v2  ;;  %v660_v57 = vadd.f32 %v659_v5, %v658_v16  ;;  %v854_v46 = vrot.slane %v853_v4, 2  ;;  %v3160_v37 = vpop.eup %3159 }
 0x312   :  { %v739_v59 = vmax.f32 %v737_v20, %v738_v18  ;;  %v747_v54 = vmax.f32 %v4722_v43, %v746_v52  ;;  %v860_v56 = vadd.f32 %v859_v22, %v858_v32  ;;  %v742_v40 = vrot.slane %v741_v27, 2 }
 0x313   :  { %v933_v45 = vrot.slane %v932_v39, 1  ;;  %v4735_v47 = vmul.f32 0.5, %v641_v21  ;;  %v957_v31 = vmul.f32 1.442695, %v4729_v38  ;;  %v642_v10 = vadd.f32 %v630_v49, %v606_v36 }
 0x314   :  { %v4732_v7 = vsub.f32 %v647_v0, %v739_v59  ;;  %v3162_v14 = vpop.eup %3161  ;;  %v667_v0 = vadd.f32 %v666_v11, %v665_v44  ;;  %v748_v51 = vrot.slane %v747_v54, 2  ;;  %v661_v19 = vrot.slane %v660_v57, 1 }
 0x315   :  { %v934_v3 = vmax.f32 %v932_v39, %v933_v45  ;;  %v3164_v53 = vpop.eup %3163  ;;  %v770_v55 = vrot.slane %v3160_v37, 4  ;;  %v855_v16 = vadd.f32 %v854_v46, %v853_v4  ;;  %v861_v9 = vrot.slane %v860_v56, 2 }
 0x316   :  { %v764_v24 = vmul.f32 1.442695, %v4732_v7  ;;  %v776_v32 = vrot.slane %v3162_v14, 4  ;;  %v743_v28 = vmax.f32 %v741_v27, %v742_v40  ;;  %v935_v20 = vrot.slane %v4735_v47, 4 }
 0x317   :  { %v4738_v35 = vsub.f32 %v653_v61, %v934_v3  ;;  %v965_v62 = vrot.slane %v3164_v53, 4  ;;  %3169 = vpow2.f32 %v957_v31  ;;  %v4743_v61 = vmul.f32 0.5, %v642_v10 }
 0x318   :  { %v3166_v60 = vpop.eup %3165  ;;  %v668_v42 = vrot.slane %v667_v0, 1  ;;  %3171 = vpow2.f32 %v764_v24  ;;  %v749_v15 = vmax.f32 %v747_v54, %v748_v51  ;;  %v662_v17 = vadd.f32 %v661_v19, %v660_v57 }
 0x319   :  { %v959_v6 = vmul.f32 1.442695, %v4738_v35  ;;  %v771_v44 = vadd.f32 %v3160_v37, %v770_v55  ;;  %v856_v2 = vrot.slane %v855_v16, 1  ;;  %v862_v18 = vadd.f32 %v861_v9, %v860_v56 }
 0x31a   :  { %v777_v52 = vadd.f32 %v3162_v14, %v776_v32  ;;  %v744_v5 = vrot.slane %v743_v28, 1  ;;  %v936_v4 = vmax.f32 %v4735_v47, %v935_v20  ;;  %v966_v22 = vadd.f32 %v3164_v53, %v965_v62 }
 0x31b   :  { %3173 = vpow2.f32 %v959_v6  ;;  %v971_v39 = vrot.slane %v3166_v60, 4  ;;  %v941_v59 = vrot.slane %v4743_v61, 4  ;;  %v669_v27 = vadd.f32 %v668_v42, %v667_v0  ;;  %v5443_v6 = vld [vmem:[#allocation29_spill] sm:$0xff] }
 0x31c   :  { %v750_v21 = vrot.slane %v749_v15, 1  ;;  %v772_v45 = vrot.slane %v771_v44, 2  ;;  %v857_v11 = vadd.f32 %v856_v2, %v855_v16  ;;  %v863_v36 = vrot.slane %v862_v18, 1 }
 0x31d   :  { %v698_v54 = vadd.f32 0.0001, %v662_v17  ;;  %v778_v57 = vrot.slane %v777_v52, 2  ;;  %v745_v46 = vmax.f32 %v743_v28, %v744_v5  ;;  %v937_v3 = vrot.slane %v936_v4, 2 }
 0x31e   :  { %v3168_v49 = vpop.eup %3167  ;;  %v967_v56 = vrot.slane %v966_v22, 2  ;;  %v972_v37 = vadd.f32 %v3166_v60, %v971_v39  ;;  %v942_v40 = vmax.f32 %v4743_v61, %v941_v59  ;;  %v699_v14 = vadd.f32 0.0001, %v669_v27 }
 0x31f   :  { %v782_v31 = vrot.slane %v3168_v49, 4  ;;  %v751_v10 = vmax.f32 %v749_v15, %v750_v21  ;;  %v773_v53 = vadd.f32 %v772_v45, %v771_v44  ;;  %v893_v24 = vadd.f32 0.0001, %v857_v11 }
 0x320   :  { %v864_v51 = vadd.f32 %v863_v36, %v862_v18  ;;  %3175 = vrcp.f32 %v698_v54  ;;  %v779_v0 = vadd.f32 %v778_v57, %v777_v52  ;;  %v4749_v19 = vsub.f32 %v4712_v63, %v745_v46  ;;  %v5444_v63 = vld [vmem:[#allocation30_spill] sm:$0xff] }
 0x321   :  { %v938_v55 = vmax.f32 %v936_v4, %v937_v3  ;;  %v968_v16 = vadd.f32 %v967_v56, %v966_v22  ;;  %v973_v9 = vrot.slane %v972_v37, 2  ;;  %v943_v32 = vrot.slane %v942_v40, 2 }
 0x322   :  { %v670_v28 = vsel %vm252_vm1, %v5443_v6, 0.0  ;;  %3177 = vrcp.f32 %v699_v14  ;;  %v783_v62 = vadd.f32 %v3168_v49, %v782_v31  ;;  %v4754_v60 = vsub.f32 %v4722_v43, %v751_v10 }
 0x323   :  { %v671_v42 = vrot.slane %v670_v28, 4  ;;  %v774_v17 = vrot.slane %v773_v53, 1  ;;  %3179 = vrcp.f32 %v893_v24  ;;  %v894_v44 = vadd.f32 0.0001, %v864_v51 }
 0x324   :  { %v3170_v20 = vpop.eup %3169  ;;  %v677_v2 = vsel %vm252_vm1, %v5444_v63, 0.0  ;;  %v780_v18 = vrot.slane %v779_v0, 1  ;;  %v766_v52 = vmul.f32 1.442695, %v4749_v19  ;;  %v939_v5 = vrot.slane %v938_v55, 1 }
 0x325   :  { %v3172_v15 = vpop.eup %3171  ;;  %v672_v4 = vadd.f32 %v671_v42, %v670_v28  ;;  %v969_v39 = vrot.slane %v968_v16, 1  ;;  %v974_v59 = vadd.f32 %v973_v9, %v972_v37  ;;  %v977_v27 = vrot.slane %v3170_v20, 4 }
 0x326   :  { %v944_v21 = vmax.f32 %v942_v40, %v943_v32  ;;  %v784_v43 = vrot.slane %v783_v62, 2  ;;  %v788_v49 = vrot.slane %v3172_v15, 4  ;;  %v768_v45 = vmul.f32 1.442695, %v4754_v60 }
 0x327   :  { %v678_v11 = vrot.slane %v677_v2, 4  ;;  %v775_v36 = vadd.f32 %v774_v17, %v773_v53  ;;  %3181 = vrcp.f32 %v894_v44  ;;  %v673_v54 = vrot.slane %v672_v4, 2  ;;  %v5446_v17 = vld [vmem:[#allocation52_spill] sm:$0xff] }
 0x328   :  { %v3174_v22 = vpop.eup %3173  ;;  %v781_v57 = vadd.f32 %v780_v18, %v779_v0  ;;  %3183 = vpow2.f32 %v766_v52  ;;  %v940_v3 = vmax.f32 %v938_v55, %v939_v5  ;;  %v970_v56 = vadd.f32 %v969_v39, %v968_v16  ;;  %v5447_v52 = vld [vmem:[#allocation31_spill] sm:$0xff] }
 0x329   :  { %v983_v46 = vrot.slane %v3174_v22, 4  ;;  %v975_v14 = vrot.slane %v974_v59, 1  ;;  %v978_v31 = vadd.f32 %v3170_v20, %v977_v27  ;;  %v945_v10 = vrot.slane %v944_v21, 1 }
 0x32a   :  { %v785_v24 = vadd.f32 %v784_v43, %v783_v62  ;;  %v789_v37 = vadd.f32 %v3172_v15, %v788_v49  ;;  %3185 = vpow2.f32 %v768_v45  ;;  %v679_v40 = vadd.f32 %v678_v11, %v677_v2 }
 0x32b   :  { %3187 = vlog2.f32 %v775_v36  ;;  %v674_v51 = vadd.f32 %v673_v54, %v672_v4  ;;  %v984_v9 = vadd.f32 %v3174_v22, %v983_v46  ;;  %v4761_v53 = vsub.f32 %v4735_v47, %v940_v3  ;;  %v5449_v54 = vld [vmem:[#allocation32_spill] sm:$0xff] }
 0x32c   :  { %3189 = vlog2.f32 %v781_v57  ;;  %v976_v0 = vadd.f32 %v975_v14, %v974_v59  ;;  %v979_v28 = vrot.slane %v978_v31, 2  ;;  %v946_v55 = vmax.f32 %v944_v21, %v945_v10 }
 0x32d   :  { %5445 = vst [vmem:[#allocation28_spill] sm:$0xff] %v4761_v53  ;;  %v3176_v32 = vpop.eup %3175  ;;  %3191 = vlog2.f32 %v970_v56  ;;  %v786_v16 = vrot.slane %v785_v24, 1  ;;  %v790_v42 = vrot.slane %v789_v37, 2  ;;  %v680_v20 = vrot.slane %v679_v40, 2 }
 0x32e   :  { %v1050_v62 = vrot.slane %v5446_v17, 4  ;;  %v675_v44 = vrot.slane %v674_v51, 1  ;;  %v985_v18 = vrot.slane %v984_v9, 2  ;;  %v684_v5 = vsel %vm252_vm1, %v5447_v52, 0.0 }
 0x32f   :  { %v3178_v15 = vpop.eup %3177  ;;  %3193 = vlog2.f32 %v976_v0  ;;  %v980_v47 = vadd.f32 %v979_v28, %v978_v31  ;;  %v961_v4 = vmul.f32 1.442695, %v4761_v53  ;;  %v4768_v22 = vsub.f32 %v4743_v61, %v946_v55 }
 0x330   :  { %v3180_v2 = vpop.eup %3179  ;;  %v787_v39 = vadd.f32 %v786_v16, %v785_v24  ;;  %v791_v59 = vadd.f32 %v790_v42, %v789_v37  ;;  %v681_v27 = vadd.f32 %v680_v20, %v679_v40  ;;  %v1051_v21 = vmax.f32 %v5446_v17, %v1050_v62  ;;  %v5451_v20 = vld [vmem:[#allocation36_spill] sm:$0xff]  ;;  %v5452_v62 = vld [vmem:[#allocation53_spill] sm:$0xff] }
 0x331   :  { %5448 = vst [vmem:[#allocation33_spill] sm:$0xff] %v4768_v22  ;;  %v676_v43 = vadd.f32 %v675_v44, %v674_v51  ;;  %v685_v49 = vrot.slane %v684_v5, 4  ;;  %v4772_v11 = vmul.f32 %v3176_v32, %v3682_v12  ;;  %v986_v36 = vadd.f32 %v985_v18, %v984_v9  ;;  %v5450_v51 = vld [vmem:[#allocation35_spill] sm:$0xff] }
 0x332   :  { %v691_v57 = vsel %vm252_vm1, %v5449_v54, 0.0  ;;  %v4777_v3 = vmul.f32 %v3178_v15, %v5440_v48  ;;  %v981_v61 = vrot.slane %v980_v47, 1  ;;  %3195 = vpow2.f32 %v961_v4 }
 0x333   :  { %v963_v56 = vmul.f32 1.442695, %v4768_v22  ;;  %3197 = vlog2.f32 %v787_v39  ;;  %v792_v14 = vrot.slane %v791_v59, 1  ;;  %v682_v31 = vrot.slane %v681_v27, 1  ;;  %v5453_v22 = vld [vmem:[#allocation37_spill] sm:$0xff] }
 0x334   :  { %v3182_v45 = vpop.eup %3181  ;;  %v1052_v10 = vrot.slane %v1051_v21, 2  ;;  %v686_v37 = vadd.f32 %v685_v49, %v684_v5  ;;  %v692_v12 = vrot.slane %v691_v57, 4  ;;  %v700_v40 = vadd.f32 0.0001, %v676_v43 }
 0x335   :  { %v3184_v46 = vpop.eup %3183  ;;  %v865_v9 = vsel %vm252_vm1, %v5450_v51, 0.0  ;;  %v900_v0 = vmul.f32 %v3180_v2, %v5441_v23  ;;  %v4784_v48 = vmul.f32 %v3182_v45, %v5442_v13  ;;  %v987_v28 = vrot.slane %v986_v36, 1 }
 0x336   :  { %v794_v55 = vrot.slane %v3184_v46, 4  ;;  %v982_v42 = vadd.f32 %v981_v61, %v980_v47  ;;  %3199 = vpow2.f32 %v963_v56  ;;  %v872_v17 = vsel %vm252_vm1, %v5451_v20, 0.0 }
 0x337   :  { %v3186_v24 = vpop.eup %3185  ;;  %v1056_v15 = vrot.slane %v5452_v62, 4  ;;  %v793_v18 = vadd.f32 %v792_v14, %v791_v59  ;;  %v683_v5 = vadd.f32 %v682_v31, %v681_v27  ;;  %v866_v39 = vrot.slane %v865_v9, 4 }
 0x338   :  { %v3188_v32 = vpop.eup %3187  ;;  %v800_v4 = vrot.slane %v3186_v24, 4  ;;  %v687_v43 = vrot.slane %v686_v37, 2  ;;  %v693_v23 = vadd.f32 %v692_v12, %v691_v57  ;;  %3201 = vrcp.f32 %v700_v40 }
 0x339   :  { %v3190_v16 = vpop.eup %3189  ;;  %v1053_v13 = vmax.f32 %v1051_v21, %v1052_v10  ;;  %v988_v2 = vadd.f32 %v987_v28, %v986_v36  ;;  %v795_v49 = vadd.f32 %v3184_v46, %v794_v55  ;;  %v873_v45 = vrot.slane %v872_v17, 4  ;;  %v5454_v21 = vld [vmem:[#allocation54_spill] sm:$0xff] }
 0x33a   :  { %v3192_v44 = vpop.eup %3191  ;;  %v879_v47 = vsel %vm252_vm1, %v5453_v22, 0.0  ;;  %v807_v61 = vmul.f32 0.6931472, %v3188_v32  ;;  %v809_v56 = vmul.f32 0.6931472, %v3190_v16  ;;  %3203 = vlog2.f32 %v982_v42  ;;  %v5455_v16 = vld [vmem:[#allocation38_spill] sm:$0xff] }
 0x33b   :  { %v1002_v53 = vmul.f32 0.6931472, %v3192_v44  ;;  %3205 = vlog2.f32 %v793_v18  ;;  %v701_v59 = vadd.f32 0.0001, %v683_v5  ;;  %v801_v27 = vadd.f32 %v3186_v24, %v800_v4  ;;  %v5456_v5 = vld [vmem:[#allocation55_spill] sm:$0xff] }
 0x33c   :  { %v3194_v20 = vpop.eup %3193  ;;  %v867_v14 = vadd.f32 %v866_v39, %v865_v9  ;;  %v688_v31 = vadd.f32 %v687_v43, %v686_v37  ;;  %v880_v51 = vrot.slane %v879_v47, 4  ;;  %v4792_v57 = vmax.f32 %v5452_v62, %v1056_v15 }
 0x33d   :  { %v1062_v36 = vrot.slane %v5454_v21, 4  ;;  %3207 = vlog2.f32 %v988_v2  ;;  %v694_v46 = vrot.slane %v693_v23, 2  ;;  %v796_v10 = vrot.slane %v795_v49, 2 }
 0x33e   :  { %v874_v12 = vadd.f32 %v873_v45, %v872_v17  ;;  %v818_v40 = vsub.f32 %v4686_v33, %v807_v61  ;;  %v819_v32 = vsub.f32 %v4694_v8, %v809_v56  ;;  %v1013_v28 = vsub.f32 %v4698_v58, %v1002_v53 }
 0x33f   :  { %v1004_v55 = vmul.f32 0.6931472, %v3194_v20  ;;  %v3196_v24 = vpop.eup %3195  ;;  %3209 = vrcp.f32 %v701_v59  ;;  %v802_v37 = vrot.slane %v801_v27, 2  ;;  %v868_v9 = vrot.slane %v867_v14, 2 }
 0x340   :  { %v886_v42 = vsel %vm252_vm1, %v5455_v16, 0.0  ;;  %v3198_v62 = vpop.eup %3197  ;;  %v689_v15 = vrot.slane %v688_v31, 1  ;;  %v881_v44 = vadd.f32 %v880_v51, %v879_v47  ;;  %v1054_v18 = vrot.slane %v1053_v13, 1 }
 0x341   :  { %v695_v4 = vadd.f32 %v694_v46, %v693_v23  ;;  %v797_v33 = vadd.f32 %v796_v10, %v795_v49  ;;  %v875_v39 = vrot.slane %v874_v12, 2  ;;  %v1058_v8 = vrot.slane %v4792_v57, 2 }
 0x342   :  { %v824_v58 = vmul.f32 %v818_v40, %v4772_v11  ;;  %v825_v53 = vmul.f32 %v819_v32, %v4777_v3  ;;  %v887_v20 = vrot.slane %v886_v42, 4  ;;  %v989_v43 = vrot.slane %v3196_v24, 4 }
 0x343   :  { %v3200_v2 = vpop.eup %3199  ;;  %v1019_v45 = vmul.f32 %v1013_v28, %v900_v0  ;;  %v1014_v61 = vsub.f32 %v4708_v50, %v1004_v55  ;;  %v803_v56 = vadd.f32 %v802_v37, %v801_v27  ;;  %v869_v51 = vadd.f32 %v868_v9, %v867_v14 }
 0x344   :  { %v811_v47 = vmul.f32 0.6931472, %v3198_v62  ;;  %v690_v59 = vadd.f32 %v689_v15, %v688_v31  ;;  %v882_v17 = vrot.slane %v881_v44, 2  ;;  %v1063_v23 = vmax.f32 %v5454_v21, %v1062_v36 }
 0x345   :  { %v3202_v49 = vpop.eup %3201  ;;  %v696_v46 = vrot.slane %v695_v4, 1  ;;  %v798_v10 = vrot.slane %v797_v33, 1  ;;  %v876_v16 = vadd.f32 %v875_v39, %v874_v12  ;;  %v4806_v11 = vmax.f32 %v1053_v13, %v1054_v18 }
 0x346   :  { %v830_v3 = vsel %vm252_vm1, %v824_v58, 0.0  ;;  %v831_v40 = vsel %vm252_vm1, %v825_v53, 0.0  ;;  %v888_v0 = vadd.f32 %v887_v20, %v886_v42  ;;  %v990_v32 = vadd.f32 %v3196_v24, %v989_v43 }
 0x347   :  { %v3204_v50 = vpop.eup %3203  ;;  %v4811_v27 = vsel %vm252_vm1, %v1019_v45, 0.0  ;;  %v1020_v14 = vmul.f32 %v1014_v61, %v4784_v48  ;;  %v804_v31 = vrot.slane %v803_v56, 1  ;;  %v870_v21 = vrot.slane %v869_v51, 1 }
 0x348   :  { %v3206_v36 = vpop.eup %3205  ;;  %v820_v28 = vsub.f32 %v4715_v1, %v811_v47  ;;  %v702_v12 = vadd.f32 0.0001, %v690_v59  ;;  %v709_v13 = vmul.f32 %v3202_v49, %v5443_v6  ;;  %v883_v55 = vadd.f32 %v882_v17, %v881_v44 }
 0x349   :  { %v697_v37 = vadd.f32 %v696_v46, %v695_v4  ;;  %v799_v9 = vadd.f32 %v798_v10, %v797_v33  ;;  %v832_v62 = vadd.f32 %v831_v40, %v830_v3  ;;  %v877_v42 = vrot.slane %v876_v16, 1 }
 0x34a   :  { %v3208_v24 = vpop.eup %3207  ;;  %v4816_v15 = vmul.f32 0.6931472, %v3204_v50  ;;  %v889_v18 = vrot.slane %v888_v0, 2  ;;  %v991_v39 = vrot.slane %v990_v32, 2  ;;  %v995_v58 = vrot.slane %v3200_v2, 4 }
 0x34b   :  { %v4819_v48 = vsel %vm252_vm1, %v1020_v14, 0.0  ;;  %v813_v53 = vmul.f32 0.6931472, %v3206_v36  ;;  %v805_v20 = vadd.f32 %v804_v31, %v803_v56  ;;  %v871_v1 = vadd.f32 %v870_v21, %v869_v51 }
 0x34c   :  { %v3210_v43 = vpop.eup %3209  ;;  %3211 = vrcp.f32 %v702_v12  ;;  %v826_v6 = vmul.f32 %v820_v28, %v709_v13  ;;  %v884_v44 = vrot.slane %v883_v55, 1  ;;  %v1059_v17 = vmax.f32 %v4792_v57, %v1058_v8  ;;  %v5458_v13 = vld [vmem:[#allocation56_spill] sm:$0xff] }
 0x34d   :  { %v4822_v4 = vmul.f32 0.6931472, %v3208_v24  ;;  %v703_v33 = vadd.f32 0.0001, %v697_v37  ;;  %3213 = vlog2.f32 %v799_v9  ;;  %v878_v45 = vadd.f32 %v877_v42, %v876_v16  ;;  %v5459_v37 = vld [vmem:[#allocation57_spill] sm:$0xff] }
 0x34e   :  { %v1015_v61 = vsub.f32 %v4729_v38, %v4816_v15  ;;  %v4826_v47 = vadd.f32 %v889_v18, %v888_v0  ;;  %v992_v59 = vadd.f32 %v991_v39, %v990_v32  ;;  %v996_v49 = vadd.f32 %v3200_v2, %v995_v58 }
 0x34f   :  { %v821_v56 = vsub.f32 %v4732_v7, %v813_v53  ;;  %v711_v51 = vmul.f32 %v3210_v43, %v5444_v63  ;;  %3215 = vlog2.f32 %v805_v20  ;;  %v895_v46 = vadd.f32 0.0001, %v871_v1  ;;  %v5460_v20 = vld [vmem:[#allocation40_spill] sm:$0xff]  ;;  %v5461_v43 = vld [vmem:[#allocation42_spill] sm:$0xff] }
 0x350   :  { %v833_v57 = vsel %vm252_vm1, %v826_v6, 0.0  ;;  %v885_v8 = vadd.f32 %v884_v44, %v883_v55  ;;  %v1060_v10 = vrot.slane %v1059_v17, 1  ;;  %v1064_v3 = vrot.slane %v1063_v23, 2 }
 0x351   :  { %v1016_v16 = vsub.f32 %v4738_v35, %v4822_v4  ;;  %3217 = vrcp.f32 %v703_v33  ;;  %v896_v40 = vadd.f32 0.0001, %v878_v45  ;;  %v5457_v0 = vrot.slane %v5456_v5, 4  ;;  %v1699_v35 = vld [vmem:[#allocation2 + $0x18] sm:$0xff] }
 0x352   :  { %v891_v7 = vrot.slane %v4826_v47, 1  ;;  %v993_v32 = vrot.slane %v992_v59, 1  ;;  %v997_v63 = vrot.slane %v996_v49, 2  ;;  %v1065_v50 = vmax.f32 %v1063_v23, %v1064_v3 }
 0x353   :  { %v1069_v2 = vmax.f32 %v5456_v5, %v5457_v0  ;;  %v4837_v14 = vmul.f32 %v821_v56, %v711_v51  ;;  %v4839_v31 = vadd.f32 %v833_v57, %v832_v62  ;;  %3219 = vrcp.f32 %v895_v46 }
 0x354   :  { %v1061_v21 = vmax.f32 %v1059_v17, %v1060_v10  ;;  %v897_v36 = vadd.f32 0.0001, %v885_v8  ;;  %v1066_v28 = vrot.slane %v1065_v50, 1  ;;  %v1074_v55 = vrot.slane %v5458_v13, 4 }
 0x355   :  { %v1070_v12 = vrot.slane %v1069_v2, 2  ;;  %3221 = vrcp.f32 %v896_v40  ;;  %v1080_v5 = vrot.slane %v5459_v37, 4  ;;  %v1086_v9 = vsub.f32 %v3739_v25, %v4806_v11  ;;  %v5463_v40 = vld [vmem:[#allocation16_spill] sm:$0xff] }
 0x356   :  { %v994_v42 = vadd.f32 %v993_v32, %v992_v59  ;;  %v998_v23 = vadd.f32 %v997_v63, %v996_v49  ;;  %v1067_v24 = vmax.f32 %v1065_v50, %v1066_v28  ;;  %v1075_v62 = vmax.f32 %v5458_v13, %v1074_v55  ;;  %v5462_v49 = vld [vmem:[#allocation41_spill] sm:$0xff] }
 0x357   :  { %v1071_v18 = vmax.f32 %v1069_v2, %v1070_v12  ;;  %v1081_v39 = vmax.f32 %v5459_v37, %v1080_v5  ;;  %v1087_v58 = vsub.f32 %v3751_v29, %v1061_v21  ;;  %v1092_v53 = vmul.f32 1.442695, %v1086_v9  ;;  %v5464_v32 = vld [vmem:[#allocation17_spill] sm:$0xff]  ;;  %v5465_v5 = vld [vmem:[#allocation43_spill] sm:$0xff] }
 0x358   :  { %v1165_v1 = vsel %vm1164_vm12, %v5460_v20, 0.0  ;;  %v1166_v6 = vsel %vm1164_vm12, %v5461_v43, 0.0  ;;  %v1088_v25 = vsub.f32 %v3741_v26, %v1067_v24  ;;  %v1076_v17 = vrot.slane %v1075_v62, 2  ;;  %v5467_v43 = vld [vmem:[#allocation49_spill] sm:$0xff] }
 0x359   :  { %v1072_v44 = vrot.slane %v1071_v18, 1  ;;  %v3212_v11 = vpop.eup %3211  ;;  %v1082_v33 = vrot.slane %v1081_v39, 2  ;;  %3223 = vpow2.f32 %v1092_v53  ;;  %v1094_v45 = vmul.f32 1.442695, %v1087_v58  ;;  %v5466_v53 = vld [vmem:[#allocation18_spill] sm:$0xff] }
 0x35a   :  { %v3214_v59 = vpop.eup %3213  ;;  %3225 = vlog2.f32 %v994_v42  ;;  %v1168_v29 = vsel %vm1164_vm12, %v5462_v49, 0.0  ;;  %v1096_v51 = vmul.f32 1.442695, %v1088_v25  ;;  %v999_v46 = vrot.slane %v998_v23, 1  ;;  %v5471_v49 = vld [vmem:[#allocation23_spill] sm:$0xff] }
 0x35b   :  { %v1073_v56 = vmax.f32 %v1071_v18, %v1072_v44  ;;  %v1077_v57 = vmax.f32 %v1075_v62, %v1076_v17  ;;  %v1083_v8 = vmax.f32 %v1081_v39, %v1082_v33  ;;  %3227 = vpow2.f32 %v1094_v45  ;;  %v5468_v44 = vld [vmem:[#allocation19_spill] sm:$0xff]  ;;  %v5469_v33 = vld [vmem:[#allocation22_spill] sm:$0xff] }
 0x35c   :  { %v3216_v10 = vpop.eup %3215  ;;  %v1167_v3 = vadd.f32 %v1166_v6, %v1165_v1  ;;  %v1185_v26 = vsel %vm1164_vm12, %v5463_v40, 0.0  ;;  %3229 = vpow2.f32 %v1096_v51  ;;  %v815_v2 = vmul.f32 0.6931472, %v3214_v59  ;;  %v5470_v59 = vld [vmem:[#allocation35_spill] sm:$0xff] }
 0x35d   :  { %v1089_v0 = vsub.f32 %v3753_v30, %v1073_v56  ;;  %v1186_v63 = vsel %vm1164_vm12, %v5464_v32, 0.0  ;;  %v1078_v50 = vrot.slane %v1077_v57, 1  ;;  %v1084_v21 = vrot.slane %v1083_v8, 1 }
 0x35e   :  { %v3218_v28 = vpop.eup %3217  ;;  %v713_v12 = vmul.f32 %v3212_v11, %v5447_v52  ;;  %v892_v13 = vadd.f32 %v891_v7, %v4826_v47  ;;  %3231 = vrcp.f32 %v897_v36  ;;  %v1000_v37 = vadd.f32 %v999_v46, %v998_v23  ;;  %v5472_v46 = vld [vmem:[#allocation46_spill] sm:$0xff] }
 0x35f   :  { %v1098_v55 = vmul.f32 1.442695, %v1089_v0  ;;  %v1170_v9 = vsel %vm1164_vm12, %v5465_v5, 0.0  ;;  %v1079_v42 = vmax.f32 %v1077_v57, %v1078_v50  ;;  %v1085_v30 = vmax.f32 %v1083_v8, %v1084_v21 }
 0x360   :  { %v3220_v24 = vpop.eup %3219  ;;  %v817_v18 = vmul.f32 0.6931472, %v3216_v10  ;;  %v1169_v62 = vadd.f32 %v1168_v29, %v1167_v3  ;;  %v1187_v39 = vadd.f32 %v1186_v63, %v1185_v26  ;;  %v822_v58 = vsub.f32 %v4749_v19, %v815_v2  ;;  %v5473_v10 = vld [vmem:[#allocation20_spill] sm:$0xff]  ;;  %v5474_v26 = vld [vmem:[#allocation21_spill] sm:$0xff] }
 0x361   :  { %3233 = vpow2.f32 %v1098_v55  ;;  %v1188_v52 = vsel %vm1164_vm12, %v5466_v53, 0.0  ;;  %v1090_v47 = vsub.f32 %v3771_v41, %v1079_v42  ;;  %v1091_v7 = vsub.f32 %v3761_v34, %v1085_v30 }
 0x362   :  { %v3222_v36 = vpop.eup %3221  ;;  %v715_v23 = vmul.f32 %v3218_v28, %v5449_v54  ;;  %v835_v20 = vsel %vm252_vm1, %v4837_v14, 0.0  ;;  %v898_v1 = vadd.f32 0.0001, %v892_v13  ;;  %v1172_v6 = vsel %vm1164_vm12, %v5467_v43, 0.0 }
 0x363   :  { %3235 = vlog2.f32 %v1000_v37  ;;  %v1190_v19 = vsel %vm1164_vm12, %v5468_v44, 0.0  ;;  %v1100_v25 = vmul.f32 1.442695, %v1090_v47  ;;  %v1102_v11 = vmul.f32 1.442695, %v1091_v7  ;;  %v5477_v47 = vld [vmem:[#allocation25_spill] sm:$0xff] }
 0x364   :  { %v823_v41 = vsub.f32 %v4754_v60, %v817_v18  ;;  %v1171_v17 = vadd.f32 %v1170_v9, %v1169_v62  ;;  %v1189_v34 = vadd.f32 %v1188_v52, %v1187_v39  ;;  %v1206_v54 = vsel %vm1164_vm12, %v5469_v33, 0.0  ;;  %v5475_v9 = vld [vmem:[#allocation36_spill] sm:$0xff]  ;;  %v1697_v7 = vld [vmem:[#allocation2 + $0x8] sm:$0xff] }
 0x365   :  { %v828_v45 = vmul.f32 %v822_v58, %v713_v12  ;;  %v904_v14 = vmul.f32 %v3220_v24, %v5470_v59  ;;  %v1207_v29 = vsel %vm1164_vm12, %v5471_v49, 0.0  ;;  %3237 = vpow2.f32 %v1100_v25  ;;  %v5476_v58 = vld [vmem:[#allocation24_spill] sm:$0xff] }
 0x366   :  { %v4882_v56 = vpop.eup %3223  ;;  %v836_v51 = vadd.f32 %v835_v20, %v4839_v31  ;;  %3239 = vrcp.f32 %v898_v1  ;;  %v4887_v60 = vadd.f32 %v4819_v48, %v4811_v27  ;;  %v4891_v57 = vsel %vm1164_vm12, %v5472_v46, 0.0  ;;  %v1696_v27 = vld [vmem:[#allocation2] sm:$0xff] }
 0x367   :  { %v3226_v8 = vpop.eup %3225  ;;  %v1192_v3 = vsel %vm1164_vm12, %v5473_v10, 0.0  ;;  %v4897_v0 = vsel %vm1164_vm12, %v5474_v26, 0.0  ;;  %3241 = vpow2.f32 %v1102_v11  ;;  %v1104_v31 = vsel %vm101_vm0, %v4882_v56, 0.0 }
 0x368   :  { %v4901_v2 = vpop.eup %3227  ;;  %v4903_v48 = vadd.f32 %v1172_v6, %v1171_v17  ;;  %v1191_v63 = vadd.f32 %v1190_v19, %v1189_v34  ;;  %v1208_v50 = vadd.f32 %v1207_v29, %v1206_v54  ;;  %v1105_v21 = vrot.slane %v1104_v31, 4 }
 0x369   :  { %v4905_v28 = vpop.eup %3229  ;;  %v829_v12 = vmul.f32 %v823_v41, %v715_v23  ;;  %v837_v13 = vsel %vm252_vm1, %v828_v45, 0.0  ;;  %v1021_v55 = vmul.f32 %v1015_v61, %v904_v14  ;;  %v1111_v37 = vsel %vm101_vm0, %v4901_v2, 0.0  ;;  %v1698_v23 = vld [vmem:[#allocation2 + $0x10] sm:$0xff] }
 0x36a   :  { %v906_v42 = vmul.f32 %v3222_v36, %v5475_v9  ;;  %v1106_v30 = vadd.f32 %v1105_v21, %v1104_v31  ;;  %v1112_v24 = vrot.slane %v1111_v37, 4  ;;  %v1118_v18 = vsel %vm101_vm0, %v4905_v28, 0.0  ;;  %v5478_v36 = vld [vmem:[#allocation26_spill] sm:$0xff] }
 0x36b   :  { %v3232_v62 = vpop.eup %3231  ;;  %v1209_v52 = vsel %vm1164_vm12, %v5476_v58, 0.0  ;;  %v4920_v38 = vsel %vm1164_vm12, %v5477_v47, 0.0  ;;  %v1119_v15 = vrot.slane %v1118_v18, 4  ;;  %v1010_v20 = vmul.f32 0.6931472, %v3226_v8 }
 0x36c   :  { %v4924_v1 = vsel %vm1164_vm12, %v5478_v36, 0.0  ;;  %v1107_v43 = vrot.slane %v1106_v30, 2  ;;  %v1113_v6 = vadd.f32 %v1112_v24, %v1111_v37  ;;  %v4929_v25 = vadd.f32 %v837_v13, %v836_v51  ;;  %v5479_v13 = vld [vmem:[#allocation28_spill] sm:$0xff]  ;;  %v1700_v24 = vld [vmem:[#allocation2 + $0x20] sm:$0xff] }
 0x36d   :  { %v1028_v11 = vsel %vm252_vm1, %v1021_v55, 0.0  ;;  %v4932_v41 = vadd.f32 %v1192_v3, %v1191_v63  ;;  %v1120_v17 = vadd.f32 %v1119_v15, %v1118_v18  ;;  %v1022_v45 = vmul.f32 %v1016_v16, %v906_v42 }
 0x36e   :  { %v4926_v19 = vpop.eup %3233  ;;  %v1108_v59 = vadd.f32 %v1107_v43, %v1106_v30  ;;  %v1114_v14 = vrot.slane %v1113_v6, 2  ;;  %v908_v63 = vmul.f32 %v3232_v62, %v5453_v22  ;;  %v1017_v55 = vsub.f32 %v5479_v13, %v1010_v20  ;;  %v2802_v22 = vld [vmem:[#allocation3] ss:$0 sm:$0xff] }
 0x36f   :  { %v1125_v29 = vsel %vm101_vm0, %v4926_v19, 0.0  ;;  %v1121_v51 = vrot.slane %v1120_v17, 2  ;;  %v4944_v4 = vsel %vm252_vm1, %v829_v12, 0.0  ;;  %v4946_v16 = vadd.f32 %v1209_v52, %v1208_v50 }
 0x370   :  { %v1126_v31 = vrot.slane %v1125_v29, 4  ;;  %v1109_v37 = vrot.slane %v1108_v59, 1  ;;  %v1029_v18 = vadd.f32 %v1028_v11, %v4887_v60  ;;  %v1030_v62 = vsel %vm252_vm1, %v1022_v45, 0.0 }
 0x371   :  { %v1122_v9 = vadd.f32 %v1121_v51, %v1120_v17  ;;  %v2803_v51 = vld [vmem:[#allocation3 + $0x1] ss:$0 sm:$0xff] }
 0x372   :  { %v1771_v5 = vpop.f32.mrf.mxu0  ;;  %v1127_v42 = vadd.f32 %v1126_v31, %v1125_v29  ;;  %v5480_v31 = vld [vmem:[#allocation38_spill] sm:$0xff] }
 0x373   :  { %v2140_v39 = vadd.f32 %v1771_v5, %v1696_v27  ;;  %v3236_v27 = vpop.eup %3235  ;;  %v1115_v5 = vadd.f32 %v1114_v14, %v1113_v6  ;;  %v1123_v20 = vrot.slane %v1122_v9, 1 }
 0x374   :  { %v2839_v61 = vpop.f32.mrf.mxu0  ;;  %v4948_v30 = vpop.eup %3237  ;;  %v1128_v12 = vrot.slane %v1127_v42, 2 }
 0x375   :  { %2147 = vst.msk [vmem:[#allocation2] sm:$0xff] %vm1465_vm13, %v2140_v39  ;;  %v1110_v39 = vadd.f32 %v1109_v37, %v1108_v59  ;;  %v1116_v15 = vrot.slane %v1115_v5, 1  ;;  %v3240_v61 = vpop.eup %3239  ;;  %v1132_v50 = vsel %vm101_vm0, %v4948_v30, 0.0  ;;  %v1124_v29 = vadd.f32 %v1123_v20, %v1122_v9 }
 0x376   :  { %v1844_v34 = vpop.f32.mrf.mxu1  ;;  %v1917_v54 = vpop.f32.mrf.mxu0  ;;  %v1133_v11 = vrot.slane %v1132_v50, 4 }
 0x377   :  { %v2141_v46 = vadd.f32 %v1844_v34, %v1697_v7  ;;  %v2142_v8 = vadd.f32 %v1917_v54, %v1698_v23  ;;  %v1012_v23 = vmul.f32 0.6931472, %v3236_v27  ;;  %v4954_v52 = vpop.eup %3241  ;;  %v1023_v34 = vmul.f32 %v1017_v55, %v908_v63  ;;  %v2805_v55 = vld [vmem:[#allocation3 + $0x2] ss:$0 sm:$0xff] }
 0x378   :  { %v2846_v21 = vpop.f32.mrf.mxu1  ;;  %v2853_v3 = vpop.f32.mrf.mxu0  ;;  %v1117_v60 = vadd.f32 %v1116_v15, %v1115_v5  ;;  %v910_v27 = vmul.f32 %v3240_v61, %v5480_v31  ;;  %3243 = vrcp.f32 %v1110_v39  ;;  %v1139_v37 = vsel %vm101_vm0, %v4954_v52, 0.0  ;;  %v5482_v31 = vld [vmem:[#allocation39_spill] sm:$0xff] }
 0x379   :  { %2148 = vst.msk [vmem:[#allocation2 + $0x8] sm:$0xff] %vm1465_vm13, %v2141_v46  ;;  %2149 = vst.msk [vmem:[#allocation2 + $0x10] sm:$0xff] %vm1465_vm13, %v2142_v8  ;;  %v1701_v8 = vld [vmem:[#allocation2 + $0x28] sm:$0xff]  ;;  %v1129_v21 = vadd.f32 %v1128_v12, %v1127_v42  ;;  %v1134_v3 = vadd.f32 %v1133_v11, %v1132_v50  ;;  %v5481_v42 = vld [vmem:[#allocation33_spill] sm:$0xff]  ;;  %v1032_v20 = vsel %vm252_vm1, %v1023_v34, 0.0 }
 0x37a   :  { %3245 = vrcp.f32 %v1117_v60  ;;  %v1140_v60 = vrot.slane %v1139_v37, 4  ;;  %v2806_v11 = vld [vmem:[#allocation3 + $0x3] ss:$0 sm:$0xff] }
 0x37b   :  { %v1990_v7 = vpop.f32.mrf.mxu1  ;;  %v1130_v39 = vrot.slane %v1129_v21, 1  ;;  %3247 = vrcp.f32 %v1124_v29  ;;  %v4996_v29 = vadd.f32 %v4920_v38, %v4946_v16 }
 0x37c   :  { %v2143_v43 = vadd.f32 %v1990_v7, %v1699_v35  ;;  %v2063_v6 = vpop.f32.mrf.mxu0  ;;  %v4956_v17 = vld [vmem:[#allocation2] sm:$0xff] }
 0x37d   :  { %v2144_v54 = vadd.f32 %v2063_v6, %v1700_v24  ;;  %v2860_v45 = vpop.f32.mrf.mxu1  ;;  %v2251_v59 = vmul.f32 %v4956_v17, %v4956_v17  ;;  %v2239_v14 = vsub.f32 %v2802_v22, %v4956_v17  ;;  %v1018_v24 = vsub.f32 %v5481_v42, %v1012_v23 }
 0x37e   :  { %2150 = vst.msk [vmem:[#allocation2 + $0x18] sm:$0xff] %vm1465_vm13, %v2143_v43  ;;  %v2867_v46 = vpop.f32.mrf.mxu0  ;;  %v1031_v22 = vadd.f32 %v1030_v62, %v1029_v18  ;;  %v1135_v6 = vrot.slane %v1134_v3, 2  ;;  %v1294_v42 = vrot.slane %v5464_v32, %v5482_v31  ;;  %v1302_v32 = vrot.slane %v5468_v44, %v5482_v31 }
 0x37f   :  { %2151 = vst.msk [vmem:[#allocation2 + $0x20] sm:$0xff] %vm1465_vm13, %v2144_v54  ;;  %v2252_v63 = vsel %vm1465_vm13, %v2251_v59, 0.0  ;;  %v4965_v13 = vmul.f32 0.06666667, %v2239_v14  ;;  %v1131_v54 = vadd.f32 %v1130_v39, %v1129_v21  ;;  %v2809_v59 = vld [vmem:[#allocation3 + $0x4] ss:$0 sm:$0xff]  ;;  %v4992_v14 = vadd.f32 %v4944_v4, %v4929_v25 }
 0x380   :  { %v2136_v5 = vpop.f32.mrf.mxu1  ;;  %2253 = vadd.xlane.f32.xlu1 %v2252_v63  ;;  %v4969_v35 = vld [vmem:[#allocation2 + $0x8] sm:$0xff]  ;;  %v4971_v9 = vld [vmem:[#allocation2 + $0x10] sm:$0xff]  ;;  %v1290_v21 = vrot.slane %v5463_v40, %v5482_v31  ;;  %v1136_v4 = vadd.f32 %v1135_v6, %v1134_v3  ;;  %v1298_v3 = vrot.slane %v5466_v53, %v5482_v31 }
 0x381   :  { %v2145_v15 = vadd.f32 %v2136_v5, %v1701_v8  ;;  %v2273_v61 = vmul.f32 %v4965_v13, %v4965_v13  ;;  %v2262_v7 = vmul.f32 %v4969_v35, %v4969_v35  ;;  %v2249_v50 = vsub.f32 %v2803_v51, %v4969_v35 }
 0x382   :  { %v2874_v12 = vpop.f32.mrf.mxu1  ;;  %v2379_v43 = vsub.f32 %v2805_v55, %v4971_v9  ;;  %v2391_v23 = vmul.f32 %v4971_v9, %v4971_v9  ;;  %v1024_v8 = vmul.f32 %v1018_v24, %v910_v27  ;;  %v5000_v51 = vadd.f32 %v1032_v20, %v1031_v22 }
 0x383   :  { %2152 = vst.msk [vmem:[#allocation2 + $0x28] sm:$0xff] %vm1465_vm13, %v2145_v15  ;;  %v2274_v18 = vsel %vm1465_vm13, %v2273_v61, 0.0  ;;  %v2263_v62 = vsel %vm1465_vm13, %v2262_v7, 0.0  ;;  %v4986_v34 = vmul.f32 0.06666667, %v2249_v50  ;;  %3249 = vrcp.f32 %v1131_v54 }
 0x384   :  { %2275 = vadd.xlane.f32.xlu1 %v2274_v18  ;;  %2264 = vadd.xlane.f32.xlu0 %v2263_v62  ;;  %v4988_v45 = vmul.f32 0.06666667, %v2379_v43  ;;  %v1141_v5 = vadd.f32 %v1140_v60, %v1139_v37  ;;  %v2392_v38 = vsel %vm1465_vm13, %v2391_v23, 0.0  ;;  %v2810_v15 = vld [vmem:[#allocation3 + $0x5] ss:$0 sm:$0xff]  ;;  %v5025_v61 = vsel %vm252_vm1, %v1024_v8, 0.0 }
 0x385   :  { %v4998_v46 = vld [vmem:[#allocation2 + $0x18] sm:$0xff]  ;;  %v2284_v63 = vmul.f32 %v4986_v34, %v4986_v34  ;;  %v1137_v50 = vrot.slane %v1136_v4, 1  ;;  %v3244_v60 = vpop.eup %3243  ;;  %v1377_v23 = vrot.slane %v5469_v33, %v5482_v31  ;;  %v2295_v33 = vmul.f32 %v4969_v35, %v4956_v17 }
 0x386   :  { %v5006_v55 = vld [vmem:[#allocation2 + $0x20] sm:$0xff]  ;;  %v2389_v25 = vsub.f32 %v2806_v11, %v4998_v46  ;;  %v2413_v16 = vmul.f32 %v4988_v45, %v4988_v45  ;;  %v2402_v22 = vmul.f32 %v4998_v46, %v4998_v46  ;;  %v1142_v43 = vrot.slane %v1141_v5, 2 }
 0x387   :  { %v2519_v27 = vsub.f32 %v2809_v59, %v5006_v55  ;;  %v2285_v24 = vsel %vm1465_vm13, %v2284_v63, 0.0  ;;  %v2531_v37 = vmul.f32 %v5006_v55, %v5006_v55  ;;  %v1381_v11 = vrot.slane %v5471_v49, %v5482_v31  ;;  %v3246_v54 = vpop.eup %3245 }
 0x388   :  { %2393 = vadd.xlane.f32.xlu1 %v2392_v38  ;;  %v5018_v39 = vmul.f32 0.06666667, %v2389_v25  ;;  %2286 = vadd.xlane.f32.xlu0 %v2285_v24  ;;  %v2414_v18 = vsel %vm1465_vm13, %v2413_v16, 0.0  ;;  %v2403_v59 = vsel %vm1465_vm13, %v2402_v22, 0.0  ;;  %v1385_v63 = vrot.slane %v5476_v58, %v5482_v31  ;;  %v3248_v38 = vpop.eup %3247 }
 0x389   :  { %v5031_v20 = vmul.f32 0.06666667, %v2519_v27  ;;  %v1389_v25 = vrot.slane %v5477_v47, %v5482_v31  ;;  %v2532_v16 = vsel %vm1465_vm13, %v2531_v37, 0.0  ;;  %v2311_v49 = vmul.f32 %v4965_v13, %v4969_v35 }
 0x38a   :  { %v5033_v12 = vld [vmem:[#allocation2 + $0x28] sm:$0xff]  ;;  %v2424_v62 = vmul.f32 %v5018_v39, %v5018_v39  ;;  %v1138_v22 = vadd.f32 %v1137_v50, %v1136_v4  ;;  %v1149_v6 = vmul.f32 %v3246_v54, %v4901_v2  ;;  %v1151_v7 = vmul.f32 %v3248_v38, %v4905_v28 }
 0x38b   :  { %v2529_v8 = vsub.f32 %v2810_v15, %v5033_v12  ;;  %v2553_v24 = vmul.f32 %v5031_v20, %v5031_v20  ;;  %v1143_v15 = vadd.f32 %v1142_v43, %v1141_v5  ;;  %v2542_v37 = vmul.f32 %v5033_v12, %v5033_v12  ;;  %v5484_v38 = vld [vmem:[#allocation47_spill] sm:$0xff] }
 0x38c   :  { %2415 = vadd.xlane.f32.xlu1 %v2414_v18  ;;  %2404 = vadd.xlane.f32.xlu0 %v2403_v59  ;;  %v1147_v18 = vmul.f32 %v3244_v60, %v4882_v56  ;;  %v2425_v59 = vsel %vm1465_vm13, %v2424_v62, 0.0  ;;  %3251 = vrcp.f32 %v1138_v22  ;;  %v2296_v4 = vsel %vm1465_vm13, %v2295_v33, 0.0  ;;  %v5483_v62 = vld [vmem:[#allocation44_spill] sm:$0xff]  ;;  %v5485_v33 = vld [vmem:[#allocation45_spill] sm:$0xff] }
 0x38d   :  { %v5065_v13 = vmul.f32 0.06666667, %v2529_v8  ;;  %v1144_v35 = vrot.slane %v1143_v15, 1  ;;  %v2303_v56 = vmul.f32 %v4986_v34, %v4956_v17  ;;  %v1159_v5 = vsub.f32 1.0, %v1149_v6 }
 0x38e   :  { %v1158_v27 = vsub.f32 1.0, %v1147_v18  ;;  %v1160_v50 = vsub.f32 1.0, %v1151_v7  ;;  %v2554_v60 = vsel %vm1465_vm13, %v2553_v24, 0.0  ;;  %v2543_v17 = vsel %vm1465_vm13, %v2542_v37, 0.0 }
 0x38f   :  { %v1145_v2 = vadd.f32 %v1144_v35, %v1143_v15  ;;  %v1318_v18 = vsub.f32 %v1159_v5, %v1294_v42  ;;  %v2564_v34 = vmul.f32 %v5065_v13, %v5065_v13  ;;  %v2312_v7 = vsel %vm1465_vm13, %v2311_v49, 0.0 }
 0x390   :  { %2533 = vadd.xlane.f32.xlu1 %v2532_v16  ;;  %2426 = vadd.xlane.f32.xlu0 %v2425_v59  ;;  %v3250_v43 = vpop.eup %3249  ;;  %v1231_v28 = vsub.f32 %v1158_v27, %v5483_v62  ;;  %v1317_v54 = vsub.f32 %v1158_v27, %v1290_v21  ;;  %v1232_v16 = vsub.f32 %v1159_v5, %v5484_v38  ;;  %v2304_v24 = vsel %vm1465_vm13, %v2303_v56, 0.0  ;;  %v5487_v56 = vld [vmem:[#allocation48_spill] sm:$0xff] }
 0x391   :  { %v1153_v8 = vmul.f32 %v3250_v43, %v4926_v19  ;;  %v1233_v22 = vsub.f32 %v1160_v50, %v5485_v33  ;;  %3253 = vrcp.f32 %v1145_v2  ;;  %v2435_v40 = vmul.f32 %v4998_v46, %v4971_v9  ;;  %v5486_v43 = vld [vmem:[#allocation27_spill] sm:$0xff] }
 0x392   :  { %v1237_v19 = vand.u32 2147483647, %v1231_v28  ;;  %v1238_v6 = vand.u32 2147483647, %v1232_v16  ;;  %v2443_v42 = vmul.f32 %v5018_v39, %v4971_v9  ;;  %v2451_v15 = vmul.f32 %v4988_v45, %v4998_v46 }
 0x393   :  { %v1161_v21 = vsub.f32 1.0, %v1153_v8  ;;  %v1319_v49 = vsub.f32 %v1160_v50, %v1298_v3  ;;  %v1239_v59 = vand.u32 2147483647, %v1233_v22  ;;  %v1323_v37 = vand.u32 2147483647, %v1317_v54 }
 0x394   :  { %2555 = vadd.xlane.f32.xlu1 %v2554_v60  ;;  %2544 = vadd.xlane.f32.xlu0 %v2543_v17  ;;  %v1324_v35 = vand.u32 2147483647, %v1318_v18  ;;  %v1397_v60 = vrot.slane %v5486_v43, %v5482_v31  ;;  %v2565_v2 = vsel %vm1465_vm13, %v2564_v34, 0.0  ;;  %v1404_v28 = vsub.f32 %v1158_v27, %v1377_v23 }
 0x395   :  { %v1234_v62 = vsub.f32 %v1161_v21, %v5487_v56  ;;  %v1405_v9 = vsub.f32 %v1159_v5, %v1381_v11  ;;  %v2436_v45 = vsel %vm1465_vm13, %v2435_v40, 0.0  ;;  %v2575_v53 = vmul.f32 %v5033_v12, %v5006_v55 }
 0x396   :  { %v1249_v46 = vrot.slane %v1237_v19, 7  ;;  %v1250_v39 = vrot.slane %v1238_v6, 7  ;;  %v2444_v3 = vsel %vm1465_vm13, %v2443_v42, 0.0  ;;  %v2452_v54 = vsel %vm1465_vm13, %v2451_v15, 0.0 }
 0x397   :  { %v1325_v8 = vand.u32 2147483647, %v1319_v49  ;;  %v1251_v38 = vrot.slane %v1239_v59, 7  ;;  %v1320_v23 = vsub.f32 %v1161_v21, %v1302_v32  ;;  %v1335_v11 = vrot.slane %v1323_v37, 7  ;;  %v5488_v37 = vld [vmem:[#allocation51_spill] sm:$0xff] }
 0x398   :  { %2297 = vadd.xlane.f32.xlu1 %v2296_v4  ;;  %2566 = vadd.xlane.f32.xlu0 %v2565_v2  ;;  %v1406_v4 = vsub.f32 %v1160_v50, %v1385_v63  ;;  %v1336_v27 = vrot.slane %v1324_v35, 7  ;;  %v2591_v5 = vmul.f32 %v5031_v20, %v5033_v12  ;;  %v1240_v16 = vand.u32 2147483647, %v1234_v62 }
 0x399   :  { %v1410_v33 = vand.u32 2147483647, %v1404_v28  ;;  %v1411_v22 = vand.u32 2147483647, %v1405_v9  ;;  %v3252_v18 = vpop.eup %3251  ;;  %v1261_v17 = vsel %vm1164_vm12, %v1249_v46, 0.0  ;;  %v1262_v58 = vsel %vm1164_vm12, %v1250_v39, 0.0 }
 0x39a   :  { %v1407_v44 = vsub.f32 %v1161_v21, %v1389_v25  ;;  %v1412_v32 = vand.u32 2147483647, %v1406_v4  ;;  %v2576_v63 = vsel %vm1465_vm13, %v2575_v53, 0.0  ;;  %v1155_v50 = vmul.f32 %v3252_v18, %v4948_v30 }
 0x39b   :  { %v1422_v34 = vrot.slane %v1410_v33, 7  ;;  %v1423_v20 = vrot.slane %v1411_v22, 7  ;;  %v1264_v12 = vsel %vm1164_vm12, %v1251_v38, 0.0  ;;  %v1337_v40 = vrot.slane %v1325_v8, 7 }
 0x39c   :  { %2313 = vadd.xlane.f32.xlu1 %v2312_v7  ;;  %2305 = vadd.xlane.f32.xlu0 %v2304_v24  ;;  %v1326_v7 = vand.u32 2147483647, %v1320_v23  ;;  %v1347_v19 = vsel %vm1164_vm12, %v1335_v11, 0.0  ;;  %v1162_v6 = vsub.f32 1.0, %v1155_v50  ;;  %v1252_v24 = vrot.slane %v1240_v16, 7  ;;  %v5491_v23 = vld [vmem:[#allocation50_spill] sm:$0xff] }
 0x39d   :  { %v1263_v42 = vadd.f32 %v1262_v58, %v1261_v17  ;;  %v1348_v47 = vsel %vm1164_vm12, %v1336_v27, 0.0  ;;  %v1413_v21 = vand.u32 2147483647, %v1407_v44  ;;  %v1424_v15 = vrot.slane %v1412_v32, 7 }
 0x39e   :  { %v3254_v25 = vpop.eup %3253  ;;  %v1434_v30 = vsel %vm1164_vm12, %v1422_v34, 0.0  ;;  %v1435_v49 = vsel %vm1164_vm12, %v1423_v20, 0.0  ;;  %v1235_v35 = vsub.f32 %v1162_v6, %v5488_v37  ;;  %v5489_v2 = vrot.slane %v5473_v10, %v5482_v31  ;;  %v2804_v37 = vld [vmem:[%s5314_s5 + $0x8] sm:$0xff] }
 0x39f   :  { %v1157_v59 = vmul.f32 %v3254_v25, %v4954_v52  ;;  %v5490_v62 = vrot.slane %v5478_v36, %v5482_v31  ;;  %v2583_v9 = vmul.f32 %v5065_v13, %v5006_v55  ;;  %v1349_v53 = vadd.f32 %v1348_v47, %v1347_v19 }
 0x3a0   :  { %2445 = vadd.xlane.f32.xlu1 %v2444_v3  ;;  %2437 = vadd.xlane.f32.xlu0 %v2436_v45  ;;  %v1321_v56 = vsub.f32 %v1162_v6, %v5489_v2  ;;  %v1338_v45 = vrot.slane %v1326_v7, 7  ;;  %v1350_v46 = vsel %vm1164_vm12, %v1337_v40, 0.0  ;;  %v1241_v52 = vand.u32 2147483647, %v1235_v35 }
 0x3a1   :  { %v1408_v28 = vsub.f32 %v1162_v6, %v5490_v62  ;;  %v1163_v39 = vsub.f32 1.0, %v1157_v59  ;;  %v1265_v3 = vadd.f32 %v1264_v12, %v1263_v42  ;;  %v1436_v8 = vadd.f32 %v1435_v49, %v1434_v30  ;;  %v2808_v30 = vld [vmem:[%s5314_s5 + $0x18] sm:$0xff]  ;;  %v2319_v59 = vld [vmem:[%s5314_s5] sm:$0xff] }
 0x3a2   :  { %v1266_v10 = vsel %vm1164_vm12, %v1252_v24, 0.0  ;;  %v1425_v38 = vrot.slane %v1413_v21, 7  ;;  %v1437_v36 = vsel %vm1164_vm12, %v1424_v15, 0.0  ;;  %v1253_v27 = vrot.slane %v1241_v52, 7 }
 0x3a3   :  { %v1414_v4 = vand.u32 2147483647, %v1408_v28  ;;  %v1236_v11 = vsub.f32 %v1163_v39, %v5491_v23  ;;  %v5492_v55 = vrot.slane %v5474_v26, %v5482_v31  ;;  %v1327_v16 = vand.u32 2147483647, %v1321_v56 }
 0x3a4   :  { %2577 = vadd.xlane.f32.xlu1 %v2576_v63  ;;  %2453 = vadd.xlane.f32.xlu0 %v2452_v54  ;;  %v2592_v33 = vsel %vm1465_vm13, %v2591_v5, 0.0  ;;  %v2584_v22 = vsel %vm1465_vm13, %v2583_v9, 0.0  ;;  %v1035_v54 = vadd.f32 %v5025_v61, %v5000_v51  ;;  %v1409_v18 = vsub.f32 %v1163_v39, %v1397_v60 }
 0x3a5   :  { %v1322_v13 = vsub.f32 %v1163_v39, %v5492_v55  ;;  %v1242_v17 = vand.u32 2147483647, %v1236_v11  ;;  %v1267_v58 = vadd.f32 %v1266_v10, %v1265_v3  ;;  %v1351_v44 = vadd.f32 %v1350_v46, %v1349_v53 }
 0x3a6   :  { %v1438_v32 = vadd.f32 %v1437_v36, %v1436_v8  ;;  %v1268_v26 = vsel %vm1164_vm12, %v1253_v27, 0.0  ;;  %v1415_v63 = vand.u32 2147483647, %v1409_v18  ;;  %v1426_v50 = vrot.slane %v1414_v4, 7 }
 0x3a7   :  { %v1439_v5 = vsel %vm1164_vm12, %v1425_v38, 0.0  ;;  %v1254_v34 = vrot.slane %v1242_v17, 7  ;;  %v1328_v20 = vand.u32 2147483647, %v1322_v13  ;;  %v1339_v12 = vrot.slane %v1327_v16, 7 }
 0x3a8   :  { %2593 = vadd.xlane.f32.xlu1 %v2592_v33  ;;  %2585 = vadd.xlane.f32.xlu0 %v2584_v22  ;;  %v1352_v51 = vsel %vm1164_vm12, %v1338_v45, 0.0  ;;  %v1175_v31 = vadd.f32 %v4891_v57, %v4903_v48  ;;  %v1195_v61 = vadd.f32 %v4897_v0, %v4932_v41  ;;  %v1214_v60 = vadd.f32 %v4924_v1, %v4996_v29 }
 0x3a9   :  { %v1269_v7 = vadd.f32 %v1268_v26, %v1267_v58  ;;  %v1440_v40 = vadd.f32 %v1439_v5, %v1438_v32  ;;  %v1270_v19 = vsel %vm1164_vm12, %v1254_v34, 0.0  ;;  %v1353_v6 = vadd.f32 %v1352_v51, %v1351_v44 }
 0x3aa   :  { %v1427_v24 = vrot.slane %v1415_v63, 7  ;;  %v1441_v42 = vsel %vm1164_vm12, %v1426_v50, 0.0  ;;  %v1215_v57 = vsel %vm1164_vm12, %v5486_v43, 0.0  ;;  %v1340_v48 = vrot.slane %v1328_v20, 7  ;;  %v2807_v43 = vld [vmem:[%s5314_s5 + $0x10] sm:$0xff] }
 0x3ab   :  { %v1354_v47 = vsel %vm1164_vm12, %v1339_v12, 0.0  ;;  %v1271_v0 = vadd.f32 %v1270_v19, %v1269_v7  ;;  %v1442_v41 = vadd.f32 %v1441_v42, %v1440_v40  ;;  %v1216_v1 = vadd.f32 %v1215_v57, %v1214_v60 }
 0x3ac   :  { %1036 = vadd.xlane.f32.xlu1 %v1035_v54  ;;  %841 = vadd.xlane.f32.xlu0 %v4992_v14  ;;  %v1355_v29 = vadd.f32 %v1354_v47, %v1353_v6  ;;  %v1443_v14 = vsel %vm1164_vm12, %v1427_v24, 0.0  ;;  %v1356_v25 = vsel %vm1164_vm12, %v1340_v48, 0.0  ;;  %v5168_v49 = vmul.f32 %v2808_v30, %v2807_v43 }
 0x3ad   :  { %v1444_v21 = vadd.f32 %v1443_v14, %v1442_v41  ;;  %v5178_v2 = vmul.f32 %v2804_v37, %v2319_v59 }
 0x3ae   :  { %v1357_v15 = vadd.f32 %v1356_v25, %v1355_v29  ;;  %v2496_v35 = vsel %vm252_vm1, %v5168_v49, 0.0 }
 0x3af   :  { %v2356_v56 = vsel %vm252_vm1, %v5178_v2, 0.0 }
 0x3b0   :  { %1196 = vadd.xlane.f32.xlu1 %v1195_v61  ;;  %1176 = vadd.xlane.f32.xlu0 %v1175_v31 }
 0x3b4   :  { %1272 = vadd.xlane.f32.xlu1 %v1271_v0  ;;  %1217 = vadd.xlane.f32.xlu0 %v1216_v1 }
 0x3b8   :  { %1445 = vadd.xlane.f32.xlu1 %v1444_v21  ;;  %1358 = vadd.xlane.f32.xlu0 %v1357_v15 }
 0x3bc   :  { %2497 = vadd.xlane.f32.xlu1 %v2496_v35  ;;  %2357 = vadd.xlane.f32.xlu0 %v2356_v56 }
 0x409   :  { %v2254_v62 = vpop.xlane.xlu1 %2253 }
 0x40a   :  { %3255 = vrsqrt.f32 %v2254_v62  ;;  %vm2257_vm0 = vcmp.eq.f32.partialorder %v2254_v62, inf  ;;  %vm2259_vm13 = vcmp.eq.f32.partialorder %v2254_v62, 0.0  ;;  %v2260_v36 = vand.u32 2147483648, %v2254_v62 }
 0x40d   :  { %v2276_v28 = vpop.xlane.xlu1 %2275  ;;  %v2265_v9 = vpop.xlane.xlu0 %2264 }
 0x40e   :  { %3257 = vrsqrt.f32 %v2276_v28  ;;  %vm2279_vm15 = vcmp.eq.f32.partialorder %v2276_v28, inf  ;;  %vm2281_vm2 = vcmp.eq.f32.partialorder %v2276_v28, 0.0  ;;  %v2282_v27 = vand.u32 2147483648, %v2276_v28 }
 0x40f   :  { %3259 = vrsqrt.f32 %v2265_v9  ;;  %vm2268_vm3 = vcmp.eq.f32.partialorder %v2265_v9, inf  ;;  %v2271_v33 = vand.u32 2147483648, %v2265_v9  ;;  %vm2270_vm4 = vcmp.eq.f32.partialorder %v2265_v9, 0.0 }
 0x411   :  { %v5182_v45 = vpop.xlane.xlu1 %2393  ;;  %v2287_v53 = vpop.xlane.xlu0 %2286 }
 0x412   :  { %3261 = vrsqrt.f32 %v5182_v45  ;;  %vm2397_vm5 = vcmp.eq.f32.partialorder %v5182_v45, inf  ;;  %vm2399_vm6 = vcmp.eq.f32.partialorder %v5182_v45, 0.0  ;;  %v2400_v20 = vand.u32 2147483648, %v5182_v45 }
 0x413   :  { %3263 = vrsqrt.f32 %v2287_v53  ;;  %vm2290_vm7 = vcmp.eq.f32.partialorder %v2287_v53, inf  ;;  %v2293_v12 = vand.u32 2147483648, %v2287_v53  ;;  %vm2292_vm8 = vcmp.eq.f32.partialorder %v2287_v53, 0.0 }
 0x415   :  { %v5185_v46 = vpop.xlane.xlu1 %2415  ;;  %v5188_v39 = vpop.xlane.xlu0 %2404 }
 0x416   :  { %3265 = vrsqrt.f32 %v5185_v46  ;;  %vm2419_vm9 = vcmp.eq.f32.partialorder %v5185_v46, inf  ;;  %v2422_v19 = vand.u32 2147483648, %v5185_v46  ;;  %vm2421_vm10 = vcmp.eq.f32.partialorder %v5185_v46, 0.0 }
 0x417   :  { %v3256_v52 = vpop.eup %3255  ;;  %3267 = vrsqrt.f32 %v5188_v39  ;;  %vm2408_vm11 = vcmp.eq.f32.partialorder %v5188_v39, inf  ;;  %v2411_v47 = vand.u32 2147483648, %v5188_v39  ;;  %vm2410_vm14 = vcmp.eq.f32.partialorder %v5188_v39, 0.0 }
 0x418   :  { %v2256_v3 = vmul.f32 %v3256_v52, %v2254_v62 }
 0x419   :  { %v5191_v8 = vpop.xlane.xlu1 %2533  ;;  %v5194_v10 = vpop.xlane.xlu0 %2426 }
 0x41a   :  { %3269 = vrsqrt.f32 %v5191_v8  ;;  %v2258_v11 = vsel %vm2257_vm0, %v2254_v62, %v2256_v3  ;;  %vm2537_vm12 = vcmp.eq.f32.partialorder %v5191_v8, inf  ;;  %vm2539_vm0 = vcmp.eq.f32.partialorder %v5191_v8, 0.0 }
 0x41b   :  { %v3258_v4 = vpop.eup %3257  ;;  %3271 = vrsqrt.f32 %v5194_v10  ;;  %v2261_v44 = vsel %vm2259_vm13, %v2260_v36, %v2258_v11  ;;  %vm2430_vm13 = vcmp.eq.f32.partialorder %v5194_v10, inf  ;;  %v2433_v35 = vand.u32 2147483648, %v5194_v10 }
 0x41c   :  { %v3260_v38 = vpop.eup %3259  ;;  %v2278_v23 = vmul.f32 %v3258_v4, %v2276_v28 }
 0x41d   :  { %v2267_v55 = vmul.f32 %v3260_v38, %v2265_v9  ;;  %v5197_v13 = vpop.xlane.xlu1 %2555  ;;  %v5200_v22 = vpop.xlane.xlu0 %2544 }
 0x41e   :  { %v2280_v16 = vsel %vm2279_vm15, %v2276_v28, %v2278_v23  ;;  %3273 = vrsqrt.f32 %v5197_v13  ;;  %v2540_v28 = vand.u32 2147483648, %v5191_v8  ;;  %vm2432_vm15 = vcmp.eq.f32.partialorder %v5194_v10, 0.0 }
 0x41f   :  { %v3262_v54 = vpop.eup %3261  ;;  %v2283_v18 = vsel %vm2281_vm2, %v2282_v27, %v2280_v16  ;;  %v2269_v17 = vsel %vm2268_vm3, %v2265_v9, %v2267_v55  ;;  %3275 = vrsqrt.f32 %v5200_v22  ;;  %vm2559_vm2 = vcmp.eq.f32.partialorder %v5197_v13, inf }
 0x420   :  { %v3264_v58 = vpop.eup %3263  ;;  %v2272_v32 = vsel %vm2270_vm4, %v2271_v33, %v2269_v17  ;;  %v2396_v26 = vmul.f32 %v3262_v54, %v5182_v45  ;;  %v2562_v52 = vand.u32 2147483648, %v5197_v13  ;;  %vm2561_vm3 = vcmp.eq.f32.partialorder %v5197_v13, 0.0 }
 0x421   :  { %v2289_v63 = vmul.f32 %v3264_v58, %v2287_v53  ;;  %v5206_v50 = vpop.xlane.xlu1 %2297  ;;  %v2299_v5 = vmul.f32 %v2272_v32, %v2261_v44  ;;  %v2315_v34 = vmul.f32 %v2283_v18, %v2272_v32  ;;  %v5210_v51 = vpop.xlane.xlu0 %2566  ;;  %vm2548_vm4 = vcmp.eq.f32.partialorder %v5200_v22, inf }
 0x422   :  { %v2398_v6 = vsel %vm2397_vm5, %v5182_v45, %v2396_v26  ;;  %vm2550_vm5 = vcmp.eq.f32.partialorder %v5200_v22, 0.0 }
 0x423   :  { %v3266_v31 = vpop.eup %3265  ;;  %v2291_v61 = vsel %vm2290_vm7, %v2287_v53, %v2289_v63  ;;  %3277 = vrcp.f32 %v2299_v5  ;;  %v2401_v25 = vsel %vm2399_vm6, %v2400_v20, %v2398_v6  ;;  %vm2570_vm6 = vcmp.eq.f32.partialorder %v5210_v51, inf  ;;  %v2811_v6 = vld [vmem:[%s5314_s5 + $0x20] sm:$0xff] }
 0x424   :  { %v3268_v60 = vpop.eup %3267  ;;  %v2294_v7 = vsel %vm2292_vm8, %v2293_v12, %v2291_v61  ;;  %v2418_v40 = vmul.f32 %v3266_v31, %v5185_v46  ;;  %3279 = vrsqrt.f32 %v5210_v51  ;;  %v2573_v63 = vand.u32 2147483648, %v5210_v51 }
 0x425   :  { %v2407_v24 = vmul.f32 %v3268_v60, %v5188_v39  ;;  %v5220_v42 = vpop.xlane.xlu1 %2313  ;;  %3281 = vrcp.f32 %v2315_v34  ;;  %v2307_v57 = vmul.f32 %v2294_v7, %v2261_v44  ;;  %v5226_v0 = vpop.xlane.xlu0 %2305  ;;  %vm2572_vm7 = vcmp.eq.f32.partialorder %v5210_v51, 0.0 }
 0x426   :  { %v2420_v48 = vsel %vm2419_vm9, %v5185_v46, %v2418_v40 }
 0x427   :  { %v3270_v41 = vpop.eup %3269  ;;  %v2423_v1 = vsel %vm2421_vm10, %v2422_v19, %v2420_v48  ;;  %v2409_v29 = vsel %vm2408_vm11, %v5188_v39, %v2407_v24  ;;  %3283 = vrcp.f32 %v2307_v57  ;;  %v2812_v24 = vld [vmem:[%s5314_s5 + $0x28] sm:$0xff] }
 0x428   :  { %v3272_v14 = vpop.eup %3271  ;;  %v2412_v21 = vsel %vm2410_vm14, %v2411_v47, %v2409_v29  ;;  %v2536_v15 = vmul.f32 %v3270_v41, %v5191_v8 }
 0x429   :  { %v2429_v43 = vmul.f32 %v3272_v14, %v5194_v10  ;;  %v5234_v30 = vpop.xlane.xlu1 %2445  ;;  %v2439_v59 = vmul.f32 %v2412_v21, %v2401_v25  ;;  %v2455_v37 = vmul.f32 %v2423_v1, %v2412_v21  ;;  %v2438_v56 = vpop.xlane.xlu0 %2437 }
 0x42a   :  { %v2538_v39 = vsel %vm2537_vm12, %v5191_v8, %v2536_v15 }
 0x42b   :  { %v3274_v62 = vpop.eup %3273  ;;  %v2431_v9 = vsel %vm2430_vm13, %v5194_v10, %v2429_v43  ;;  %3285 = vrcp.f32 %v2439_v59  ;;  %v2551_v10 = vand.u32 2147483648, %v5200_v22  ;;  %v2541_v16 = vsel %vm2539_vm0, %v2540_v28, %v2538_v39 }
 0x42c   :  { %v3276_v45 = vpop.eup %3275  ;;  %v2434_v53 = vsel %vm2432_vm15, %v2433_v35, %v2431_v9  ;;  %v2558_v46 = vmul.f32 %v3274_v62, %v5197_v13  ;;  %3287 = vrcp.f32 %v2455_v37 }
 0x42d   :  { %v2547_v3 = vmul.f32 %v3276_v45, %v5200_v22  ;;  %v2447_v4 = vmul.f32 %v2434_v53, %v2401_v25  ;;  %v5248_v38 = vpop.xlane.xlu1 %2577  ;;  %v2454_v23 = vpop.xlane.xlu0 %2453  ;;  %v5276_v25 = vmul.f32 %v2812_v24, %v2811_v6 }
 0x42e   :  { %v2560_v36 = vsel %vm2559_vm2, %v5197_v13, %v2558_v46 }
 0x42f   :  { %v2563_v11 = vsel %vm2561_vm3, %v2562_v52, %v2560_v36  ;;  %v2549_v27 = vsel %vm2548_vm4, %v5200_v22, %v2547_v3  ;;  %3289 = vrcp.f32 %v2447_v4 }
 0x430   :  { %v3278_v55 = vpop.eup %3277  ;;  %v2552_v33 = vsel %vm2550_vm5, %v2551_v10, %v2549_v27 }
 0x431   :  { %v3280_v54 = vpop.eup %3279  ;;  %v2301_v18 = vmul.f32 %v3278_v55, %v5206_v50  ;;  %v2579_v13 = vmul.f32 %v2552_v33, %v2541_v16  ;;  %v5259_v17 = vpop.xlane.xlu1 %2593  ;;  %v2595_v58 = vmul.f32 %v2563_v11, %v2552_v33 }
 0x432   :  { %v3282_v44 = vpop.eup %3281  ;;  %v2569_v32 = vmul.f32 %v3280_v54, %v5210_v51  ;;  %v5263_v26 = vpop.xlane.xlu0 %2585 }
 0x433   :  { %v2302_v22 = vsub.f32 1.0, %v2301_v18  ;;  %v2317_v8 = vmul.f32 %v3282_v44, %v5220_v42  ;;  %3291 = vrcp.f32 %v2579_v13 }
 0x434   :  { %v3284_v5 = vpop.eup %3283  ;;  %v2571_v50 = vsel %vm2570_vm6, %v5210_v51, %v2569_v32  ;;  %3293 = vrcp.f32 %v2595_v58 }
 0x435   :  { %v2574_v34 = vsel %vm2572_vm7, %v2573_v63, %v2571_v50  ;;  %v2318_v20 = vsub.f32 1.0, %v2317_v8  ;;  %v2309_v12 = vmul.f32 %v3284_v5, %v5226_v0  ;;  %v1037_v31 = vpop.xlane.xlu1 %1036 }
 0x436   :  { %v2587_v61 = vmul.f32 %v2574_v34, %v2541_v16  ;;  %v842_v60 = vpop.xlane.xlu0 %841  ;;  %v1038_v7 = vrot.slane %v1037_v31, 4 }
 0x437   :  { %v2340_v40 = vsub.f32 %v2302_v22, %v2318_v20  ;;  %v2310_v19 = vsub.f32 1.0, %v2309_v12  ;;  %v843_v51 = vrot.slane %v842_v60, 4 }
 0x438   :  { %v3286_v42 = vpop.eup %3285  ;;  %3295 = vrcp.f32 %v2587_v61  ;;  %v1039_v57 = vadd.f32 %v1038_v7, %v1037_v31 }
 0x439   :  { %v3288_v48 = vpop.eup %3287  ;;  %v2323_v47 = vsub.f32 %v2302_v22, %v2310_v19  ;;  %v2441_v0 = vmul.f32 %v3286_v42, %v2438_v56  ;;  %v2341_v41 = vadd.f32 0.5, %v2340_v40  ;;  %v844_v1 = vadd.f32 %v843_v51, %v842_v60  ;;  %v1197_v29 = vpop.xlane.xlu1 %1196 }
 0x43a   :  { %v2457_v14 = vmul.f32 %v3288_v48, %v2454_v23  ;;  %v1040_v21 = vrot.slane %v1039_v57, 2  ;;  %v1177_v15 = vpop.xlane.xlu0 %1176  ;;  %v1198_v43 = vrot.slane %v1197_v29, 4 }
 0x43b   :  { %v2442_v59 = vsub.f32 1.0, %v2441_v0  ;;  %v2342_v37 = vmax.f32 %v2341_v41, 0.0  ;;  %v2324_v35 = vadd.f32 0.5, %v2323_v47  ;;  %v845_v62 = vrot.slane %v844_v1, 2 }
 0x43c   :  { %v3290_v28 = vpop.eup %3289  ;;  %v2458_v9 = vsub.f32 1.0, %v2457_v14  ;;  %v1178_v45 = vrot.slane %v1177_v15, 4  ;;  %v1199_v53 = vadd.f32 %v1198_v43, %v1197_v29  ;;  %v1041_v46 = vadd.f32 %v1040_v21, %v1039_v57 }
 0x43d   :  { %v2449_v56 = vmul.f32 %v3290_v28, %v5234_v30  ;;  %v2343_v39 = vmul.f32 %v2342_v37, %v5178_v2  ;;  %v2325_v52 = vmax.f32 %v2324_v35, 0.0  ;;  %v1273_v3 = vpop.xlane.xlu1 %1272  ;;  %v846_v4 = vadd.f32 %v845_v62, %v844_v1 }
 0x43e   :  { %v2480_v36 = vsub.f32 %v2442_v59, %v2458_v9  ;;  %v1179_v10 = vadd.f32 %v1178_v45, %v1177_v15  ;;  %v1200_v23 = vrot.slane %v1199_v53, 2  ;;  %v1218_v11 = vpop.xlane.xlu0 %1217  ;;  %v1274_v27 = vrot.slane %v1273_v3, 4 }
 0x43f   :  { %v2450_v55 = vsub.f32 1.0, %v2449_v56  ;;  %v2344_v16 = vsel %vm252_vm1, %v2343_v39, 0.0  ;;  %v2326_v33 = vmul.f32 %v2325_v52, %v5178_v2  ;;  %v1219_v54 = vrot.slane %v1218_v11, 4 }
 0x440   :  { %v3292_v18 = vpop.eup %3291  ;;  %2345 = vadd.xlane.f32.xlu1 %v2344_v16  ;;  %v2481_v13 = vadd.f32 0.5, %v2480_v36  ;;  %v1180_v30 = vrot.slane %v1179_v10, 2  ;;  %v1275_v58 = vadd.f32 %v1274_v27, %v1273_v3  ;;  %v847_v44 = vrot.slane %v846_v4, 1 }
 0x441   :  { %v3294_v32 = vpop.eup %3293  ;;  %v2464_v22 = vsub.f32 %v2442_v59, %v2450_v55  ;;  %v2581_v63 = vmul.f32 %v3292_v18, %v5248_v38  ;;  %v2328_v8 = vsel %vm252_vm1, %v2326_v33, 0.0  ;;  %v1220_v5 = vadd.f32 %v1219_v54, %v1218_v11  ;;  %v1446_v50 = vpop.xlane.xlu1 %1445 }
 0x442   :  { %v2597_v34 = vmul.f32 %v3294_v32, %v5259_v17  ;;  %2329 = vadd.xlane.f32.xlu0 %v2328_v8  ;;  %v2482_v20 = vmax.f32 %v2481_v13, 0.0  ;;  %v1276_v2 = vrot.slane %v1275_v58, 2  ;;  %v1359_v12 = vpop.xlane.xlu0 %1358  ;;  %v1447_v31 = vrot.slane %v1446_v50, 4 }
 0x443   :  { %v2582_v61 = vsub.f32 1.0, %v2581_v63  ;;  %v2465_v60 = vadd.f32 0.5, %v2464_v22  ;;  %v1221_v7 = vrot.slane %v1220_v5, 2  ;;  %v1360_v40 = vrot.slane %v1359_v12, 4 }
 0x444   :  { %v2598_v19 = vsub.f32 1.0, %v2597_v34  ;;  %v2483_v6 = vmul.f32 %v2482_v20, %v5168_v49  ;;  %v1448_v24 = vadd.f32 %v1447_v31, %v1446_v50  ;;  %v848_v38 = vadd.f32 %v847_v44, %v846_v4 }
 0x445   :  { %v3296_v51 = vpop.eup %3295  ;;  %v2466_v42 = vmax.f32 %v2465_v60, 0.0  ;;  %v1361_v57 = vadd.f32 %v1360_v40, %v1359_v12  ;;  %v1042_v48 = vrot.slane %v1041_v46, 1  ;;  %v1181_v47 = vadd.f32 %v1180_v30, %v1179_v10 }
 0x446   :  { %v2620_v17 = vsub.f32 %v2582_v61, %v2598_v19  ;;  %v2589_v0 = vmul.f32 %v3296_v51, %v5263_v26  ;;  %v2484_v41 = vsel %vm252_vm1, %v2483_v6, 0.0  ;;  %v1449_v1 = vrot.slane %v1448_v24, 2  ;;  %2875 = vpush %v848_v38  ;;  %v2358_v30 = vpop.xlane.xlu0 %2357 }
 0x447   :  { %2485 = vadd.xlane.f32.xlu0 %v2484_v41  ;;  %v2467_v29 = vmul.f32 %v2466_v42, %v5168_v49  ;;  %v1362_v14 = vrot.slane %v1361_v57, 2  ;;  %v1043_v21 = vadd.f32 %v1042_v48, %v1041_v46  ;;  %v1182_v15 = vrot.slane %v1181_v47, 1 }
 0x448   :  { %v2590_v43 = vsub.f32 1.0, %v2589_v0  ;;  %v2621_v59 = vadd.f32 0.5, %v2620_v17  ;;  %v1201_v37 = vadd.f32 %v1200_v23, %v1199_v53  ;;  %v1222_v35 = vadd.f32 %v1221_v7, %v1220_v5 }
 0x449   :  { %v2468_v62 = vsel %vm252_vm1, %v2467_v29, 0.0  ;;  %2877 = vpush %v1043_v21  ;;  %v1183_v28 = vadd.f32 %v1182_v15, %v1181_v47  ;;  %v1277_v9 = vadd.f32 %v1276_v2, %v1275_v58  ;;  %v1363_v26 = vadd.f32 %v1362_v14, %v1361_v57 }
 0x44a   :  { %v2604_v45 = vsub.f32 %v2582_v61, %v2590_v43  ;;  %2469 = vadd.xlane.f32.xlu1 %v2468_v62  ;;  %v2622_v56 = vmax.f32 %v2621_v59, 0.0  ;;  %v1202_v39 = vrot.slane %v1201_v37, 1  ;;  %v1223_v52 = vrot.slane %v1222_v35, 1 }
 0x44b   :  { %2879 = vpush %v1183_v28  ;;  %v1278_v49 = vrot.slane %v1277_v9, 1  ;;  %v1364_v3 = vrot.slane %v1363_v26, 1  ;;  %v1450_v46 = vadd.f32 %v1449_v1, %v1448_v24  ;;  %v2636_v13 = vsel %vm252_vm1, %v5276_v25, 0.0 }
 0x44c   :  { %v2623_v4 = vmul.f32 %v2622_v56, %v5276_v25  ;;  %v2605_v36 = vadd.f32 0.5, %v2604_v45  ;;  %v1203_v53 = vadd.f32 %v1202_v39, %v1201_v37  ;;  %v1224_v10 = vadd.f32 %v1223_v52, %v1222_v35 }
 0x44d   :  { %v1279_v23 = vadd.f32 %v1278_v49, %v1277_v9  ;;  %v1365_v11 = vadd.f32 %v1364_v3, %v1363_v26  ;;  %v1451_v27 = vrot.slane %v1450_v46, 1  ;;  %v2359_v58 = vrot.slane %v2358_v30, 4 }
 0x44e   :  { %v2624_v55 = vsel %vm252_vm1, %v2623_v4, 0.0  ;;  %v2606_v16 = vmax.f32 %v2605_v36, 0.0  ;;  %2881 = vpush %v1203_v53 }
 0x44f   :  { %2625 = vadd.xlane.f32.xlu1 %v2624_v55  ;;  %2883 = vpush %v1224_v10  ;;  %v1452_v33 = vadd.f32 %v1451_v27, %v1450_v46  ;;  %v2360_v44 = vadd.f32 %v2359_v58, %v2358_v30 }
 0x450   :  { %v2607_v54 = vmul.f32 %v2606_v16, %v5276_v25  ;;  %2885 = vpush %v1279_v23  ;;  %v2498_v25 = vpop.xlane.xlu1 %2497 }
 0x451   :  { %2887 = vpush %v1365_v11  ;;  %v2499_v8 = vrot.slane %v2498_v25, 4  ;;  %v2361_v50 = vrot.slane %v2360_v44, 2 }
 0x452   :  { %v2608_v18 = vsel %vm252_vm1, %v2607_v54, 0.0  ;;  %2889 = vpush %v1452_v33 }
 0x453   :  { %2609 = vadd.xlane.f32.xlu0 %v2608_v18  ;;  %v2500_v12 = vadd.f32 %v2499_v8, %v2498_v25  ;;  %v2362_v7 = vadd.f32 %v2361_v50, %v2360_v44 }
 0x455   :  { %v2501_v51 = vrot.slane %v2500_v12, 2  ;;  %v2363_v48 = vrot.slane %v2362_v7, 1 }
 0x457   :  { %2637 = vadd.xlane.f32.xlu0 %v2636_v13  ;;  %v2364_v21 = vadd.f32 %v2363_v48, %v2362_v7  ;;  %v2502_v15 = vadd.f32 %v2501_v51, %v2500_v12 }
 0x459   :  { %v2503_v9 = vrot.slane %v2502_v15, 1 }
 0x45b   :  { %v2504_v46 = vadd.f32 %v2503_v9, %v2502_v15 }
 0x477   :  { %s2876_s5 = spop %2875 }
 0x478   :  { %s850_s24 = ssub.f32 0.0, %s2876_s5 }
 0x47a   :  { %s2878_s25 = spop %2877 }
 0x47b   :  { %s1045_s6 = ssub.f32 0.0, %s2878_s25 }
 0x47c   :  { %s2880_s3 = spop %2879 }
 0x47d   :  { %s1046_s26 = sadd.f32 %s1045_s6, %s850_s24 }
 0x47f   :  { %s1049_s8 = smul.f32 0.16666667, %s1046_s26  ;;  %s2882_s27 = spop %2881 }
 0x480   :  { %s1205_s1 = sadd.f32 %s2882_s27, %s2880_s3  ;;  %s2884_s28 = spop %2883 }
 0x481   :  { %2661 = sst [smem:[#allocation12 + $0x1]] %s1049_s8  ;;  %s2886_s29 = spop %2885 }
 0x482   :  { %s1226_s30 = sadd.f32 %s2884_s28, %s1205_s1  ;;  %s2888_s10 = spop %2887 }
 0x483   :  { %s1367_s11 = sadd.f32 %s2888_s10, %s2886_s29  ;;  %s2890_s12 = spop %2889 }
 0x484   :  { %s1227_s13 = smul.f32 0.8, %s1226_s30 }
 0x485   :  { %s1454_s14 = sadd.f32 %s2890_s12, %s1367_s11 }
 0x486   :  { %s1230_s15 = smul.f32 0.0034722222, %s1227_s13 }
 0x487   :  { %s1455_s7 = smul.f32 0.8, %s1454_s14 }
 0x488   :  { %s5296_s16 = sadd.f32 %s1230_s15, %s1049_s8 }
 0x489   :  { %2663 = sst [smem:[#allocation12 + $0x2]] %s1230_s15  ;;  %s5298_s4 = smul.f32 0.0034722222, %s1455_s7 }
 0x48a   :  { %s3562_s7 = smov [#allocation12]  }
 0x48b   :  { %s2655_s17 = sadd.f32 %s5296_s16, %s5298_s4 }
 0x48c   :  { %2665 = sst [smem:[#allocation12 + $0x3]] %s5298_s4 }
 0x4c9   :  { %v2346_v32 = vpop.xlane.xlu1 %2345 }
 0x4ca   :  { %v2347_v22 = vrot.slane %v2346_v32, 4 }
 0x4cb   :  { %v2330_v63 = vpop.xlane.xlu0 %2329 }
 0x4cc   :  { %v2348_v5 = vadd.f32 %v2347_v22, %v2346_v32  ;;  %v2331_v34 = vrot.slane %v2330_v63, 4 }
 0x4ce   :  { %v2349_v20 = vrot.slane %v2348_v5, 2  ;;  %v2332_v2 = vadd.f32 %v2331_v34, %v2330_v63 }
 0x4d0   :  { %v2333_v31 = vrot.slane %v2332_v2, 2  ;;  %v2486_v61 = vpop.xlane.xlu0 %2485  ;;  %v2350_v60 = vadd.f32 %v2349_v20, %v2348_v5 }
 0x4d1   :  { %v2487_v40 = vrot.slane %v2486_v61, 4 }
 0x4d2   :  { %v2334_v19 = vadd.f32 %v2333_v31, %v2332_v2  ;;  %v2351_v38 = vrot.slane %v2350_v60, 1 }
 0x4d3   :  { %v2488_v6 = vadd.f32 %v2487_v40, %v2486_v61  ;;  %v2470_v24 = vpop.xlane.xlu1 %2469 }
 0x4d4   :  { %v2471_v42 = vrot.slane %v2470_v24, 4  ;;  %v2335_v57 = vrot.slane %v2334_v19, 1  ;;  %v2352_v41 = vadd.f32 %v2351_v38, %v2350_v60 }
 0x4d5   :  { %v2489_v47 = vrot.slane %v2488_v6, 2 }
 0x4d6   :  { %v2472_v17 = vadd.f32 %v2471_v42, %v2470_v24  ;;  %v2336_v0 = vadd.f32 %v2335_v57, %v2334_v19 }
 0x4d7   :  { %v2490_v1 = vadd.f32 %v2489_v47, %v2488_v6 }
 0x4d8   :  { %v2473_v29 = vrot.slane %v2472_v17, 2  ;;  %v2626_v14 = vpop.xlane.xlu1 %2625  ;;  %2891 = vpush %v2336_v0 }
 0x4d9   :  { %v2627_v43 = vrot.slane %v2626_v14, 4  ;;  %2893 = vpush %v2352_v41  ;;  %v2491_v35 = vrot.slane %v2490_v1, 1 }
 0x4da   :  { %2895 = vpush %v2364_v21  ;;  %v2474_v59 = vadd.f32 %v2473_v29, %v2472_v17 }
 0x4db   :  { %v2628_v37 = vadd.f32 %v2627_v43, %v2626_v14  ;;  %v2492_v52 = vadd.f32 %v2491_v35, %v2490_v1 }
 0x4dc   :  { %v2610_v62 = vpop.xlane.xlu0 %2609  ;;  %v2475_v28 = vrot.slane %v2474_v59, 1 }
 0x4dd   :  { %v2629_v26 = vrot.slane %v2628_v37, 2  ;;  %v2611_v45 = vrot.slane %v2610_v62, 4 }
 0x4de   :  { %v2476_v56 = vadd.f32 %v2475_v28, %v2474_v59 }
 0x4df   :  { %v2612_v39 = vadd.f32 %v2611_v45, %v2610_v62  ;;  %v2630_v49 = vadd.f32 %v2629_v26, %v2628_v37 }
 0x4e0   :  { %v2638_v3 = vpop.xlane.xlu0 %2637  ;;  %2897 = vpush %v2476_v56 }
 0x4e1   :  { %v2613_v4 = vrot.slane %v2612_v39, 2  ;;  %v2639_v36 = vrot.slane %v2638_v3, 4  ;;  %2899 = vpush %v2492_v52  ;;  %v2631_v23 = vrot.slane %v2630_v49, 1 }
 0x4e2   :  { %2901 = vpush %v2504_v46 }
 0x4e3   :  { %v2640_v53 = vadd.f32 %v2639_v36, %v2638_v3  ;;  %v2614_v10 = vadd.f32 %v2613_v4, %v2612_v39  ;;  %v2632_v33 = vadd.f32 %v2631_v23, %v2630_v49 }
 0x4e5   :  { %v2641_v11 = vrot.slane %v2640_v53, 2  ;;  %v2615_v27 = vrot.slane %v2614_v10, 1 }
 0x4e7   :  { %v2642_v55 = vadd.f32 %v2641_v11, %v2640_v53  ;;  %v2616_v16 = vadd.f32 %v2615_v27, %v2614_v10 }
 0x4e9   :  { %2903 = vpush %v2616_v16  ;;  %v2643_v54 = vrot.slane %v2642_v55, 1 }
 0x4ea   :  { %2905 = vpush %v2632_v33 }
 0x4eb   :  { %v2644_v18 = vadd.f32 %v2643_v54, %v2642_v55 }
 0x4ed   :  { %2907 = vpush %v2644_v18 }
 0x509   :  { %s2892_s18 = spop %2891 }
 0x50a   :  { %s2894_s19 = spop %2893  ;;  %s2338_s26 = smul.f32 0.5, %s2892_s18 }
 0x50b   :  { %s2896_s20 = spop %2895  ;;  %s2354_s3 = smul.f32 0.5, %s2894_s19 }
 0x50d   :  { %s2355_s27 = sadd.f32 %s2354_s3, %s2338_s26 }
 0x511   :  { %s2898_s21 = spop %2897 }
 0x512   :  { %s2900_s0 = spop %2899  ;;  %s2478_s8 = smul.f32 0.5, %s2898_s21 }
 0x513   :  { %s2902_s22 = spop %2901  ;;  %s2494_s28 = smul.f32 0.5, %s2900_s0 }
 0x514   :  { %s2506_s5 = sadd.f32 %s2902_s22, %s2896_s20 }
 0x515   :  { %s2479_s1 = sadd.f32 %s2478_s8, %s2355_s27 }
 0x517   :  { %s2495_s30 = sadd.f32 %s2494_s28, %s2479_s1 }
 0x51a   :  { %s2904_s23 = spop %2903 }
 0x51b   :  { %s2906_s24 = spop %2905  ;;  %s2618_s29 = smul.f32 0.5, %s2904_s23 }
 0x51c   :  { %s2634_s11 = smul.f32 0.5, %s2906_s24 }
 0x51d   :  { %s2619_s10 = sadd.f32 %s2618_s29, %s2495_s30 }
 0x51e   :  { %s2908_s25 = spop %2907 }
 0x51f   :  { %s2646_s6 = sadd.f32 %s2908_s25, %s2506_s5 }
 0x520   :  { %s2635_s12 = sadd.f32 %s2634_s11, %s2619_s10 }
 0x521   :  { %v2647_v13 = vstv %s2646_s6 }
 0x522   :  { %3297 = vrcp.f32 %v2647_v13 }
 0x52f   :  { %v3298_v25 = vpop.eup %3297 }
 0x530   :  { %2909 = vpush %v3298_v25 }
 0x561   :  { %s2910_s13 = spop %2909 }
 0x562   :  { %s2650_s14 = smul.f32 %s2910_s13, %s2635_s12 }
 0x564   :  { %s2656_s15 = sadd.f32 %s2655_s17, %s2650_s14 }
 0x565   :  { %2667 = sst [smem:[#allocation12 + $0x4]] %s2650_s14 }
 0x566   :  { %2659 = sst [smem:[#allocation12]] %s2656_s15 }
 0x567   :  { %2681 = dma.smem_to_hbm %s3562_s7, 16, %s5318_s9, [#allocation9]  }
 0x568   :  { %3451 = dma.done.wait [#allocation9], 16  }
 0x569   :  { %3452 = vsyncadd [#allocation9], 4294967280 }
 0x56a   :  { %2685 = sfence }
 0x56b   :  { %2686 = vsyncpa [#allocation8], 1 }
 0x56c   :  { %2687 = vsyncpa [#allocation11], 1 }
 0x56d   :  { %2688 = vsyncpa [#allocation9], 1 }

</bundles_post_ra>
